<compile_context>
chip_gen: v7x
topology: tpu7x:2x2x1
jax: 0.10.0
libtpu: 0.0.40
codegen_flags: <defaults>
</compile_context>

<pallas_src>
import functools

import jax
import jax.numpy as jnp
import numpy as np
from jax.experimental import pallas as pl
from jax.experimental.pallas import tpu as pltpu


def _conv3d_kernel(x_ref, w_ref, b_ref, o_ref, *, strided, D, Ho):
    """One batch element, full depth: Conv3d(k=3, p=1) + bias + ReLU.

    x_ref: (1, D+2, H+2, (W+2)*Cin)        bf16  (unstrided layer), or
           (1, D+2, 2, H//2+1, (W+2)*Cin)  bf16  (stride (1,2,2), H-parity packed)
    w_ref: (9, (W+2)*Cin, Wo*Cout)         bf16  banded per-(kd,kh) weights
    b_ref: (1, Wo*Cout)                    f32   bias tiled over Wo
    o_ref: (1, D*Ho, Wo*Cout)              f32
    """
    m = D * Ho
    nc = o_ref.shape[-1]
    acc = jnp.zeros((m, nc), jnp.float32)
    for kd in range(3):
        for kh in range(3):
            if strided:
                par, q0 = kh % 2, kh // 2
                a = x_ref[0, kd:kd + D, par, q0:q0 + Ho, :]     # (D, Ho, (W+2)*Cin)
            else:
                a = x_ref[0, kd:kd + D, kh:kh + Ho, :]          # (D, Ho, (W+2)*Cin)
            a = a.reshape(m, a.shape[-1])
            # bf16 operands, f32 accumulation on the MXU; result lane dim = Wo*Cout.
            acc = acc + jnp.dot(a, w_ref[kd * 3 + kh],
                                preferred_element_type=jnp.float32)
    o_ref[0] = jnp.maximum(acc + b_ref[...], 0.0).astype(o_ref.dtype)


def _banded_weights(w, stride_w, w_in):
    """Fold the kw taps + W stride + W zero padding into banded weight matrices.

    w: (3, 3, 3, Cin, Cout) f32, (kD, kH, kW, Cin, Cout).
    Returns (9, (w_in+2)*Cin, Wo*Cout) with
      B[kd*3+kh, wp*Cin + c, w*Cout + co] = w[kd, kh, wp - stride_w*w, c, co]
    when 0 <= wp - stride_w*w <= 2, else 0.
    """
    _, _, _, cin, cout = w.shape
    wp_len = w_in + 2
    wo = w_in // stride_w
    kw_of = np.arange(wp_len)[:, None] - stride_w * np.arange(wo)[None, :]  # (Wp, Wo)
    valid = ((kw_of >= 0) & (kw_of <= 2)).astype(np.float32)
    kw_cl = np.clip(kw_of, 0, 2).reshape(-1)
    band = jnp.take(w, jnp.asarray(kw_cl), axis=2)            # (3, 3, Wp*Wo, Cin, Cout)
    band = band.reshape(3, 3, wp_len, wo, cin, cout)
    band = band * jnp.asarray(valid)[None, None, :, :, None, None]
    band = band.transpose(0, 1, 2, 4, 3, 5)                   # (3, 3, Wp, Cin, Wo, Cout)
    return band.reshape(9, wp_len * cin, wo * cout)


def conv3d_relu_ndhwc(x, w, b, *, strided):
    """Conv3d(k=3, p=1) + ReLU.  x: (N, D, H, W, Cin) f32 NDHWC.
    strided=False -> stride (1,1,1); strided=True -> stride (1,2,2).
    Returns (N, D, Ho, Wo, Cout) f32."""
    N, D, H, W, Cin = x.shape
    Cout = w.shape[-1]
    s = 2 if strided else 1
    Ho, Wo = H // s, W // s
    Wp, Dp = W + 2, D + 2

    xp = jnp.pad(x, ((0, 0), (1, 1), (1, 1), (1, 1), (0, 0)))  # zero pad D, H, W
    if strided:
        assert H % 2 == 0 and W % 2 == 0
        # H-parity pack + W/C fold: (N,Dp,H+2,W+2,Cin) -> (N,Dp,2,Ho+1,Wp*Cin)
        xp = xp.reshape(N, Dp, Ho + 1, 2, Wp * Cin).transpose(0, 1, 3, 2, 4)
    else:
        # W/C fold: (N,Dp,H+2,W+2,Cin) -> (N,Dp,H+2,Wp*Cin)
        xp = xp.reshape(N, Dp, H + 2, Wp * Cin)
    xp = xp.astype(jnp.bfloat16)

    wb = _banded_weights(w, s, W).astype(jnp.bfloat16)          # (9, Wp*Cin, Wo*Cout)
    bt = jnp.tile(b, Wo).reshape(1, Wo * Cout).astype(jnp.float32)

    M, NC = D * Ho, Wo * Cout
    kernel = functools.partial(_conv3d_kernel, strided=strided, D=D, Ho=Ho)
    x_block = (1,) + xp.shape[1:]
    x_index = (lambda n: (n, 0, 0, 0, 0)) if strided else (lambda n: (n, 0, 0, 0))

    out = pl.pallas_call(
        kernel,
        out_shape=jax.ShapeDtypeStruct((N, M, NC), jnp.float32),
        grid_spec=pltpu.PrefetchScalarGridSpec(
            num_scalar_prefetch=0,
            grid=(N,),
            in_specs=[
                pl.BlockSpec(x_block, x_index),                 # whole volume per n
                pl.BlockSpec(wb.shape, lambda n: (0, 0, 0)),    # constant -> DMA'd once
                pl.BlockSpec((1, NC), lambda n: (0, 0)),
            ],
            out_specs=pl.BlockSpec((1, M, NC), lambda n: (n, 0, 0)),
        ),
        compiler_params=pltpu.CompilerParams(
            dimension_semantics=("parallel",),
            vmem_limit_bytes=32 * 1024 * 1024,
        ),
    )(xp, wb, bt)

    return out.reshape(N, D, Ho, Wo, Cout)


def encoder3d_forward(x_ncdhw, params):
    """Matches Encoder3D.forward: returns (out3, out2, out1) in NCDHW."""
    w1, b1, w2, b2, w3, b3 = params
    x = jnp.transpose(x_ncdhw, (0, 2, 3, 4, 1))                 # NCDHW -> NDHWC
    out1 = conv3d_relu_ndhwc(x, w1, b1, strided=False)          # stride (1,1,1)
    out2 = conv3d_relu_ndhwc(out1, w2, b2, strided=True)        # stride (1,2,2)
    out3 = conv3d_relu_ndhwc(out2, w3, b3, strided=True)        # stride (1,2,2)
    to_ncdhw = lambda t: jnp.transpose(t, (0, 4, 1, 2, 3))
    return to_ncdhw(out3), to_ncdhw(out2), to_ncdhw(out1)


def init_params(key, in_channels, base_channels):
    c1, c2, c3 = base_channels, base_channels * 2, base_channels * 4
    ks = jax.random.split(key, 6)

    def conv_init(kw, kb, cin, cout):
        fan_in = cin * 27
        w = jax.random.normal(kw, (3, 3, 3, cin, cout), jnp.float32) / np.sqrt(fan_in)
        b = jax.random.normal(kb, (cout,), jnp.float32) * 0.01
        return w, b

    w1, b1 = conv_init(ks[0], ks[1], in_channels, c1)
    w2, b2 = conv_init(ks[2], ks[3], c1, c2)
    w3, b3 = conv_init(ks[4], ks[5], c2, c3)
    return (w1, b1, w2, b2, w3, b3)


def ref_conv3d_relu(x_ncdhw, w, b, stride):
    """Matched-precision reference: bf16-rounded operands, f32 accumulation
    (same numerics as the kernel's bf16-operand / f32-accumulate MXU path)."""
    xr = x_ncdhw.astype(jnp.bfloat16).astype(jnp.float32)
    wr = w.astype(jnp.bfloat16).astype(jnp.float32)
    w_oidhw = jnp.transpose(wr, (4, 3, 0, 1, 2))
    y = jax.lax.conv_general_dilated(
        xr, w_oidhw, window_strides=stride,
        padding=((1, 1), (1, 1), (1, 1)),
        dimension_numbers=("NCDHW", "OIDHW", "NCDHW"),
        precision=jax.lax.Precision.HIGHEST)
    y = y + b.reshape(1, -1, 1, 1, 1)
    return jnp.maximum(y, 0.0)


if __name__ == "__main__":
    in_channels, base_channels = 3, 16
    N, D, H, W = 2, 4, 16, 16

    key = jax.random.PRNGKey(0)
    kx, kp = jax.random.split(key)
    x = jax.random.normal(kx, (N, in_channels, D, H, W), jnp.float32)   # NCDHW
    params = init_params(kp, in_channels, base_channels)

    out3, out2, out1 = jax.jit(encoder3d_forward)(x, params)
    jax.block_until_ready((out3, out2, out1))

    # Reference forward chain (plain XLA conv at matched bf16 input precision).
    r1 = ref_conv3d_relu(x, params[0], params[1], (1, 1, 1))
    r2 = ref_conv3d_relu(r1, params[2], params[3], (1, 2, 2))
    r3 = ref_conv3d_relu(r2, params[4], params[5], (1, 2, 2))

    assert out1.shape == (N, base_channels, D, H, W)
    assert out2.shape == (N, base_channels * 2, D, H // 2, W // 2)
    assert out3.shape == (N, base_channels * 4, D, H // 4, W // 4)
    for got, want in ((out1, r1), (out2, r2), (out3, r3)):
        np.testing.assert_allclose(np.asarray(got), np.asarray(want),
                                   rtol=1e-2, atol=1e-2)
    print("KERNEL_OK")
</pallas_src>

<mosaic_0001>
module attributes {stable_mosaic.version = 11 : i64} {
  func.func @_conv3d_kernel(%arg0: i32, %arg1: memref<1x6x18x54xbf16, #tpu.memory_space<vmem>>, %arg2: memref<9x54x256xbf16, #tpu.memory_space<vmem>>, %arg3: memref<1x256xf32, #tpu.memory_space<vmem>>, %arg4: memref<1x64x256xf32, #tpu.memory_space<vmem>>) attributes {dimension_semantics = [#tpu.dimension_semantics<parallel>], iteration_bounds = array<i64: 2>, scalar_prefetch = 0 : i64, scratch_operands = 0 : i64, tpu.core_type = #tpu.core_type<tc>, window_params = [{transform_indices = @transform_0, window_bounds = array<i64: 1, 6, 18, 54>}, {pipeline_mode = #tpu.pipeline_mode<synchronous>, transform_indices = @transform_1, window_bounds = array<i64: 9, 54, 256>}, {pipeline_mode = #tpu.pipeline_mode<synchronous>, transform_indices = @transform_2, window_bounds = array<i64: 1, 256>}, {transform_indices = @transform_3, window_bounds = array<i64: 1, 64, 256>}]} {
    %cst = arith.constant 0.000000e+00 : f32
    %0 = vector.broadcast %cst : f32 to vector<64x256xf32>
    %c0 = arith.constant 0 : index
    %c0_0 = arith.constant 0 : index
    %c0_1 = arith.constant 0 : index
    %c0_2 = arith.constant 0 : index
    %1 = vector.load %arg1[%c0, %c0_0, %c0_1, %c0_2] : memref<1x6x18x54xbf16, #tpu.memory_space<vmem>>, vector<1x4x16x54xbf16>
    %2 = vector.shape_cast %1 : vector<1x4x16x54xbf16> to vector<4x16x54xbf16>
    %3 = vector.shape_cast %2 : vector<4x16x54xbf16> to vector<64x54xbf16>
    %c0_3 = arith.constant 0 : index
    %c0_4 = arith.constant 0 : index
    %c0_5 = arith.constant 0 : index
    %4 = vector.load %arg2[%c0_3, %c0_4, %c0_5] : memref<9x54x256xbf16, #tpu.memory_space<vmem>>, vector<1x54x256xbf16>
    %5 = vector.shape_cast %4 : vector<1x54x256xbf16> to vector<54x256xbf16>
    %cst_6 = arith.constant dense<0.000000e+00> : vector<64x256xf32>
    %6 = tpu.matmul %3, %5, %cst_6 {dimension_numbers = #tpu.dot_dimension_numbers<[1], [0], [0], [1], [0, 0, 1, 1], [], []>} : vector<64x54xbf16>, vector<54x256xbf16>, vector<64x256xf32> -> vector<64x256xf32>
    %7 = arith.addf %0, %6 : vector<64x256xf32>
    %c0_7 = arith.constant 0 : index
    %c0_8 = arith.constant 0 : index
    %c1 = arith.constant 1 : index
    %c0_9 = arith.constant 0 : index
    %8 = vector.load %arg1[%c0_7, %c0_8, %c1, %c0_9] : memref<1x6x18x54xbf16, #tpu.memory_space<vmem>>, vector<1x4x16x54xbf16>
    %9 = vector.shape_cast %8 : vector<1x4x16x54xbf16> to vector<4x16x54xbf16>
    %10 = vector.shape_cast %9 : vector<4x16x54xbf16> to vector<64x54xbf16>
    %c1_10 = arith.constant 1 : index
    %c0_11 = arith.constant 0 : index
    %c0_12 = arith.constant 0 : index
    %11 = vector.load %arg2[%c1_10, %c0_11, %c0_12] : memref<9x54x256xbf16, #tpu.memory_space<vmem>>, vector<1x54x256xbf16>
    %12 = vector.shape_cast %11 : vector<1x54x256xbf16> to vector<54x256xbf16>
    %cst_13 = arith.constant dense<0.000000e+00> : vector<64x256xf32>
    %13 = tpu.matmul %10, %12, %cst_13 {dimension_numbers = #tpu.dot_dimension_numbers<[1], [0], [0], [1], [0, 0, 1, 1], [], []>} : vector<64x54xbf16>, vector<54x256xbf16>, vector<64x256xf32> -> vector<64x256xf32>
    %14 = arith.addf %7, %13 : vector<64x256xf32>
    %c0_14 = arith.constant 0 : index
    %c0_15 = arith.constant 0 : index
    %c2 = arith.constant 2 : index
    %c0_16 = arith.constant 0 : index
    %15 = vector.load %arg1[%c0_14, %c0_15, %c2, %c0_16] : memref<1x6x18x54xbf16, #tpu.memory_space<vmem>>, vector<1x4x16x54xbf16>
    %16 = vector.shape_cast %15 : vector<1x4x16x54xbf16> to vector<4x16x54xbf16>
    %17 = vector.shape_cast %16 : vector<4x16x54xbf16> to vector<64x54xbf16>
    %c2_17 = arith.constant 2 : index
    %c0_18 = arith.constant 0 : index
    %c0_19 = arith.constant 0 : index
    %18 = vector.load %arg2[%c2_17, %c0_18, %c0_19] : memref<9x54x256xbf16, #tpu.memory_space<vmem>>, vector<1x54x256xbf16>
    %19 = vector.shape_cast %18 : vector<1x54x256xbf16> to vector<54x256xbf16>
    %cst_20 = arith.constant dense<0.000000e+00> : vector<64x256xf32>
    %20 = tpu.matmul %17, %19, %cst_20 {dimension_numbers = #tpu.dot_dimension_numbers<[1], [0], [0], [1], [0, 0, 1, 1], [], []>} : vector<64x54xbf16>, vector<54x256xbf16>, vector<64x256xf32> -> vector<64x256xf32>
    %21 = arith.addf %14, %20 : vector<64x256xf32>
    %c0_21 = arith.constant 0 : index
    %c1_22 = arith.constant 1 : index
    %c0_23 = arith.constant 0 : index
    %c0_24 = arith.constant 0 : index
    %22 = vector.load %arg1[%c0_21, %c1_22, %c0_23, %c0_24] : memref<1x6x18x54xbf16, #tpu.memory_space<vmem>>, vector<1x4x16x54xbf16>
    %23 = vector.shape_cast %22 : vector<1x4x16x54xbf16> to vector<4x16x54xbf16>
    %24 = vector.shape_cast %23 : vector<4x16x54xbf16> to vector<64x54xbf16>
    %c3 = arith.constant 3 : index
    %c0_25 = arith.constant 0 : index
    %c0_26 = arith.constant 0 : index
    %25 = vector.load %arg2[%c3, %c0_25, %c0_26] : memref<9x54x256xbf16, #tpu.memory_space<vmem>>, vector<1x54x256xbf16>
    %26 = vector.shape_cast %25 : vector<1x54x256xbf16> to vector<54x256xbf16>
    %cst_27 = arith.constant dense<0.000000e+00> : vector<64x256xf32>
    %27 = tpu.matmul %24, %26, %cst_27 {dimension_numbers = #tpu.dot_dimension_numbers<[1], [0], [0], [1], [0, 0, 1, 1], [], []>} : vector<64x54xbf16>, vector<54x256xbf16>, vector<64x256xf32> -> vector<64x256xf32>
    %28 = arith.addf %21, %27 : vector<64x256xf32>
    %c0_28 = arith.constant 0 : index
    %c1_29 = arith.constant 1 : index
    %c1_30 = arith.constant 1 : index
    %c0_31 = arith.constant 0 : index
    %29 = vector.load %arg1[%c0_28, %c1_29, %c1_30, %c0_31] : memref<1x6x18x54xbf16, #tpu.memory_space<vmem>>, vector<1x4x16x54xbf16>
    %30 = vector.shape_cast %29 : vector<1x4x16x54xbf16> to vector<4x16x54xbf16>
    %31 = vector.shape_cast %30 : vector<4x16x54xbf16> to vector<64x54xbf16>
    %c4 = arith.constant 4 : index
    %c0_32 = arith.constant 0 : index
    %c0_33 = arith.constant 0 : index
    %32 = vector.load %arg2[%c4, %c0_32, %c0_33] : memref<9x54x256xbf16, #tpu.memory_space<vmem>>, vector<1x54x256xbf16>
    %33 = vector.shape_cast %32 : vector<1x54x256xbf16> to vector<54x256xbf16>
    %cst_34 = arith.constant dense<0.000000e+00> : vector<64x256xf32>
    %34 = tpu.matmul %31, %33, %cst_34 {dimension_numbers = #tpu.dot_dimension_numbers<[1], [0], [0], [1], [0, 0, 1, 1], [], []>} : vector<64x54xbf16>, vector<54x256xbf16>, vector<64x256xf32> -> vector<64x256xf32>
    %35 = arith.addf %28, %34 : vector<64x256xf32>
    %c0_35 = arith.constant 0 : index
    %c1_36 = arith.constant 1 : index
    %c2_37 = arith.constant 2 : index
    %c0_38 = arith.constant 0 : index
    %36 = vector.load %arg1[%c0_35, %c1_36, %c2_37, %c0_38] : memref<1x6x18x54xbf16, #tpu.memory_space<vmem>>, vector<1x4x16x54xbf16>
    %37 = vector.shape_cast %36 : vector<1x4x16x54xbf16> to vector<4x16x54xbf16>
    %38 = vector.shape_cast %37 : vector<4x16x54xbf16> to vector<64x54xbf16>
    %c5 = arith.constant 5 : index
    %c0_39 = arith.constant 0 : index
    %c0_40 = arith.constant 0 : index
    %39 = vector.load %arg2[%c5, %c0_39, %c0_40] : memref<9x54x256xbf16, #tpu.memory_space<vmem>>, vector<1x54x256xbf16>
    %40 = vector.shape_cast %39 : vector<1x54x256xbf16> to vector<54x256xbf16>
    %cst_41 = arith.constant dense<0.000000e+00> : vector<64x256xf32>
    %41 = tpu.matmul %38, %40, %cst_41 {dimension_numbers = #tpu.dot_dimension_numbers<[1], [0], [0], [1], [0, 0, 1, 1], [], []>} : vector<64x54xbf16>, vector<54x256xbf16>, vector<64x256xf32> -> vector<64x256xf32>
    %42 = arith.addf %35, %41 : vector<64x256xf32>
    %c0_42 = arith.constant 0 : index
    %c2_43 = arith.constant 2 : index
    %c0_44 = arith.constant 0 : index
    %c0_45 = arith.constant 0 : index
    %43 = vector.load %arg1[%c0_42, %c2_43, %c0_44, %c0_45] : memref<1x6x18x54xbf16, #tpu.memory_space<vmem>>, vector<1x4x16x54xbf16>
    %44 = vector.shape_cast %43 : vector<1x4x16x54xbf16> to vector<4x16x54xbf16>
    %45 = vector.shape_cast %44 : vector<4x16x54xbf16> to vector<64x54xbf16>
    %c6 = arith.constant 6 : index
    %c0_46 = arith.constant 0 : index
    %c0_47 = arith.constant 0 : index
    %46 = vector.load %arg2[%c6, %c0_46, %c0_47] : memref<9x54x256xbf16, #tpu.memory_space<vmem>>, vector<1x54x256xbf16>
    %47 = vector.shape_cast %46 : vector<1x54x256xbf16> to vector<54x256xbf16>
    %cst_48 = arith.constant dense<0.000000e+00> : vector<64x256xf32>
    %48 = tpu.matmul %45, %47, %cst_48 {dimension_numbers = #tpu.dot_dimension_numbers<[1], [0], [0], [1], [0, 0, 1, 1], [], []>} : vector<64x54xbf16>, vector<54x256xbf16>, vector<64x256xf32> -> vector<64x256xf32>
    %49 = arith.addf %42, %48 : vector<64x256xf32>
    %c0_49 = arith.constant 0 : index
    %c2_50 = arith.constant 2 : index
    %c1_51 = arith.constant 1 : index
    %c0_52 = arith.constant 0 : index
    %50 = vector.load %arg1[%c0_49, %c2_50, %c1_51, %c0_52] : memref<1x6x18x54xbf16, #tpu.memory_space<vmem>>, vector<1x4x16x54xbf16>
    %51 = vector.shape_cast %50 : vector<1x4x16x54xbf16> to vector<4x16x54xbf16>
    %52 = vector.shape_cast %51 : vector<4x16x54xbf16> to vector<64x54xbf16>
    %c7 = arith.constant 7 : index
    %c0_53 = arith.constant 0 : index
    %c0_54 = arith.constant 0 : index
    %53 = vector.load %arg2[%c7, %c0_53, %c0_54] : memref<9x54x256xbf16, #tpu.memory_space<vmem>>, vector<1x54x256xbf16>
    %54 = vector.shape_cast %53 : vector<1x54x256xbf16> to vector<54x256xbf16>
    %cst_55 = arith.constant dense<0.000000e+00> : vector<64x256xf32>
    %55 = tpu.matmul %52, %54, %cst_55 {dimension_numbers = #tpu.dot_dimension_numbers<[1], [0], [0], [1], [0, 0, 1, 1], [], []>} : vector<64x54xbf16>, vector<54x256xbf16>, vector<64x256xf32> -> vector<64x256xf32>
    %56 = arith.addf %49, %55 : vector<64x256xf32>
    %c0_56 = arith.constant 0 : index
    %c2_57 = arith.constant 2 : index
    %c2_58 = arith.constant 2 : index
    %c0_59 = arith.constant 0 : index
    %57 = vector.load %arg1[%c0_56, %c2_57, %c2_58, %c0_59] : memref<1x6x18x54xbf16, #tpu.memory_space<vmem>>, vector<1x4x16x54xbf16>
    %58 = vector.shape_cast %57 : vector<1x4x16x54xbf16> to vector<4x16x54xbf16>
    %59 = vector.shape_cast %58 : vector<4x16x54xbf16> to vector<64x54xbf16>
    %c8 = arith.constant 8 : index
    %c0_60 = arith.constant 0 : index
    %c0_61 = arith.constant 0 : index
    %60 = vector.load %arg2[%c8, %c0_60, %c0_61] : memref<9x54x256xbf16, #tpu.memory_space<vmem>>, vector<1x54x256xbf16>
    %61 = vector.shape_cast %60 : vector<1x54x256xbf16> to vector<54x256xbf16>
    %cst_62 = arith.constant dense<0.000000e+00> : vector<64x256xf32>
    %62 = tpu.matmul %59, %61, %cst_62 {dimension_numbers = #tpu.dot_dimension_numbers<[1], [0], [0], [1], [0, 0, 1, 1], [], []>} : vector<64x54xbf16>, vector<54x256xbf16>, vector<64x256xf32> -> vector<64x256xf32>
    %63 = arith.addf %56, %62 : vector<64x256xf32>
    %c0_63 = arith.constant 0 : index
    %c0_64 = arith.constant 0 : index
    %64 = vector.load %arg3[%c0_63, %c0_64] : memref<1x256xf32, #tpu.memory_space<vmem>>, vector<1x256xf32>
    %65 = vector.broadcast %64 : vector<1x256xf32> to vector<64x256xf32>
    %66 = arith.addf %63, %65 : vector<64x256xf32>
    %cst_65 = arith.constant 0.000000e+00 : f32
    %67 = vector.broadcast %cst_65 : f32 to vector<64x256xf32>
    %68 = arith.maximumf %66, %67 : vector<64x256xf32>
    %c0_66 = arith.constant 0 : index
    %c0_67 = arith.constant 0 : index
    %c0_68 = arith.constant 0 : index
    %69 = vector.load %arg4[%c0_66, %c0_67, %c0_68] : memref<1x64x256xf32, #tpu.memory_space<vmem>>, vector<1x64x256xf32>
    %70 = vector.shape_cast %69 : vector<1x64x256xf32> to vector<64x256xf32>
    %71 = vector.shape_cast %68 : vector<64x256xf32> to vector<1x64x256xf32>
    tpu.vector_store %arg4[%c0_66, %c0_67, %c0_68], %71 {strides = array<i32>} : memref<1x64x256xf32, #tpu.memory_space<vmem>>, vector<1x64x256xf32>,
    return
  }
  func.func @transform_0(%arg0: i32) -> (i32, i32, i32, i32) {
    %c0_i32 = arith.constant 0 : i32
    %c0_i32_0 = arith.constant 0 : i32
    %c0_i32_1 = arith.constant 0 : i32
    %c0_i32_2 = arith.constant 0 : i32
    return %arg0, %c0_i32, %c0_i32_0, %c0_i32_1 : i32, i32, i32, i32
  }
  func.func @transform_1(%arg0: i32) -> (i32, i32, i32) {
    %c0_i32 = arith.constant 0 : i32
    %c0_i32_0 = arith.constant 0 : i32
    %c0_i32_1 = arith.constant 0 : i32
    %c0_i32_2 = arith.constant 0 : i32
    return %c0_i32, %c0_i32_0, %c0_i32_1 : i32, i32, i32
  }
  func.func @transform_2(%arg0: i32) -> (i32, i32) {
    %c0_i32 = arith.constant 0 : i32
    %c0_i32_0 = arith.constant 0 : i32
    %c0_i32_1 = arith.constant 0 : i32
    return %c0_i32, %c0_i32_0 : i32, i32
  }
  func.func @transform_3(%arg0: i32) -> (i32, i32, i32) {
    %c0_i32 = arith.constant 0 : i32
    %c0_i32_0 = arith.constant 0 : i32
    %c0_i32_1 = arith.constant 0 : i32
    return %arg0, %c0_i32, %c0_i32_0 : i32, i32, i32
  }
}

module attributes {stable_mosaic.version = 11 : i64} {
  func.func @_conv3d_kernel(%arg0: i32, %arg1: memref<1x6x2x9x288xbf16, #tpu.memory_space<vmem>>, %arg2: memref<9x288x256xbf16, #tpu.memory_space<vmem>>, %arg3: memref<1x256xf32, #tpu.memory_space<vmem>>, %arg4: memref<1x32x256xf32, #tpu.memory_space<vmem>>) attributes {dimension_semantics = [#tpu.dimension_semantics<parallel>], iteration_bounds = array<i64: 2>, scalar_prefetch = 0 : i64, scratch_operands = 0 : i64, tpu.core_type = #tpu.core_type<tc>, window_params = [{transform_indices = @transform_0, window_bounds = array<i64: 1, 6, 2, 9, 288>}, {pipeline_mode = #tpu.pipeline_mode<synchronous>, transform_indices = @transform_1, window_bounds = array<i64: 9, 288, 256>}, {pipeline_mode = #tpu.pipeline_mode<synchronous>, transform_indices = @transform_2, window_bounds = array<i64: 1, 256>}, {transform_indices = @transform_3, window_bounds = array<i64: 1, 32, 256>}]} {
    %cst = arith.constant 0.000000e+00 : f32
    %0 = vector.broadcast %cst : f32 to vector<32x256xf32>
    %c0 = arith.constant 0 : index
    %c0_0 = arith.constant 0 : index
    %c0_1 = arith.constant 0 : index
    %c0_2 = arith.constant 0 : index
    %c0_3 = arith.constant 0 : index
    %1 = vector.load %arg1[%c0, %c0_0, %c0_1, %c0_2, %c0_3] : memref<1x6x2x9x288xbf16, #tpu.memory_space<vmem>>, vector<1x4x1x8x288xbf16>
    %2 = vector.shape_cast %1 : vector<1x4x1x8x288xbf16> to vector<4x8x288xbf16>
    %3 = vector.shape_cast %2 : vector<4x8x288xbf16> to vector<32x288xbf16>
    %c0_4 = arith.constant 0 : index
    %c0_5 = arith.constant 0 : index
    %c0_6 = arith.constant 0 : index
    %4 = vector.load %arg2[%c0_4, %c0_5, %c0_6] : memref<9x288x256xbf16, #tpu.memory_space<vmem>>, vector<1x288x256xbf16>
    %5 = vector.shape_cast %4 : vector<1x288x256xbf16> to vector<288x256xbf16>
    %cst_7 = arith.constant dense<0.000000e+00> : vector<32x256xf32>
    %6 = tpu.matmul %3, %5, %cst_7 {dimension_numbers = #tpu.dot_dimension_numbers<[1], [0], [0], [1], [0, 0, 1, 1], [], []>} : vector<32x288xbf16>, vector<288x256xbf16>, vector<32x256xf32> -> vector<32x256xf32>
    %7 = arith.addf %0, %6 : vector<32x256xf32>
    %c0_8 = arith.constant 0 : index
    %c0_9 = arith.constant 0 : index
    %c1 = arith.constant 1 : index
    %c0_10 = arith.constant 0 : index
    %c0_11 = arith.constant 0 : index
    %8 = vector.load %arg1[%c0_8, %c0_9, %c1, %c0_10, %c0_11] : memref<1x6x2x9x288xbf16, #tpu.memory_space<vmem>>, vector<1x4x1x8x288xbf16>
    %9 = vector.shape_cast %8 : vector<1x4x1x8x288xbf16> to vector<4x8x288xbf16>
    %10 = vector.shape_cast %9 : vector<4x8x288xbf16> to vector<32x288xbf16>
    %c1_12 = arith.constant 1 : index
    %c0_13 = arith.constant 0 : index
    %c0_14 = arith.constant 0 : index
    %11 = vector.load %arg2[%c1_12, %c0_13, %c0_14] : memref<9x288x256xbf16, #tpu.memory_space<vmem>>, vector<1x288x256xbf16>
    %12 = vector.shape_cast %11 : vector<1x288x256xbf16> to vector<288x256xbf16>
    %cst_15 = arith.constant dense<0.000000e+00> : vector<32x256xf32>
    %13 = tpu.matmul %10, %12, %cst_15 {dimension_numbers = #tpu.dot_dimension_numbers<[1], [0], [0], [1], [0, 0, 1, 1], [], []>} : vector<32x288xbf16>, vector<288x256xbf16>, vector<32x256xf32> -> vector<32x256xf32>
    %14 = arith.addf %7, %13 : vector<32x256xf32>
    %c0_16 = arith.constant 0 : index
    %c0_17 = arith.constant 0 : index
    %c0_18 = arith.constant 0 : index
    %c1_19 = arith.constant 1 : index
    %c0_20 = arith.constant 0 : index
    %15 = vector.load %arg1[%c0_16, %c0_17, %c0_18, %c1_19, %c0_20] : memref<1x6x2x9x288xbf16, #tpu.memory_space<vmem>>, vector<1x4x1x8x288xbf16>
    %16 = vector.shape_cast %15 : vector<1x4x1x8x288xbf16> to vector<4x8x288xbf16>
    %17 = vector.shape_cast %16 : vector<4x8x288xbf16> to vector<32x288xbf16>
    %c2 = arith.constant 2 : index
    %c0_21 = arith.constant 0 : index
    %c0_22 = arith.constant 0 : index
    %18 = vector.load %arg2[%c2, %c0_21, %c0_22] : memref<9x288x256xbf16, #tpu.memory_space<vmem>>, vector<1x288x256xbf16>
    %19 = vector.shape_cast %18 : vector<1x288x256xbf16> to vector<288x256xbf16>
    %cst_23 = arith.constant dense<0.000000e+00> : vector<32x256xf32>
    %20 = tpu.matmul %17, %19, %cst_23 {dimension_numbers = #tpu.dot_dimension_numbers<[1], [0], [0], [1], [0, 0, 1, 1], [], []>} : vector<32x288xbf16>, vector<288x256xbf16>, vector<32x256xf32> -> vector<32x256xf32>
    %21 = arith.addf %14, %20 : vector<32x256xf32>
    %c0_24 = arith.constant 0 : index
    %c1_25 = arith.constant 1 : index
    %c0_26 = arith.constant 0 : index
    %c0_27 = arith.constant 0 : index
    %c0_28 = arith.constant 0 : index
    %22 = vector.load %arg1[%c0_24, %c1_25, %c0_26, %c0_27, %c0_28] : memref<1x6x2x9x288xbf16, #tpu.memory_space<vmem>>, vector<1x4x1x8x288xbf16>
    %23 = vector.shape_cast %22 : vector<1x4x1x8x288xbf16> to vector<4x8x288xbf16>
    %24 = vector.shape_cast %23 : vector<4x8x288xbf16> to vector<32x288xbf16>
    %c3 = arith.constant 3 : index
    %c0_29 = arith.constant 0 : index
    %c0_30 = arith.constant 0 : index
    %25 = vector.load %arg2[%c3, %c0_29, %c0_30] : memref<9x288x256xbf16, #tpu.memory_space<vmem>>, vector<1x288x256xbf16>
    %26 = vector.shape_cast %25 : vector<1x288x256xbf16> to vector<288x256xbf16>
    %cst_31 = arith.constant dense<0.000000e+00> : vector<32x256xf32>
    %27 = tpu.matmul %24, %26, %cst_31 {dimension_numbers = #tpu.dot_dimension_numbers<[1], [0], [0], [1], [0, 0, 1, 1], [], []>} : vector<32x288xbf16>, vector<288x256xbf16>, vector<32x256xf32> -> vector<32x256xf32>
    %28 = arith.addf %21, %27 : vector<32x256xf32>
    %c0_32 = arith.constant 0 : index
    %c1_33 = arith.constant 1 : index
    %c1_34 = arith.constant 1 : index
    %c0_35 = arith.constant 0 : index
    %c0_36 = arith.constant 0 : index
    %29 = vector.load %arg1[%c0_32, %c1_33, %c1_34, %c0_35, %c0_36] : memref<1x6x2x9x288xbf16, #tpu.memory_space<vmem>>, vector<1x4x1x8x288xbf16>
    %30 = vector.shape_cast %29 : vector<1x4x1x8x288xbf16> to vector<4x8x288xbf16>
    %31 = vector.shape_cast %30 : vector<4x8x288xbf16> to vector<32x288xbf16>
    %c4 = arith.constant 4 : index
    %c0_37 = arith.constant 0 : index
    %c0_38 = arith.constant 0 : index
    %32 = vector.load %arg2[%c4, %c0_37, %c0_38] : memref<9x288x256xbf16, #tpu.memory_space<vmem>>, vector<1x288x256xbf16>
    %33 = vector.shape_cast %32 : vector<1x288x256xbf16> to vector<288x256xbf16>
    %cst_39 = arith.constant dense<0.000000e+00> : vector<32x256xf32>
    %34 = tpu.matmul %31, %33, %cst_39 {dimension_numbers = #tpu.dot_dimension_numbers<[1], [0], [0], [1], [0, 0, 1, 1], [], []>} : vector<32x288xbf16>, vector<288x256xbf16>, vector<32x256xf32> -> vector<32x256xf32>
    %35 = arith.addf %28, %34 : vector<32x256xf32>
    %c0_40 = arith.constant 0 : index
    %c1_41 = arith.constant 1 : index
    %c0_42 = arith.constant 0 : index
    %c1_43 = arith.constant 1 : index
    %c0_44 = arith.constant 0 : index
    %36 = vector.load %arg1[%c0_40, %c1_41, %c0_42, %c1_43, %c0_44] : memref<1x6x2x9x288xbf16, #tpu.memory_space<vmem>>, vector<1x4x1x8x288xbf16>
    %37 = vector.shape_cast %36 : vector<1x4x1x8x288xbf16> to vector<4x8x288xbf16>
    %38 = vector.shape_cast %37 : vector<4x8x288xbf16> to vector<32x288xbf16>
    %c5 = arith.constant 5 : index
    %c0_45 = arith.constant 0 : index
    %c0_46 = arith.constant 0 : index
    %39 = vector.load %arg2[%c5, %c0_45, %c0_46] : memref<9x288x256xbf16, #tpu.memory_space<vmem>>, vector<1x288x256xbf16>
    %40 = vector.shape_cast %39 : vector<1x288x256xbf16> to vector<288x256xbf16>
    %cst_47 = arith.constant dense<0.000000e+00> : vector<32x256xf32>
    %41 = tpu.matmul %38, %40, %cst_47 {dimension_numbers = #tpu.dot_dimension_numbers<[1], [0], [0], [1], [0, 0, 1, 1], [], []>} : vector<32x288xbf16>, vector<288x256xbf16>, vector<32x256xf32> -> vector<32x256xf32>
    %42 = arith.addf %35, %41 : vector<32x256xf32>
    %c0_48 = arith.constant 0 : index
    %c2_49 = arith.constant 2 : index
    %c0_50 = arith.constant 0 : index
    %c0_51 = arith.constant 0 : index
    %c0_52 = arith.constant 0 : index
    %43 = vector.load %arg1[%c0_48, %c2_49, %c0_50, %c0_51, %c0_52] : memref<1x6x2x9x288xbf16, #tpu.memory_space<vmem>>, vector<1x4x1x8x288xbf16>
    %44 = vector.shape_cast %43 : vector<1x4x1x8x288xbf16> to vector<4x8x288xbf16>
    %45 = vector.shape_cast %44 : vector<4x8x288xbf16> to vector<32x288xbf16>
    %c6 = arith.constant 6 : index
    %c0_53 = arith.constant 0 : index
    %c0_54 = arith.constant 0 : index
    %46 = vector.load %arg2[%c6, %c0_53, %c0_54] : memref<9x288x256xbf16, #tpu.memory_space<vmem>>, vector<1x288x256xbf16>
    %47 = vector.shape_cast %46 : vector<1x288x256xbf16> to vector<288x256xbf16>
    %cst_55 = arith.constant dense<0.000000e+00> : vector<32x256xf32>
    %48 = tpu.matmul %45, %47, %cst_55 {dimension_numbers = #tpu.dot_dimension_numbers<[1], [0], [0], [1], [0, 0, 1, 1], [], []>} : vector<32x288xbf16>, vector<288x256xbf16>, vector<32x256xf32> -> vector<32x256xf32>
    %49 = arith.addf %42, %48 : vector<32x256xf32>
    %c0_56 = arith.constant 0 : index
    %c2_57 = arith.constant 2 : index
    %c1_58 = arith.constant 1 : index
    %c0_59 = arith.constant 0 : index
    %c0_60 = arith.constant 0 : index
    %50 = vector.load %arg1[%c0_56, %c2_57, %c1_58, %c0_59, %c0_60] : memref<1x6x2x9x288xbf16, #tpu.memory_space<vmem>>, vector<1x4x1x8x288xbf16>
    %51 = vector.shape_cast %50 : vector<1x4x1x8x288xbf16> to vector<4x8x288xbf16>
    %52 = vector.shape_cast %51 : vector<4x8x288xbf16> to vector<32x288xbf16>
    %c7 = arith.constant 7 : index
    %c0_61 = arith.constant 0 : index
    %c0_62 = arith.constant 0 : index
    %53 = vector.load %arg2[%c7, %c0_61, %c0_62] : memref<9x288x256xbf16, #tpu.memory_space<vmem>>, vector<1x288x256xbf16>
    %54 = vector.shape_cast %53 : vector<1x288x256xbf16> to vector<288x256xbf16>
    %cst_63 = arith.constant dense<0.000000e+00> : vector<32x256xf32>
    %55 = tpu.matmul %52, %54, %cst_63 {dimension_numbers = #tpu.dot_dimension_numbers<[1], [0], [0], [1], [0, 0, 1, 1], [], []>} : vector<32x288xbf16>, vector<288x256xbf16>, vector<32x256xf32> -> vector<32x256xf32>
    %56 = arith.addf %49, %55 : vector<32x256xf32>
    %c0_64 = arith.constant 0 : index
    %c2_65 = arith.constant 2 : index
    %c0_66 = arith.constant 0 : index
    %c1_67 = arith.constant 1 : index
    %c0_68 = arith.constant 0 : index
    %57 = vector.load %arg1[%c0_64, %c2_65, %c0_66, %c1_67, %c0_68] : memref<1x6x2x9x288xbf16, #tpu.memory_space<vmem>>, vector<1x4x1x8x288xbf16>
    %58 = vector.shape_cast %57 : vector<1x4x1x8x288xbf16> to vector<4x8x288xbf16>
    %59 = vector.shape_cast %58 : vector<4x8x288xbf16> to vector<32x288xbf16>
    %c8 = arith.constant 8 : index
    %c0_69 = arith.constant 0 : index
    %c0_70 = arith.constant 0 : index
    %60 = vector.load %arg2[%c8, %c0_69, %c0_70] : memref<9x288x256xbf16, #tpu.memory_space<vmem>>, vector<1x288x256xbf16>
    %61 = vector.shape_cast %60 : vector<1x288x256xbf16> to vector<288x256xbf16>
    %cst_71 = arith.constant dense<0.000000e+00> : vector<32x256xf32>
    %62 = tpu.matmul %59, %61, %cst_71 {dimension_numbers = #tpu.dot_dimension_numbers<[1], [0], [0], [1], [0, 0, 1, 1], [], []>} : vector<32x288xbf16>, vector<288x256xbf16>, vector<32x256xf32> -> vector<32x256xf32>
    %63 = arith.addf %56, %62 : vector<32x256xf32>
    %c0_72 = arith.constant 0 : index
    %c0_73 = arith.constant 0 : index
    %64 = vector.load %arg3[%c0_72, %c0_73] : memref<1x256xf32, #tpu.memory_space<vmem>>, vector<1x256xf32>
    %65 = vector.broadcast %64 : vector<1x256xf32> to vector<32x256xf32>
    %66 = arith.addf %63, %65 : vector<32x256xf32>
    %cst_74 = arith.constant 0.000000e+00 : f32
    %67 = vector.broadcast %cst_74 : f32 to vector<32x256xf32>
    %68 = arith.maximumf %66, %67 : vector<32x256xf32>
    %c0_75 = arith.constant 0 : index
    %c0_76 = arith.constant 0 : index
    %c0_77 = arith.constant 0 : index
    %69 = vector.load %arg4[%c0_75, %c0_76, %c0_77] : memref<1x32x256xf32, #tpu.memory_space<vmem>>, vector<1x32x256xf32>
    %70 = vector.shape_cast %69 : vector<1x32x256xf32> to vector<32x256xf32>
    %71 = vector.shape_cast %68 : vector<32x256xf32> to vector<1x32x256xf32>
    tpu.vector_store %arg4[%c0_75, %c0_76, %c0_77], %71 {strides = array<i32>} : memref<1x32x256xf32, #tpu.memory_space<vmem>>, vector<1x32x256xf32>,
    return
  }
  func.func @transform_0(%arg0: i32) -> (i32, i32, i32, i32, i32) {
    %c0_i32 = arith.constant 0 : i32
    %c0_i32_0 = arith.constant 0 : i32
    %c0_i32_1 = arith.constant 0 : i32
    %c0_i32_2 = arith.constant 0 : i32
    %c0_i32_3 = arith.constant 0 : i32
    return %arg0, %c0_i32, %c0_i32_0, %c0_i32_1, %c0_i32_2 : i32, i32, i32, i32, i32
  }
  func.func @transform_1(%arg0: i32) -> (i32, i32, i32) {
    %c0_i32 = arith.constant 0 : i32
    %c0_i32_0 = arith.constant 0 : i32
    %c0_i32_1 = arith.constant 0 : i32
    %c0_i32_2 = arith.constant 0 : i32
    return %c0_i32, %c0_i32_0, %c0_i32_1 : i32, i32, i32
  }
  func.func @transform_2(%arg0: i32) -> (i32, i32) {
    %c0_i32 = arith.constant 0 : i32
    %c0_i32_0 = arith.constant 0 : i32
    %c0_i32_1 = arith.constant 0 : i32
    return %c0_i32, %c0_i32_0 : i32, i32
  }
  func.func @transform_3(%arg0: i32) -> (i32, i32, i32) {
    %c0_i32 = arith.constant 0 : i32
    %c0_i32_0 = arith.constant 0 : i32
    %c0_i32_1 = arith.constant 0 : i32
    return %arg0, %c0_i32, %c0_i32_0 : i32, i32, i32
  }
}

module attributes {stable_mosaic.version = 11 : i64} {
  func.func @_conv3d_kernel(%arg0: i32, %arg1: memref<1x6x2x5x320xbf16, #tpu.memory_space<vmem>>, %arg2: memref<9x320x256xbf16, #tpu.memory_space<vmem>>, %arg3: memref<1x256xf32, #tpu.memory_space<vmem>>, %arg4: memref<1x16x256xf32, #tpu.memory_space<vmem>>) attributes {dimension_semantics = [#tpu.dimension_semantics<parallel>], iteration_bounds = array<i64: 2>, scalar_prefetch = 0 : i64, scratch_operands = 0 : i64, tpu.core_type = #tpu.core_type<tc>, window_params = [{transform_indices = @transform_0, window_bounds = array<i64: 1, 6, 2, 5, 320>}, {pipeline_mode = #tpu.pipeline_mode<synchronous>, transform_indices = @transform_1, window_bounds = array<i64: 9, 320, 256>}, {pipeline_mode = #tpu.pipeline_mode<synchronous>, transform_indices = @transform_2, window_bounds = array<i64: 1, 256>}, {transform_indices = @transform_3, window_bounds = array<i64: 1, 16, 256>}]} {
    %cst = arith.constant 0.000000e+00 : f32
    %0 = vector.broadcast %cst : f32 to vector<16x256xf32>
    %c0 = arith.constant 0 : index
    %c0_0 = arith.constant 0 : index
    %c0_1 = arith.constant 0 : index
    %c0_2 = arith.constant 0 : index
    %c0_3 = arith.constant 0 : index
    %1 = vector.load %arg1[%c0, %c0_0, %c0_1, %c0_2, %c0_3] : memref<1x6x2x5x320xbf16, #tpu.memory_space<vmem>>, vector<1x4x1x4x320xbf16>
    %2 = vector.shape_cast %1 : vector<1x4x1x4x320xbf16> to vector<4x4x320xbf16>
    %3 = vector.shape_cast %2 : vector<4x4x320xbf16> to vector<16x320xbf16>
    %c0_4 = arith.constant 0 : index
    %c0_5 = arith.constant 0 : index
    %c0_6 = arith.constant 0 : index
    %4 = vector.load %arg2[%c0_4, %c0_5, %c0_6] : memref<9x320x256xbf16, #tpu.memory_space<vmem>>, vector<1x320x256xbf16>
    %5 = vector.shape_cast %4 : vector<1x320x256xbf16> to vector<320x256xbf16>
    %cst_7 = arith.constant dense<0.000000e+00> : vector<16x256xf32>
    %6 = tpu.matmul %3, %5, %cst_7 {dimension_numbers = #tpu.dot_dimension_numbers<[1], [0], [0], [1], [0, 0, 1, 1], [], []>} : vector<16x320xbf16>, vector<320x256xbf16>, vector<16x256xf32> -> vector<16x256xf32>
    %7 = arith.addf %0, %6 : vector<16x256xf32>
    %c0_8 = arith.constant 0 : index
    %c0_9 = arith.constant 0 : index
    %c1 = arith.constant 1 : index
    %c0_10 = arith.constant 0 : index
    %c0_11 = arith.constant 0 : index
    %8 = vector.load %arg1[%c0_8, %c0_9, %c1, %c0_10, %c0_11] : memref<1x6x2x5x320xbf16, #tpu.memory_space<vmem>>, vector<1x4x1x4x320xbf16>
    %9 = vector.shape_cast %8 : vector<1x4x1x4x320xbf16> to vector<4x4x320xbf16>
    %10 = vector.shape_cast %9 : vector<4x4x320xbf16> to vector<16x320xbf16>
    %c1_12 = arith.constant 1 : index
    %c0_13 = arith.constant 0 : index
    %c0_14 = arith.constant 0 : index
    %11 = vector.load %arg2[%c1_12, %c0_13, %c0_14] : memref<9x320x256xbf16, #tpu.memory_space<vmem>>, vector<1x320x256xbf16>
    %12 = vector.shape_cast %11 : vector<1x320x256xbf16> to vector<320x256xbf16>
    %cst_15 = arith.constant dense<0.000000e+00> : vector<16x256xf32>
    %13 = tpu.matmul %10, %12, %cst_15 {dimension_numbers = #tpu.dot_dimension_numbers<[1], [0], [0], [1], [0, 0, 1, 1], [], []>} : vector<16x320xbf16>, vector<320x256xbf16>, vector<16x256xf32> -> vector<16x256xf32>
    %14 = arith.addf %7, %13 : vector<16x256xf32>
    %c0_16 = arith.constant 0 : index
    %c0_17 = arith.constant 0 : index
    %c0_18 = arith.constant 0 : index
    %c1_19 = arith.constant 1 : index
    %c0_20 = arith.constant 0 : index
    %15 = vector.load %arg1[%c0_16, %c0_17, %c0_18, %c1_19, %c0_20] : memref<1x6x2x5x320xbf16, #tpu.memory_space<vmem>>, vector<1x4x1x4x320xbf16>
    %16 = vector.shape_cast %15 : vector<1x4x1x4x320xbf16> to vector<4x4x320xbf16>
    %17 = vector.shape_cast %16 : vector<4x4x320xbf16> to vector<16x320xbf16>
    %c2 = arith.constant 2 : index
    %c0_21 = arith.constant 0 : index
    %c0_22 = arith.constant 0 : index
    %18 = vector.load %arg2[%c2, %c0_21, %c0_22] : memref<9x320x256xbf16, #tpu.memory_space<vmem>>, vector<1x320x256xbf16>
    %19 = vector.shape_cast %18 : vector<1x320x256xbf16> to vector<320x256xbf16>
    %cst_23 = arith.constant dense<0.000000e+00> : vector<16x256xf32>
    %20 = tpu.matmul %17, %19, %cst_23 {dimension_numbers = #tpu.dot_dimension_numbers<[1], [0], [0], [1], [0, 0, 1, 1], [], []>} : vector<16x320xbf16>, vector<320x256xbf16>, vector<16x256xf32> -> vector<16x256xf32>
    %21 = arith.addf %14, %20 : vector<16x256xf32>
    %c0_24 = arith.constant 0 : index
    %c1_25 = arith.constant 1 : index
    %c0_26 = arith.constant 0 : index
    %c0_27 = arith.constant 0 : index
    %c0_28 = arith.constant 0 : index
    %22 = vector.load %arg1[%c0_24, %c1_25, %c0_26, %c0_27, %c0_28] : memref<1x6x2x5x320xbf16, #tpu.memory_space<vmem>>, vector<1x4x1x4x320xbf16>
    %23 = vector.shape_cast %22 : vector<1x4x1x4x320xbf16> to vector<4x4x320xbf16>
    %24 = vector.shape_cast %23 : vector<4x4x320xbf16> to vector<16x320xbf16>
    %c3 = arith.constant 3 : index
    %c0_29 = arith.constant 0 : index
    %c0_30 = arith.constant 0 : index
    %25 = vector.load %arg2[%c3, %c0_29, %c0_30] : memref<9x320x256xbf16, #tpu.memory_space<vmem>>, vector<1x320x256xbf16>
    %26 = vector.shape_cast %25 : vector<1x320x256xbf16> to vector<320x256xbf16>
    %cst_31 = arith.constant dense<0.000000e+00> : vector<16x256xf32>
    %27 = tpu.matmul %24, %26, %cst_31 {dimension_numbers = #tpu.dot_dimension_numbers<[1], [0], [0], [1], [0, 0, 1, 1], [], []>} : vector<16x320xbf16>, vector<320x256xbf16>, vector<16x256xf32> -> vector<16x256xf32>
    %28 = arith.addf %21, %27 : vector<16x256xf32>
    %c0_32 = arith.constant 0 : index
    %c1_33 = arith.constant 1 : index
    %c1_34 = arith.constant 1 : index
    %c0_35 = arith.constant 0 : index
    %c0_36 = arith.constant 0 : index
    %29 = vector.load %arg1[%c0_32, %c1_33, %c1_34, %c0_35, %c0_36] : memref<1x6x2x5x320xbf16, #tpu.memory_space<vmem>>, vector<1x4x1x4x320xbf16>
    %30 = vector.shape_cast %29 : vector<1x4x1x4x320xbf16> to vector<4x4x320xbf16>
    %31 = vector.shape_cast %30 : vector<4x4x320xbf16> to vector<16x320xbf16>
    %c4 = arith.constant 4 : index
    %c0_37 = arith.constant 0 : index
    %c0_38 = arith.constant 0 : index
    %32 = vector.load %arg2[%c4, %c0_37, %c0_38] : memref<9x320x256xbf16, #tpu.memory_space<vmem>>, vector<1x320x256xbf16>
    %33 = vector.shape_cast %32 : vector<1x320x256xbf16> to vector<320x256xbf16>
    %cst_39 = arith.constant dense<0.000000e+00> : vector<16x256xf32>
    %34 = tpu.matmul %31, %33, %cst_39 {dimension_numbers = #tpu.dot_dimension_numbers<[1], [0], [0], [1], [0, 0, 1, 1], [], []>} : vector<16x320xbf16>, vector<320x256xbf16>, vector<16x256xf32> -> vector<16x256xf32>
    %35 = arith.addf %28, %34 : vector<16x256xf32>
    %c0_40 = arith.constant 0 : index
    %c1_41 = arith.constant 1 : index
    %c0_42 = arith.constant 0 : index
    %c1_43 = arith.constant 1 : index
    %c0_44 = arith.constant 0 : index
    %36 = vector.load %arg1[%c0_40, %c1_41, %c0_42, %c1_43, %c0_44] : memref<1x6x2x5x320xbf16, #tpu.memory_space<vmem>>, vector<1x4x1x4x320xbf16>
    %37 = vector.shape_cast %36 : vector<1x4x1x4x320xbf16> to vector<4x4x320xbf16>
    %38 = vector.shape_cast %37 : vector<4x4x320xbf16> to vector<16x320xbf16>
    %c5 = arith.constant 5 : index
    %c0_45 = arith.constant 0 : index
    %c0_46 = arith.constant 0 : index
    %39 = vector.load %arg2[%c5, %c0_45, %c0_46] : memref<9x320x256xbf16, #tpu.memory_space<vmem>>, vector<1x320x256xbf16>
    %40 = vector.shape_cast %39 : vector<1x320x256xbf16> to vector<320x256xbf16>
    %cst_47 = arith.constant dense<0.000000e+00> : vector<16x256xf32>
    %41 = tpu.matmul %38, %40, %cst_47 {dimension_numbers = #tpu.dot_dimension_numbers<[1], [0], [0], [1], [0, 0, 1, 1], [], []>} : vector<16x320xbf16>, vector<320x256xbf16>, vector<16x256xf32> -> vector<16x256xf32>
    %42 = arith.addf %35, %41 : vector<16x256xf32>
    %c0_48 = arith.constant 0 : index
    %c2_49 = arith.constant 2 : index
    %c0_50 = arith.constant 0 : index
    %c0_51 = arith.constant 0 : index
    %c0_52 = arith.constant 0 : index
    %43 = vector.load %arg1[%c0_48, %c2_49, %c0_50, %c0_51, %c0_52] : memref<1x6x2x5x320xbf16, #tpu.memory_space<vmem>>, vector<1x4x1x4x320xbf16>
    %44 = vector.shape_cast %43 : vector<1x4x1x4x320xbf16> to vector<4x4x320xbf16>
    %45 = vector.shape_cast %44 : vector<4x4x320xbf16> to vector<16x320xbf16>
    %c6 = arith.constant 6 : index
    %c0_53 = arith.constant 0 : index
    %c0_54 = arith.constant 0 : index
    %46 = vector.load %arg2[%c6, %c0_53, %c0_54] : memref<9x320x256xbf16, #tpu.memory_space<vmem>>, vector<1x320x256xbf16>
    %47 = vector.shape_cast %46 : vector<1x320x256xbf16> to vector<320x256xbf16>
    %cst_55 = arith.constant dense<0.000000e+00> : vector<16x256xf32>
    %48 = tpu.matmul %45, %47, %cst_55 {dimension_numbers = #tpu.dot_dimension_numbers<[1], [0], [0], [1], [0, 0, 1, 1], [], []>} : vector<16x320xbf16>, vector<320x256xbf16>, vector<16x256xf32> -> vector<16x256xf32>
    %49 = arith.addf %42, %48 : vector<16x256xf32>
    %c0_56 = arith.constant 0 : index
    %c2_57 = arith.constant 2 : index
    %c1_58 = arith.constant 1 : index
    %c0_59 = arith.constant 0 : index
    %c0_60 = arith.constant 0 : index
    %50 = vector.load %arg1[%c0_56, %c2_57, %c1_58, %c0_59, %c0_60] : memref<1x6x2x5x320xbf16, #tpu.memory_space<vmem>>, vector<1x4x1x4x320xbf16>
    %51 = vector.shape_cast %50 : vector<1x4x1x4x320xbf16> to vector<4x4x320xbf16>
    %52 = vector.shape_cast %51 : vector<4x4x320xbf16> to vector<16x320xbf16>
    %c7 = arith.constant 7 : index
    %c0_61 = arith.constant 0 : index
    %c0_62 = arith.constant 0 : index
    %53 = vector.load %arg2[%c7, %c0_61, %c0_62] : memref<9x320x256xbf16, #tpu.memory_space<vmem>>, vector<1x320x256xbf16>
    %54 = vector.shape_cast %53 : vector<1x320x256xbf16> to vector<320x256xbf16>
    %cst_63 = arith.constant dense<0.000000e+00> : vector<16x256xf32>
    %55 = tpu.matmul %52, %54, %cst_63 {dimension_numbers = #tpu.dot_dimension_numbers<[1], [0], [0], [1], [0, 0, 1, 1], [], []>} : vector<16x320xbf16>, vector<320x256xbf16>, vector<16x256xf32> -> vector<16x256xf32>
    %56 = arith.addf %49, %55 : vector<16x256xf32>
    %c0_64 = arith.constant 0 : index
    %c2_65 = arith.constant 2 : index
    %c0_66 = arith.constant 0 : index
    %c1_67 = arith.constant 1 : index
    %c0_68 = arith.constant 0 : index
    %57 = vector.load %arg1[%c0_64, %c2_65, %c0_66, %c1_67, %c0_68] : memref<1x6x2x5x320xbf16, #tpu.memory_space<vmem>>, vector<1x4x1x4x320xbf16>
    %58 = vector.shape_cast %57 : vector<1x4x1x4x320xbf16> to vector<4x4x320xbf16>
    %59 = vector.shape_cast %58 : vector<4x4x320xbf16> to vector<16x320xbf16>
    %c8 = arith.constant 8 : index
    %c0_69 = arith.constant 0 : index
    %c0_70 = arith.constant 0 : index
    %60 = vector.load %arg2[%c8, %c0_69, %c0_70] : memref<9x320x256xbf16, #tpu.memory_space<vmem>>, vector<1x320x256xbf16>
    %61 = vector.shape_cast %60 : vector<1x320x256xbf16> to vector<320x256xbf16>
    %cst_71 = arith.constant dense<0.000000e+00> : vector<16x256xf32>
    %62 = tpu.matmul %59, %61, %cst_71 {dimension_numbers = #tpu.dot_dimension_numbers<[1], [0], [0], [1], [0, 0, 1, 1], [], []>} : vector<16x320xbf16>, vector<320x256xbf16>, vector<16x256xf32> -> vector<16x256xf32>
    %63 = arith.addf %56, %62 : vector<16x256xf32>
    %c0_72 = arith.constant 0 : index
    %c0_73 = arith.constant 0 : index
    %64 = vector.load %arg3[%c0_72, %c0_73] : memref<1x256xf32, #tpu.memory_space<vmem>>, vector<1x256xf32>
    %65 = vector.broadcast %64 : vector<1x256xf32> to vector<16x256xf32>
    %66 = arith.addf %63, %65 : vector<16x256xf32>
    %cst_74 = arith.constant 0.000000e+00 : f32
    %67 = vector.broadcast %cst_74 : f32 to vector<16x256xf32>
    %68 = arith.maximumf %66, %67 : vector<16x256xf32>
    %c0_75 = arith.constant 0 : index
    %c0_76 = arith.constant 0 : index
    %c0_77 = arith.constant 0 : index
    %69 = vector.load %arg4[%c0_75, %c0_76, %c0_77] : memref<1x16x256xf32, #tpu.memory_space<vmem>>, vector<1x16x256xf32>
    %70 = vector.shape_cast %69 : vector<1x16x256xf32> to vector<16x256xf32>
    %71 = vector.shape_cast %68 : vector<16x256xf32> to vector<1x16x256xf32>
    tpu.vector_store %arg4[%c0_75, %c0_76, %c0_77], %71 {strides = array<i32>} : memref<1x16x256xf32, #tpu.memory_space<vmem>>, vector<1x16x256xf32>,
    return
  }
  func.func @transform_0(%arg0: i32) -> (i32, i32, i32, i32, i32) {
    %c0_i32 = arith.constant 0 : i32
    %c0_i32_0 = arith.constant 0 : i32
    %c0_i32_1 = arith.constant 0 : i32
    %c0_i32_2 = arith.constant 0 : i32
    %c0_i32_3 = arith.constant 0 : i32
    return %arg0, %c0_i32, %c0_i32_0, %c0_i32_1, %c0_i32_2 : i32, i32, i32, i32, i32
  }
  func.func @transform_1(%arg0: i32) -> (i32, i32, i32) {
    %c0_i32 = arith.constant 0 : i32
    %c0_i32_0 = arith.constant 0 : i32
    %c0_i32_1 = arith.constant 0 : i32
    %c0_i32_2 = arith.constant 0 : i32
    return %c0_i32, %c0_i32_0, %c0_i32_1 : i32, i32, i32
  }
  func.func @transform_2(%arg0: i32) -> (i32, i32) {
    %c0_i32 = arith.constant 0 : i32
    %c0_i32_0 = arith.constant 0 : i32
    %c0_i32_1 = arith.constant 0 : i32
    return %c0_i32, %c0_i32_0 : i32, i32
  }
  func.func @transform_3(%arg0: i32) -> (i32, i32, i32) {
    %c0_i32 = arith.constant 0 : i32
    %c0_i32_0 = arith.constant 0 : i32
    %c0_i32_1 = arith.constant 0 : i32
    return %arg0, %c0_i32, %c0_i32_0 : i32, i32, i32
  }
}

</mosaic_0001>

<bundles_post_ra>
// kernel: tile.18
= control target key start
LH: loop header
LB: loop body
LE: loop exit
PB: predicated region body
PF: predicated region fallthrough
CT: control target
= control target key end

     0   :  { %s28_s0 = inlined_call_operand.vmem [shape: f32[16], index: 0, kind: input, shape index: {}]   ;;  %s29_s1 = inlined_call_operand.vmem [shape: f32[16,16], index: 1, kind: output, shape index: {}]  }
   0x1   :  { %v4_v0 = vld [vmem:[%s28_s0] ss:$0 sm:$0xff] }
   0x2   :  { %5 = vst [vmem:[%s29_s1] sm:$0xff] %v4_v0  ;;  %8 = vst [vmem:[%s29_s1 + $0x8] sm:$0xff] %v4_v0 }

// kernel: tile.19
= control target key start
LH: loop header
LB: loop body
LE: loop exit
PB: predicated region body
PF: predicated region fallthrough
CT: control target
= control target key end

     0   :  { %s7_s6 = smov 3  ;;  %s21_s9 = smov 3  ;;  %vm4_vm0 = vcmask 130048   ;;  %vm11_vm1 = vcmask 1048448   ;;  %vm18_vm2 = vcmask 917248   ;;  %vm25_vm3 = vcmask 786048   ;;  %s128_s0 = inlined_call_operand.vmem [shape: f32[16,16], index: 0, kind: input, shape index: {}]   ;;  %s129_s1 = inlined_call_operand.vmem [shape: f32[1,256], index: 1, kind: output, shape index: {}]  }
   0x1   :  { %v66_v0 = vld [vmem:[%s128_s0 + $0x7] ss:$8 sm:%s7_s6]   ;;  %s81_s10 = smov 112   ;;  %v68_v1 = vld [vmem:[%s128_s0 + $0x5] ss:$8 sm:%s21_s9]   ;;  %s14_s13 = smov 3 }
   0x2   :  { %9 = vrot.lane.b32.xlu0 %v66_v0, %s81_s10  ;;  %s82_s14 = smov 80   ;;  %v67_v2 = vld [vmem:[%s128_s0 + $0x6] ss:$8 sm:%s14_s13]   ;;  %s28_s17 = smov 3  ;;  %vm32_vm4 = vcmask 654848   ;;  %vm39_vm5 = vcmask 523648  }
   0x3   :  { %23 = vrot.lane.b32.xlu1 %v68_v1, %s82_s14  ;;  %v69_v3 = vld [vmem:[%s128_s0 + $0x4] ss:$8 sm:%s28_s17]   ;;  %s35_s20 = smov 3  ;;  %s42_s21 = smov 3  ;;  %vm46_vm6 = vcmask 392448   ;;  %vm53_vm7 = vcmask 261248  }
   0x4   :  { %s83_s22 = smov 96   ;;  %s84_s23 = smov 64   ;;  %v70_v4 = vld [vmem:[%s128_s0 + $0x3] ss:$8 sm:%s35_s20]   ;;  %v71_v5 = vld [vmem:[%s128_s0 + $0x2] ss:$8 sm:%s42_s21]  }
   0x5   :  { %s2_s26 = smov 3  ;;  %s49_s29 = smov 3 }
   0x6   :  { %16 = vrot.lane.b32.xlu0 %v67_v2, %s83_s22  ;;  %v3_v6 = vld [vmem:[%s128_s0] ss:$8 sm:%s2_s26]   ;;  %s85_s3 = smov 48   ;;  %s86_s4 = smov 32  }
   0x7   :  { %30 = vrot.lane.b32.xlu1 %v69_v3, %s84_s23  ;;  %5 = vst.msk [vmem:[#allocation0] ss:$8 sm:$0x3] %vm4_vm0, %v3_v6   ;;  %v72_v7 = vld [vmem:[%s128_s0 + $0x1] ss:$8 sm:%s49_s29]   ;;  %s87_s0 = smov 16  }
   0xa   :  { %37 = vrot.lane.b32.xlu0 %v70_v4, %s85_s3 }
   0xb   :  { %44 = vrot.lane.b32.xlu1 %v71_v5, %s86_s4 }
   0xe   :  { %51 = vrot.lane.b32.xlu0 %v72_v7, %s87_s0 }
  0x74   :  { %v10_v8 = vpop.permute.xlu0 %9  }
  0x75   :  { %12 = vst.msk [vmem:[#allocation0] ss:$8 sm:$0x3] %vm11_vm1, %v10_v8   ;;  %v24_v9 = vpop.permute.xlu1 %23  }
  0x78   :  { %v17_v10 = vpop.permute.xlu0 %16  }
  0x79   :  { %19 = vst.msk [vmem:[#allocation0] ss:$8 sm:$0x3] %vm18_vm2, %v17_v10   ;;  %v31_v11 = vpop.permute.xlu1 %30  }
  0x7a   :  { %26 = vst.msk [vmem:[#allocation0] ss:$8 sm:$0x3] %vm25_vm3, %v24_v9  }
  0x7b   :  { %33 = vst.msk [vmem:[#allocation0] ss:$8 sm:$0x3] %vm32_vm4, %v31_v11  }
  0x7c   :  { %v38_v12 = vpop.permute.xlu0 %37  }
  0x7d   :  { %40 = vst.msk [vmem:[#allocation0] ss:$8 sm:$0x3] %vm39_vm5, %v38_v12   ;;  %v45_v13 = vpop.permute.xlu1 %44  }
  0x7e   :  { %47 = vst.msk [vmem:[#allocation0] ss:$8 sm:$0x3] %vm46_vm6, %v45_v13  }
  0x80   :  { %v52_v14 = vpop.permute.xlu0 %51  }
  0x81   :  { %54 = vst.msk [vmem:[#allocation0] ss:$8 sm:$0x3] %vm53_vm7, %v52_v14  }
  0x88   :  { %v58_v15 = vld [vmem:[#allocation0] sm:$0x1]  ;;  %v62_v16 = vld [vmem:[#allocation0 + $0x8] sm:$0x1] }
  0x89   :  { %60 = vst [vmem:[%s129_s1] sm:$0x1] %v58_v15  ;;  %73 = vst [vmem:[%s129_s1 + $0x1] sm:$0x1] %v62_v16 }

// kernel: encoder3d_forward.3
= control target key start
LH: loop header
LB: loop body
LE: loop exit
PB: predicated region body
PF: predicated region fallthrough
CT: control target
= control target key end

     0   :  { %s2786_s12 = smov 0   ;;  %s3523_s0 = inlined_call_operand.vmem [shape: bf16[2,6,18,54], index: 0, kind: input, shape index: {}]   ;;  %s3524_s1 = inlined_call_operand.vmem [shape: bf16[9,54,256], index: 1, kind: input, shape index: {}]   ;;  %s3525_s2 = inlined_call_operand.vmem [shape: f32[1,256], index: 2, kind: input, shape index: {}]   ;;  %s3526_s3 = inlined_call_operand.vmem [shape: f32[2,64,256], index: 3, kind: output, shape index: {}]  }
   0x1 LB: > { %s2214_s13 = sadd.s32 4294967295, %s2763_s12   ;;  %p2218_p0 = scmp.ge.s32.totalorder %s2763_s12, 1  ;;  %s2763_s12 = sphi %s2786_s12, %s13_s12  }
   0x2   : > { %p137_p1 = scmp.lt.s32.totalorder %s2763_s12, 3 }
   0x4   : > { %p138_p2 = pnand %p2218_p0, %p137_p1 }
   0x5   : > { %v2640_v0 = vld [vmem:[%s3524_s1 + $0x3c] ss:$8 sps:$4 sm:$0xff] (!%p138_p2)   ;;  %v2765_v2 = vmov (!%p138_p2), 0   ;;  %p161_p3 = scmp.lt.s32.totalorder (!%p138_p2), %s2214_s13, 1  ;;  %v2644_v3 = vld [vmem:[%s3524_s1 + $0x38] ss:$8 sps:$4 sm:$0xff] (!%p138_p2)  }
   0x6   : > { %141 = sbr.rel (%p138_p2) target bundleno = 392 (0x188), region = 32  ;;  %v2642_v1 = vld [vmem:[%s3524_s1 + $0xe4] ss:$8 sps:$4 sm:$0xff] (!%p138_p2)   ;;  %397 = vmatprep.mubr.bf16.mxu1 (!%p138_p2), %v2765_v2  ;;  %1181 = vmatprep.mubr.bf16.mxu0 (!%p138_p2), %v2765_v2  ;;  %v2645_v4 = vld [vmem:[%s3524_s1 + $0xe0] ss:$8 sps:$4 sm:$0xff] (!%p138_p2)   ;;  %vm358_vm0 = vcmask (!%p138_p2), 1042432  }
   0x7   : > { %365 = vmatprep.subr.bf16.mxu1 (!%p138_p2), %v2640_v0  ;;  %1149 = vmatprep.subr.bf16.mxu0 (!%p138_p2), %v2642_v1  ;;  %v2646_v5 = vld [vmem:[%s3524_s1 + $0x4c] ss:$8 sps:$4 sm:$0xff] (!%p138_p2)   ;;  %v2650_v7 = vld [vmem:[%s3524_s1 + $0x48] ss:$8 sps:$4 sm:$0xff] (!%p138_p2)   ;;  %v2652_v9 = vld [vmem:[%s3524_s1 + $0x5c] ss:$8 sps:$4 sm:$0xff] (!%p138_p2)  }
   0x8   : > { %366 = vmatpush1.bf16.msra.mxu1 (!%p138_p2), %v2644_v3  ;;  %1150 = vmatpush1.bf16.msra.mxu0 (!%p138_p2), %v2645_v4  ;;  %v2648_v6 = vld [vmem:[%s3524_s1 + $0xf4] ss:$8 sps:$4 sm:$0xff] (!%p138_p2)   ;;  %v2651_v8 = vld [vmem:[%s3524_s1 + $0xf0] ss:$8 sps:$4 sm:$0xff] (!%p138_p2)   ;;  %v2654_v10 = vld [vmem:[%s3524_s1 + $0x104] ss:$8 sps:$4 sm:$0xff] (!%p138_p2)  }
   0x9   : > { %367 = vmatprep.subr.bf16.mxu1 (!%p138_p2), %v2646_v5  ;;  %1151 = vmatprep.subr.bf16.mxu0 (!%p138_p2), %v2648_v6  ;;  %v2656_v11 = vld [vmem:[%s3524_s1 + $0x58] ss:$8 sps:$4 sm:$0xff] (!%p138_p2)   ;;  %v2228_v13 = vld [vmem:[%s3524_s1 + $0x68] sm:$0x77] (!%p138_p2)  ;;  %v2341_v14 = vld [vmem:[%s3524_s1 + $0x110] sm:$0x77] (!%p138_p2) }
   0xa   : > { %v2657_v12 = vld [vmem:[%s3524_s1 + $0x100] ss:$8 sps:$4 sm:$0xff] (!%p138_p2)   ;;  %v2240_v16 = vcombine.high (!%p138_p2), %v2228_v13, %v2228_v13  ;;  %v2849_v17 = vcombine.high (!%p138_p2), %v2341_v14, %v2341_v14  ;;  %v2239_v18 = vcombine.low (!%p138_p2), %v2228_v13, %v2228_v13  ;;  %v2352_v21 = vcombine.low (!%p138_p2), %v2341_v14, %v2341_v14  ;;  %v2664_v31 = vld [vmem:[%s3524_s1 + $0x4] ss:$8 sps:$4 sm:$0xff] (!%p138_p2)  }
   0xb   : > { %vm191_vm1 = vsmask.f32 (!%p138_p2), 3328  ;;  %vm192_vm2 = vsmask.f32 (!%p138_p2), 7440  ;;  %vm345_vm3 = vcmask (!%p138_p2), 441344   ;;  %vm597_vm5 = vcmask (!%p138_p2), 1046532  }
   0xc   : > { %368 = vmatpush1.bf16.msra.mxu1 (!%p138_p2), %v2650_v7  ;;  %1152 = vmatpush1.bf16.msra.mxu0 (!%p138_p2), %v2651_v8  ;;  %v360_v27 = vsel (!%p138_p2), %vm358_vm0, %v2239_v18, 0  ;;  %v2870_v32 = vsel (!%p138_p2), %vm358_vm0, %v2352_v21, 0  ;;  %vm2881_vm4 = vmor (!%p138_p2), %vm191_vm1, %vm192_vm2  ;;  %v2667_v50 = vld [vmem:[%s3524_s1 + $0x11c] ss:$8 sps:$4 sm:$0xff] (!%p138_p2)   ;;  %v2662_v56 = vld [vmem:[%s3524_s1] ss:$8 sps:$4 sm:$0xff] (!%p138_p2)  }
   0xd   : > { %s3532_s13 = smov (!%p161_p3, %s2214_s13), 1  ;;  %369 = vmatprep.subr.bf16.mxu1 %v2652_v9  ;;  %1153 = vmatprep.subr.bf16.mxu0 %v2654_v10  ;;  %v2665_v7 = vld [vmem:[%s3524_s1 + $0x118] ss:$8 sps:$4 sm:$0xff]   ;;  %vm2994_vm6 = vmor %vm358_vm0, %vm597_vm5 }
   0xe   : > { %s2630_s30 = smul.u32 72, %s3532_s13  ;;  %s2493_s9 = sshll.u32 %s3532_s13, 7 }
   0xf   : > { %s3487_s14 = scalar_lea.vmem %s3526_s3, %s2493_s9 }
  0x10   : > { %s2838_s16 = scalar_lea.vmem %s3523_s0, %s2630_s30  ;;  %370 = vmatpush1.bf16.msra.mxu1 %v2656_v11  ;;  %1154 = vmatpush1.bf16.msra.mxu0 %v2657_v12  ;;  %v2670_v12 = vld [vmem:[%s3524_s1 + $0x12c] ss:$8 sps:$4 sm:$0xff]  }
  0x11   : > { %v2847_v15 = vld [vmem:[%s2838_s16] sm:$0xf]  ;;  %v2852_v19 = vld [vmem:[%s2838_s16 + $0x4] sm:$0xf]  ;;  %v2855_v20 = vld [vmem:[%s2838_s16 + $0x8] sm:$0x1]  ;;  %2241 = vmatprep.subr.msk.bf16.mxu1 %vm358_vm0, %v2240_v16  ;;  %2354 = vmatprep.subr.msk.bf16.mxu0 %vm358_vm0, %v2849_v17 }
  0x12   : > { %v195_v22 = vshrl.u32 %v2847_v15, 16  ;;  %v198_v23 = vshll.u32 %v2847_v15, 16  ;;  %v204_v24 = vshll.u32 %v2852_v19, 16  ;;  %v208_v25 = vshrl.u32 %v2852_v19, 16  ;;  %v2323_v35 = vld [vmem:[%s2838_s16 + $0xc] sm:$0xf] }
  0x13   : > { %v214_v26 = vshll.u32 %v2855_v20, 16  ;;  %v2874_v37 = vld [vmem:[%s2838_s16 + $0x10] sm:$0xf]  ;;  %v2877_v38 = vld [vmem:[%s2838_s16 + $0x14] sm:$0x1]  ;;  %v981_v39 = vshrl.u32 %v2323_v35, 16 }
  0x14   : > { %v197_v28 = vrot.slane %v195_v22, 4  ;;  %v200_v29 = vrot.slane %v198_v23, 5  ;;  %v206_v30 = vrot.slane %v204_v24, 5  ;;  %v210_v33 = vrot.slane %v208_v25, 4  ;;  %372 = vmatpush1.bf16.msra.mxu1 %v360_v27  ;;  %1156 = vmatpush1.bf16.msra.mxu0 %v2870_v32  ;;  %v2906_v62 = vld [vmem:[%s2838_s16 + $0xc] sm:$0xf] }
  0x15   : > { %v216_v34 = vrot.slane %v214_v26, 5  ;;  %v984_v40 = vshll.u32 %v2323_v35, 16  ;;  %v990_v43 = vshll.u32 %v2874_v37, 16  ;;  %v994_v44 = vshrl.u32 %v2874_v37, 16  ;;  %511 = vmatprep.subr.bf16.mxu1 %v2664_v31  ;;  %1355 = vmatprep.subr.bf16.mxu0 %v2667_v50  ;;  %v2909_v63 = vld [vmem:[%s2838_s16 + $0x10] sm:$0xf] }
  0x16   : > { %v201_v36 = vor.u32 %v200_v29, %v197_v28  ;;  %v211_v42 = vor.u32 %v210_v33, %v206_v30  ;;  %v1000_v45 = vshll.u32 %v2877_v38, 16  ;;  %v983_v47 = vrot.slane %v981_v39, 4  ;;  %v2912_v0 = vld [vmem:[%s2838_s16 + $0x14] sm:$0x1]  ;;  %v2326_v18 = vld [vmem:[%s2838_s16 + $0x18] sm:$0xf] }
  0x17   : > { %v986_v48 = vrot.slane %v984_v40, 5  ;;  %v1256_v49 = vrot.slane %v2874_v37, 5  ;;  %v992_v52 = vrot.slane %v990_v43, 5  ;;  %v996_v53 = vrot.slane %v994_v44, 4  ;;  %v2673_v16 = vld [vmem:[%s3524_s1 + $0x14] ss:$8 sps:$4 sm:$0xff]  }
  0x18   : > { %v202_v46 = vrot.slane %v201_v36, 4  ;;  %v212_v51 = vrot.slane %v211_v42, 4  ;;  %v1002_v54 = vrot.slane %v1000_v45, 5  ;;  %v1259_v59 = vrot.slane %v2877_v38, 5  ;;  %v2936_v25 = vld [vmem:[%s2838_s16 + $0x1c] sm:$0xf] }
  0x19   : > { %v987_v57 = vor.u32 %v986_v48, %v983_v47  ;;  %v2900_v58 = vrot.slane %v1256_v49, 4  ;;  %v997_v61 = vor.u32 %v996_v53, %v992_v52  ;;  %v219_v4 = vshrl.u32 %v2906_v62, 16  ;;  %v2671_v28 = vld [vmem:[%s3524_s1 + $0x10] ss:$8 sps:$4 sm:$0xff]   ;;  %v2942_v29 = vld [vmem:[%s2838_s16 + $0x20] sm:$0x1] }
  0x1a   : > { %v207_v55 = vsel %vm2881_vm4, %v202_v46, %v206_v30  ;;  %v217_v60 = vsel %vm2881_vm4, %v212_v51, %v216_v34  ;;  %v222_v5 = vshll.u32 %v2906_v62, 16  ;;  %v228_v8 = vshll.u32 %v2909_v63, 16  ;;  %v2668_v33 = vld [vmem:[%s3524_s1 + $0x128] ss:$8 sps:$4 sm:$0xff]   ;;  %v2676_v44 = vld [vmem:[%s3524_s1 + $0x13c] ss:$8 sps:$4 sm:$0xff]  }
  0x1b   : > { %v2229_v1 = vcombine.low %v207_v55, %v217_v60  ;;  %v988_v3 = vrot.slane %v987_v57, 4  ;;  %v998_v6 = vrot.slane %v997_v61, 4  ;;  %v232_v9 = vshrl.u32 %v2909_v63, 16  ;;  %v2957_v45 = vld [vmem:[%s3524_s1 + $0x148] sm:$0x77] }
  0x1c   : > { %v238_v10 = vshll.u32 %v2912_v0, 16  ;;  %v221_v13 = vrot.slane %v219_v4, 4  ;;  %v224_v14 = vrot.slane %v222_v5, 5  ;;  %v230_v22 = vrot.slane %v228_v8, 5  ;;  %v2961_v51 = vld [vmem:[%s2838_s16 + $0x18] sm:$0xf] }
  0x1d   : > { %2242 = vmatmul.mubr.msk.bf16.vlgmr.msra.gmra.mrb[0].mxu1 %vm345_vm3, %v2229_v1  ;;  %v993_v11 = vsel %vm2881_vm4, %v988_v3, %v992_v52  ;;  %v1003_v21 = vsel %vm2881_vm4, %v998_v6, %v1002_v54  ;;  %v234_v23 = vrot.slane %v232_v9, 4  ;;  %v1005_v30 = vshrl.u32 %v2326_v18, 16  ;;  %v2968_v55 = vld [vmem:[%s2838_s16 + $0x1c] sm:$0xf]  ;;  %v2679_v4 = vld [vmem:[%s3524_s1 + $0x20] ss:$8 sps:$4 sm:$0xff]  }
  0x1e   : > { %512 = vmatpush1.bf16.msra.mxu1 %v2662_v56  ;;  %407 = vmatprep.mubr.bf16.mxu1 %v2765_v2  ;;  %v240_v24 = vrot.slane %v238_v10, 5  ;;  %v2342_v26 = vcombine.low %v993_v11, %v1003_v21  ;;  %v225_v27 = vor.u32 %v224_v14, %v221_v13  ;;  %v1008_v31 = vshll.u32 %v2326_v18, 16  ;;  %v2971_v56 = vld [vmem:[%s2838_s16 + $0x20] sm:$0x1]  ;;  %v2681_v5 = vld [vmem:[%s3524_s1 + $0x24] ss:$8 sps:$4 sm:$0xff]  }
  0x1f   : > { %513 = vmatprep.subr.bf16.mxu1 %v2673_v16  ;;  %v235_v34 = vor.u32 %v234_v23, %v230_v22  ;;  %v1014_v35 = vshll.u32 %v2936_v25, 16  ;;  %v1018_v36 = vshrl.u32 %v2936_v25, 16  ;;  %v1024_v39 = vshll.u32 %v2942_v29, 16  ;;  %v2359_v10 = vld [vmem:[%s2838_s16 + $0xc] sm:$0xe] }
  0x20   : > { %2355 = vmatmul.mubr.msk.bf16.vlgmr.msra.gmra.mrb[0].mxu0 %vm345_vm3, %v2342_v26  ;;  %v226_v40 = vrot.slane %v225_v27, 4  ;;  %v1007_v42 = vrot.slane %v1005_v30, 4  ;;  %v1010_v43 = vrot.slane %v1008_v31, 5  ;;  %v2385_v54 = vcombine.high %v2957_v45, %v2957_v45  ;;  %v3006_v30 = vld [vmem:[%s2838_s16 + $0x24] sm:$0xf] }
  0x21   : > { %1356 = vmatpush1.bf16.msra.mxu0 %v2665_v7  ;;  %1191 = vmatprep.mubr.bf16.mxu0 %v2765_v2  ;;  %v236_v46 = vrot.slane %v235_v34, 4  ;;  %v1016_v47 = vrot.slane %v1014_v35, 5  ;;  %v1020_v48 = vrot.slane %v1018_v36, 4  ;;  %v1026_v50 = vrot.slane %v1024_v39, 5  ;;  %v3009_v31 = vld [vmem:[%s2838_s16 + $0x28] sm:$0xf] }
  0x22   : > { %1357 = vmatprep.subr.bf16.mxu0 %v2670_v12  ;;  %v231_v52 = vsel %vm2881_vm4, %v226_v40, %v230_v22  ;;  %v1011_v53 = vor.u32 %v1010_v43, %v1007_v42  ;;  %514 = vmatpush1.bf16.msra.mxu1 %v2671_v28  ;;  %v243_v57 = vshrl.u32 %v2961_v51, 16  ;;  %v2384_v1 = vcombine.low %v2957_v45, %v2957_v45  ;;  %v2674_v12 = vld [vmem:[%s3524_s1 + $0x138] ss:$8 sps:$4 sm:$0xff]   ;;  %v3018_v39 = vld [vmem:[%s2838_s16 + $0x2c] sm:$0x1] }
  0x23   : > { %v241_v60 = vsel %vm2881_vm4, %v236_v46, %v240_v24  ;;  %v1021_v61 = vor.u32 %v1020_v48, %v1016_v47  ;;  %v246_v3 = vshll.u32 %v2961_v51, 16  ;;  %v252_v9 = vshll.u32 %v2968_v55, 16  ;;  %515 = vmatprep.subr.bf16.mxu1 %v2681_v5  ;;  %v186_v42 = vld [vmem:[%s3524_s1 + $0x30] sm:$0x77]  ;;  %v2099_v18 = vld [vmem:[%s3525_s2] sm:$0x3] }
  0x24   : > { %v2230_v6 = vcombine.low %v231_v52, %v241_v60  ;;  %v1012_v7 = vrot.slane %v1011_v53, 4  ;;  %v245_v8 = vrot.slane %v243_v57, 4  ;;  %v1350_v13 = vsel %vm358_vm0, %v2384_v1, 0  ;;  %v2682_v1 = vld [vmem:[%s3524_s1 + $0x150] ss:$8 sps:$4 sm:$0xff]  }
  0x25   : > { %1358 = vmatpush1.bf16.msra.mxu0 %v2668_v33  ;;  %v1022_v11 = vrot.slane %v1021_v61, 4  ;;  %v248_v14 = vrot.slane %v246_v3, 5  ;;  %v256_v16 = vshrl.u32 %v2968_v55, 16  ;;  %v254_v22 = vrot.slane %v252_v9, 5 }
  0x26   : > { %2243 = vmatmul.mubr.msk.bf16.gmra.mrb[4].mxu1 %vm345_vm3, %v2230_v6  ;;  %v1017_v21 = vsel %vm2881_vm4, %v1012_v7, %v1016_v47  ;;  %1359 = vmatprep.subr.bf16.mxu0 %v2676_v44  ;;  %v262_v23 = vshll.u32 %v2971_v56, 16  ;;  %v2363_v24 = vrot.slane %v2359_v10, 9  ;;  %v1263_v33 = vrot.slane %v2936_v25, 5  ;;  %v2360_v47 = vld [vmem:[%s2838_s16 + $0x18] sm:$0xe] }
  0x27   : > { %v1027_v26 = vsel %vm2881_vm4, %v1022_v11, %v1026_v50  ;;  %417 = vmatprep.mubr.bf16.mxu1 %v2765_v2  ;;  %v249_v27 = vor.u32 %v248_v14, %v245_v8  ;;  %v258_v28 = vrot.slane %v256_v16, 4  ;;  %516 = vmatpush1.bf16.msra.mxu1 %v2679_v4  ;;  %v1260_v36 = vsel %vm2994_vm6, %v2900_v58, %v1259_v59  ;;  %v2684_v58 = vld [vmem:[%s3524_s1 + $0x154] ss:$8 sps:$4 sm:$0xff]   ;;  %v2330_v11 = vld [vmem:[%s2838_s16 + $0x28] sm:$0xf] }
  0x28   : > { %v2343_v34 = vcombine.low %v1017_v21, %v1027_v26  ;;  %v264_v35 = vrot.slane %v262_v23, 5  ;;  %v267_v40 = vshrl.u32 %v3006_v30, 16  ;;  %v1257_v38 = vsel %vm2994_vm6, %v2363_v24, %v1256_v49  ;;  %v2693_v6 = vld [vmem:[%s3524_s1 + $0x74] ss:$8 sps:$4 sm:$0xff]  }
  0x29   : > { %1360 = vmatpush1.bf16.msra.mxu0 %v2674_v12  ;;  %v250_v43 = vrot.slane %v249_v27, 4  ;;  %v259_v25 = vor.u32 %v258_v28, %v254_v22  ;;  %v270_v59 = vshll.u32 %v3006_v30, 16  ;;  %v276_v45 = vshll.u32 %v3009_v31, 16 }
  0x2a   : > { %2356 = vmatmul.mubr.msk.bf16.gmra.mrb[4].mxu0 %vm345_vm3, %v2343_v34  ;;  %2386 = vmatprep.subr.msk.bf16.mxu0 %vm358_vm0, %v2385_v54  ;;  %v269_v44 = vrot.slane %v267_v40, 4  ;;  %v280_v46 = vshrl.u32 %v3009_v31, 16  ;;  %v286_v37 = vshll.u32 %v3018_v39, 16  ;;  %v2257_v52 = vcombine.high %v186_v42, %v186_v42 }
  0x2b   : > { %1387 = vmatprep.mubr.bf16.mxu0 %v2765_v2  ;;  %v255_v49 = vsel %vm2881_vm4, %v250_v43, %v254_v22  ;;  %v260_v48 = vrot.slane %v259_v25, 4  ;;  %v272_v50 = vrot.slane %v270_v59, 5  ;;  %v2374_v53 = vcombine.low %v1257_v38, %v1260_v36  ;;  %v2688_v22 = vld [vmem:[%s3524_s1 + $0x164] ss:$8 sps:$4 sm:$0xff]   ;;  %v2686_v36 = vld [vmem:[%s3524_s1 + $0x160] ss:$8 sps:$4 sm:$0xff]  }
  0x2c   : > { %v278_v57 = vrot.slane %v276_v45, 5  ;;  %v282_v54 = vrot.slane %v280_v46, 4  ;;  %v288_v60 = vrot.slane %v286_v37, 5  ;;  %2258 = vmatprep.subr.msk.bf16.mxu1 %vm358_vm0, %v2257_v52  ;;  %v2364_v4 = vrot.slane %v2360_v47, 9  ;;  %v2361_v43 = vld [vmem:[%s2838_s16 + $0x24] sm:$0xe] }
  0x2d   : > { %1362 = vmatpush1.bf16.msra.mxu0 %v1350_v13  ;;  %v265_v61 = vsel %vm2881_vm4, %v260_v48, %v264_v35  ;;  %v273_v3 = vor.u32 %v272_v50, %v269_v44  ;;  %v1265_v5 = vrot.slane %v1263_v33, 4  ;;  %v1266_v9 = vrot.slane %v2942_v29, 5  ;;  %v2331_v13 = vld [vmem:[%s2838_s16 + $0x2c] sm:$0x1]  ;;  %v2694_v46 = vld [vmem:[%s3524_s1 + $0x170] ss:$8 sps:$4 sm:$0xff]  }
  0x2e   : > { %v2231_v7 = vcombine.low %v255_v49, %v265_v61  ;;  %1534 = vmatprep.subr.bf16.mxu0 %v2684_v58  ;;  %v283_v8 = vor.u32 %v282_v54, %v278_v57  ;;  %v2256_v10 = vcombine.low %v186_v42, %v186_v42  ;;  %v1038_v14 = vshll.u32 %v2330_v11, 16  ;;  %v2405_v58 = vld [vmem:[%s3524_s1 + $0x180] sm:$0x77]  ;;  %v3092_v50 = vld [vmem:[%s2838_s16 + $0x34] sm:$0xf] }
  0x2f   : > { %v274_v12 = vrot.slane %v273_v3, 4  ;;  %v1042_v16 = vshrl.u32 %v2330_v11, 16  ;;  %v1048_v24 = vshll.u32 %v2331_v13, 16  ;;  %v1264_v34 = vsel %vm2994_vm6, %v2364_v4, %v1263_v33  ;;  %v2696_v33 = vld [vmem:[%s3524_s1 + $0x174] ss:$8 sps:$4 sm:$0xff]  }
  0x30   : > { %2244 = vmatmul.mubr.msk.bf16.gmra.mrb[8].mxu1 %vm345_vm3, %v2231_v7  ;;  %v284_v21 = vrot.slane %v283_v8, 4  ;;  %v506_v23 = vsel %vm358_vm0, %v2256_v10, 0  ;;  %v3061_v26 = vrot.slane %v1038_v14, 5  ;;  %v1267_v35 = vsel %vm2994_vm6, %v1265_v5, %v1266_v9  ;;  %v2691_v3 = vld [vmem:[%s3524_s1 + $0x70] ss:$8 sps:$4 sm:$0xff]  }
  0x31   : > { %427 = vmatprep.mubr.bf16.mxu1 %v2765_v2  ;;  %v279_v29 = vsel %vm2881_vm4, %v274_v12, %v278_v57  ;;  %518 = vmatpush1.bf16.msra.mxu1 %v506_v23  ;;  %v1044_v27 = vrot.slane %v1042_v16, 4  ;;  %v3075_v42 = vrot.slane %v1048_v24, 5  ;;  %v1270_v25 = vrot.slane %v2330_v11, 5  ;;  %v2362_v5 = vld [vmem:[%s2838_s16 + $0x30] sm:$0xe] }
  0x32   : > { %2387 = vmatmul.mubr.msk.bf16.vlgmr.msra.gmra.mrb[0].mxu0 %vm345_vm3, %v2374_v53  ;;  %v289_v28 = vsel %vm2881_vm4, %v284_v21, %v288_v60  ;;  %700 = vmatprep.subr.bf16.mxu1 %v2693_v6  ;;  %v601_v59 = vrot.slane %v2852_v19, 5  ;;  %v604_v44 = vrot.slane %v2855_v20, 5  ;;  %v2375_v37 = vcombine.low %v1264_v34, %v1267_v35  ;;  %v3104_v60 = vld [vmem:[%s2838_s16 + $0x38] sm:$0x1]  ;;  %v2710_v10 = vld [vmem:[%s3524_s1 + $0x18c] ss:$8 sps:$4 sm:$0xff]  }
  0x33   : > { %1535 = vmatpush1.bf16.msra.mxu0 %v2682_v1  ;;  %1397 = vmatprep.mubr.bf16.mxu0 %v2765_v2  ;;  %v1045_v40 = vor.u32 %v1044_v27, %v3061_v26  ;;  %v2232_v38 = vcombine.low %v279_v29, %v289_v28  ;;  %v2365_v47 = vrot.slane %v2361_v43, 9  ;;  %v1272_v49 = vrot.slane %v1270_v25, 4  ;;  %v584_v1 = vld [vmem:[%s2838_s16] sm:$0xe]  ;;  %v586_v35 = vld [vmem:[%s2838_s16 + $0x18] sm:$0xe] }
  0x34   : > { %1536 = vmatprep.subr.bf16.mxu0 %v2688_v22  ;;  %v1273_v48 = vrot.slane %v2331_v13, 5  ;;  %v2416_v52 = vcombine.low %v2405_v58, %v2405_v58  ;;  %v2417_v53 = vcombine.high %v2405_v58, %v2405_v58  ;;  %v603_v57 = vrot.slane %v601_v59, 4  ;;  %v585_v22 = vld [vmem:[%s2838_s16 + $0xc] sm:$0xe]  ;;  %v2273_v58 = vld [vmem:[%s3524_s1 + $0xa0] sm:$0x77] }
  0x35   : > { %v3086_v45 = vrot.slane %v1045_v40, 4  ;;  %v1271_v54 = vsel %vm2994_vm6, %v2365_v47, %v1270_v25  ;;  %v1277_v61 = vrot.slane %v3092_v50, 5  ;;  %v2263_v7 = vrot.slane %v584_v1, 9  ;;  %v2706_v40 = vld [vmem:[%s3524_s1 + $0x94] ss:$8 sps:$4 sm:$0xff]  }
  0x36   : > { %v1274_v4 = vsel %vm2994_vm6, %v1272_v49, %v1273_v48  ;;  %v1529_v6 = vsel %vm358_vm0, %v2416_v52, 0  ;;  %v3118_v8 = vsel %vm2994_vm6, %v603_v57, %v604_v44  ;;  %v2246_v9 = vcombine.low %v2847_v15, %v2852_v19  ;;  %v2700_v15 = vld [vmem:[%s3524_s1 + $0x84] ss:$8 sps:$4 sm:$0xff]  }
  0x37   : > { %1537 = vmatpush1.bf16.msra.mxu0 %v2686_v36  ;;  %v1051_v20 = vsel %vm2881_vm4, %v3086_v45, %v3075_v42  ;;  %v3128_v11 = vsel %vm2994_vm6, %v2263_v7, %v601_v59  ;;  %v608_v12 = vrot.slane %v2909_v63, 5  ;;  %v611_v13 = vrot.slane %v2912_v0, 5  ;;  %v2698_v0 = vld [vmem:[%s3524_s1 + $0x80] ss:$8 sps:$4 sm:$0xff]  }
  0x38   : > { %2245 = vmatmul.mubr.msk.bf16.gmra.mrb[12].mxu1 %vm345_vm3, %v2232_v38  ;;  %1538 = vmatprep.subr.bf16.mxu0 %v2696_v33  ;;  %v615_v14 = vrot.slane %v2968_v55, 5  ;;  %v2376_v16 = vcombine.low %v1271_v54, %v1274_v4  ;;  %v2366_v19 = vrot.slane %v2362_v5, 9  ;;  %v2274_v21 = vcombine.low %v3128_v11, %v3118_v8  ;;  %v2708_v7 = vld [vmem:[%s3524_s1 + $0x188] ss:$8 sps:$4 sm:$0xff]   ;;  %v2725_v8 = vld [vmem:[%s3524_s1 + $0xb8] ss:$8 sps:$4 sm:$0xff]  }
  0x39   : > { %543 = vmatprep.mubr.bf16.mxu1 %v2765_v2  ;;  %v1279_v23 = vrot.slane %v1277_v61, 4  ;;  %v1280_v24 = vrot.slane %v3104_v60, 5  ;;  %v2264_v29 = vrot.slane %v585_v22, 9  ;;  %v610_v27 = vrot.slane %v608_v12, 4 }
  0x3a   : > { %2388 = vmatmul.mubr.msk.bf16.gmra.mrb[4].mxu0 %vm345_vm3, %v2375_v37  ;;  %v617_v36 = vrot.slane %v615_v14, 4  ;;  %v2265_v25 = vrot.slane %v586_v35, 9  ;;  %v1278_v38 = vsel %vm2994_vm6, %v2366_v19, %v1277_v61  ;;  %v618_v59 = vrot.slane %v2971_v56, 5  ;;  %v2704_v37 = vld [vmem:[%s3524_s1 + $0x90] ss:$8 sps:$4 sm:$0xff]  }
  0x3b   : > { %1407 = vmatprep.mubr.bf16.mxu0 %v2765_v2  ;;  %1539 = vmatpush1.bf16.msra.mxu0 %v2694_v46  ;;  %v3147_v28 = vsel %vm2994_vm6, %v2264_v29, %v608_v12  ;;  %v3151_v34 = vsel %vm2994_vm6, %v610_v27, %v611_v13  ;;  %v1281_v33 = vsel %vm2994_vm6, %v1279_v23, %v1280_v24  ;;  %v625_v57 = vrot.slane %v3018_v39, 5  ;;  %v2720_v61 = vld [vmem:[%s3524_s1 + $0xac] ss:$8 sps:$4 sm:$0xff]   ;;  %v2329_v29 = vld [vmem:[%s2838_s16 + $0x24] sm:$0xf] }
  0x3c   : > { %2418 = vmatprep.subr.msk.bf16.mxu0 %vm358_vm0, %v2417_v53  ;;  %v2275_v43 = vcombine.low %v3147_v28, %v3151_v34  ;;  %v2247_v44 = vcombine.low %v2906_v62, %v2909_v63  ;;  %v3173_v46 = vsel %vm2994_vm6, %v2265_v25, %v615_v14  ;;  %v3180_v47 = vsel %vm2994_vm6, %v617_v36, %v618_v59  ;;  %v587_v63 = vld [vmem:[%s2838_s16 + $0x24] sm:$0xe]  ;;  %v2724_v13 = vld [vmem:[%s3524_s1 + $0x1ac] ss:$8 sps:$4 sm:$0xff]  }
  0x3d   : > { %v2377_v49 = vcombine.low %v1278_v38, %v1281_v33  ;;  %v2285_v48 = vcombine.high %v2273_v58, %v2273_v58  ;;  %v2284_v56 = vcombine.low %v2273_v58, %v2273_v58  ;;  %v2276_v62 = vcombine.low %v3173_v46, %v3180_v47  ;;  %v2713_v14 = vld [vmem:[%s2838_s16 + $0x24] sm:$0xff]   ;;  %v2332_v38 = vld [vmem:[%s2838_s16 + $0x30] sm:$0xf] }
  0x3e   : > { %v2266_v52 = vrot.slane %v587_v63, 9  ;;  %v622_v53 = vrot.slane %v3009_v31, 5  ;;  %v2248_v39 = vcombine.low %v2961_v51, %v2968_v55  ;;  %v2716_v51 = vld [vmem:[%s3524_s1 + $0x19c] ss:$8 sps:$4 sm:$0xff]   ;;  %v2714_v55 = vld [vmem:[%s3524_s1 + $0x198] ss:$8 sps:$4 sm:$0xff]   ;;  %v2249_v12 = vcombine.low %v3006_v30, %v3009_v31 }
  0x3f   : > { %1541 = vmatpush1.bf16.msra.mxu0 %v1529_v6  ;;  %v695_v54 = vsel %vm358_vm0, %v2284_v56, 0  ;;  %v2707_v6 = vld [vmem:[%s2838_s16 + $0x18] sm:$0xff]   ;;  %v2722_v30 = vld [vmem:[%s3524_s1 + $0x1a8] ss:$8 sps:$4 sm:$0xff]   ;;  %v1029_v25 = vshrl.u32 %v2329_v29, 16 }
  0x40   : > { %2259 = vmatmul.mubr.msk.bf16.vlgmr.msra.gmra.mrb[0].mxu1 %vm345_vm3, %v2246_v9  ;;  %1804 = vmatprep.subr.bf16.mxu0 %v2710_v10  ;;  %v3197_v1 = vsel %vm2994_vm6, %v2266_v52, %v622_v53  ;;  %v2423_v9 = vld [vmem:[%s2838_s16 + $0x18] sm:$0xf]  ;;  %v3224_v10 = vld [vmem:[%s2838_s16 + $0x1c] sm:$0xf]  ;;  %v2736_v58 = vld [vmem:[%s3524_s1 + $0x1c4] ss:$8 sps:$4 sm:$0xff]  }
  0x41   : > { %701 = vmatpush1.bf16.msra.mxu1 %v2691_v3  ;;  %553 = vmatprep.mubr.bf16.mxu1 %v2765_v2  ;;  %v624_v3 = vrot.slane %v622_v53, 4  ;;  %v1639_v19 = vshll.u32 %v2423_v9, 16  ;;  %v1645_v22 = vshll.u32 %v3224_v10, 16  ;;  %v1649_v23 = vshrl.u32 %v3224_v10, 16  ;;  %v2426_v59 = vld [vmem:[%s2838_s16 + $0x24] sm:$0xf] }
  0x42   : > { %2389 = vmatmul.mubr.msk.bf16.gmra.mrb[8].mxu0 %vm345_vm3, %v2376_v16  ;;  %702 = vmatprep.subr.bf16.mxu1 %v2700_v15  ;;  %v2441_v16 = vld [vmem:[%s3524_s1 + $0x1b8] sm:$0x77]  ;;  %v1636_v15 = vshrl.u32 %v2423_v9, 16  ;;  %v2721_v56 = vld [vmem:[%s2838_s16 + $0x30] sm:$0xff]  }
  0x43   : > { %1417 = vmatprep.mubr.bf16.mxu0 %v2765_v2  ;;  %v3204_v4 = vsel %vm2994_vm6, %v624_v3, %v625_v57  ;;  %v2453_v31 = vcombine.high %v2441_v16, %v2441_v16  ;;  %v2452_v24 = vcombine.low %v2441_v16, %v2441_v16  ;;  %v3244_v35 = vrot.slane %v1645_v22, 5  ;;  %v2727_v63 = vld [vmem:[%s3524_s1 + $0xbc] ss:$8 sps:$4 sm:$0xff]   ;;  %v2733_v16 = vld [vmem:[%s3524_s1 + $0xcc] ss:$8 sps:$4 sm:$0xff]  }
  0x44   : > { %v2277_v5 = vcombine.low %v3197_v1, %v3204_v4  ;;  %v1638_v27 = vrot.slane %v1636_v15, 4  ;;  %v1651_v36 = vrot.slane %v1649_v23, 4 }
  0x45   : > { %703 = vmatpush1.bf16.msra.mxu1 %v2698_v0  ;;  %v1641_v0 = vrot.slane %v1639_v19, 5  ;;  %v1799_v33 = vsel %vm358_vm0, %v2452_v24, 0 }
  0x46   : > { %704 = vmatprep.subr.bf16.mxu1 %v2706_v40  ;;  %v3248_v40 = vld [vmem:[%s2838_s16 + $0x20] sm:$0x1]  ;;  %v1652_v53 = vor.u32 %v1651_v36, %v3244_v35 }
  0x47   : > { %v1642_v52 = vor.u32 %v1641_v0, %v1638_v27  ;;  %v1655_v57 = vshll.u32 %v3248_v40, 16  ;;  %v2731_v0 = vld [vmem:[%s3524_s1 + $0xc8] ss:$8 sps:$4 sm:$0xff]  }
  0x48   : > { %2260 = vmatmul.mubr.msk.bf16.gmra.mrb[4].mxu1 %vm345_vm3, %v2247_v44  ;;  %v2718_v44 = vld [vmem:[%s3524_s1 + $0xa8] ss:$8 sps:$4 sm:$0xff]  }
  0x49   : > { %563 = vmatprep.mubr.bf16.mxu1 %v2765_v2  ;;  %705 = vmatpush1.bf16.msra.mxu1 %v2704_v37  ;;  %v3261_v37 = vld [vmem:[%s2838_s16 + $0x28] sm:$0xf]  ;;  %v1643_v22 = vrot.slane %v1642_v52, 4 }
  0x4a   : > { %2390 = vmatmul.mubr.msk.bf16.gmra.mrb[12].mxu0 %vm345_vm3, %v2377_v49  ;;  %2286 = vmatprep.subr.msk.bf16.mxu1 %vm358_vm0, %v2285_v48  ;;  %v1031_v49 = vrot.slane %v1029_v25, 4  ;;  %v1032_v48 = vshll.u32 %v2329_v29, 16  ;;  %v1673_v15 = vshrl.u32 %v3261_v37, 16 }
  0x4b   : > { %1566 = vmatprep.mubr.bf16.mxu0 %v2765_v2 }
  0x4c   : > { %v1034_v3 = vrot.slane %v1032_v48, 5 }
  0x4d   : > { %707 = vmatpush1.bf16.msra.mxu1 %v695_v54  ;;  %v1053_v54 = vshrl.u32 %v2332_v38, 16 }
  0x4e   : > { %879 = vmatprep.subr.bf16.mxu1 %v2720_v61  ;;  %v1660_v61 = vshrl.u32 %v2426_v59, 16  ;;  %v1035_v11 = vor.u32 %v1034_v3, %v1031_v49 }
  0x4f   : > { %v1055_v9 = vrot.slane %v1053_v54, 4 }
  0x50   : > { %2261 = vmatmul.mubr.msk.bf16.gmra.mrb[8].mxu1 %vm345_vm3, %v2248_v39  ;;  %v1056_v39 = vshll.u32 %v2332_v38, 16  ;;  %v1662_v24 = vrot.slane %v1660_v61, 4 }
  0x51   : > { %573 = vmatprep.mubr.bf16.mxu1 %v2765_v2 }
  0x52   : > { %2419 = vmatmul.mubr.msk.bf16.vlgmr.msra.gmra.mrb[0].mxu0 %vm345_vm3, %v2707_v6  ;;  %v1062_v6 = vshll.u32 %v3092_v50, 16 }
  0x53   : > { %1805 = vmatpush1.bf16.msra.mxu0 %v2708_v7  ;;  %1576 = vmatprep.mubr.bf16.mxu0 %v2765_v2  ;;  %v2305_v7 = vld [vmem:[%s3524_s1 + $0xd8] sm:$0x77] }
  0x54   : > { %1806 = vmatprep.subr.bf16.mxu0 %v2716_v51  ;;  %v1663_v51 = vshll.u32 %v2426_v59, 16  ;;  %v2317_v23 = vcombine.high %v2305_v7, %v2305_v7  ;;  %v3300_v59 = vld [vmem:[%s2838_s16 + $0x2c] sm:$0x1]  ;;  %v2316_v49 = vcombine.low %v2305_v7, %v2305_v7 }
  0x55   : > { %v1679_v28 = vshll.u32 %v3300_v59, 16 }
  0x56   : > { %v1665_v36 = vrot.slane %v1663_v51, 5 }
  0x57   : > { %1807 = vmatpush1.bf16.msra.mxu0 %v2714_v55  ;;  %v1669_v55 = vshll.u32 %v3261_v37, 16 }
  0x58   : > { %2262 = vmatmul.mubr.msk.bf16.gmra.mrb[12].mxu1 %vm345_vm3, %v2249_v12  ;;  %1808 = vmatprep.subr.bf16.mxu0 %v2724_v13  ;;  %v1066_v12 = vshrl.u32 %v3092_v50, 16  ;;  %v1064_v13 = vrot.slane %v1062_v6, 5  ;;  %v1657_v50 = vrot.slane %v1655_v57, 5  ;;  %v1681_v6 = vrot.slane %v1679_v28, 5 }
  0x59   : > { %732 = vmatprep.mubr.bf16.mxu1 %v2765_v2  ;;  %v3293_v25 = vrot.slane %v1669_v55, 5  ;;  %v2751_v55 = vld [vmem:[%s3524_s1 + $0xe4] ss:$8 sps:$4 sm:$0xff]  }
  0x5a   : > { %2420 = vmatmul.mubr.msk.bf16.gmra.mrb[4].mxu0 %vm345_vm3, %v2713_v14  ;;  %v1072_v14 = vshll.u32 %v3104_v60, 16  ;;  %v1068_v19 = vrot.slane %v1066_v12, 4  ;;  %v1653_v60 = vrot.slane %v1652_v53, 4  ;;  %v3320_v53 = vld [vmem:[%s2838_s16 + $0x34] sm:$0xf] }
  0x5b   : > { %1586 = vmatprep.mubr.bf16.mxu0 %v2765_v2  ;;  %1809 = vmatpush1.bf16.msra.mxu0 %v2722_v30  ;;  %v1036_v30 = vrot.slane %v1035_v11, 4  ;;  %v1693_v61 = vshll.u32 %v3320_v53, 16  ;;  %v1697_v3 = vshrl.u32 %v3320_v53, 16  ;;  %v2734_v11 = vld [vmem:[%s3524_s1 + $0x1c0] ss:$8 sps:$4 sm:$0xff]  }
  0x5c   : > { %2454 = vmatprep.subr.msk.bf16.mxu0 %vm358_vm0, %v2453_v31  ;;  %v1069_v29 = vor.u32 %v1068_v19, %v1064_v13  ;;  %v1074_v27 = vrot.slane %v1072_v14, 5  ;;  %v1658_v45 = vsel %vm2881_vm4, %v1653_v60, %v1657_v50  ;;  %v2432_v14 = vld [vmem:[%s2838_s16 + $0x3c] sm:$0xf]  ;;  %v3355_v50 = vld [vmem:[%s2838_s16 + $0x40] sm:$0xf] }
  0x5d   : > { %v1041_v38 = vsel %vm2881_vm4, %v1036_v30, %v3061_v26  ;;  %v1648_v26 = vsel %vm2881_vm4, %v1643_v22, %v3244_v35  ;;  %v874_v35 = vsel %vm358_vm0, %v2316_v49, 0  ;;  %v2738_v22 = vld [vmem:[%s3524_s1 + $0x1d0] ss:$8 sps:$4 sm:$0xff]   ;;  %v1711_v30 = vshll.u32 %v2432_v14, 16 }
  0x5e   : > { %v3307_v48 = vcombine.low %v1041_v38, %v1051_v20  ;;  %v1666_v20 = vor.u32 %v1665_v36, %v1662_v24  ;;  %v1721_v60 = vshrl.u32 %v3355_v50, 16  ;;  %v2745_v24 = vld [vmem:[%s3524_s1 + $0x1e4] ss:$8 sps:$4 sm:$0xff]  }
  0x5f   : > { %1811 = vmatpush1.bf16.msra.mxu0 %v1799_v33 }
  0x60   : > { %2287 = vmatmul.mubr.msk.bf16.vlgmr.msra.gmra.mrb[0].mxu1 %vm345_vm3, %v2274_v21  ;;  %2010 = vmatprep.subr.bf16.mxu0 %v2736_v58  ;;  %v1058_v21 = vrot.slane %v1056_v39, 5  ;;  %v2728_v58 = vld [vmem:[%s2838_s16 + $0x3c] sm:$0xff]   ;;  %v2442_v39 = vcombine.low %v1648_v26, %v1658_v45  ;;  %v1667_v7 = vrot.slane %v1666_v20, 4  ;;  %v1723_v49 = vrot.slane %v1721_v60, 4  ;;  %v2742_v45 = vld [vmem:[%s2838_s16 + $0xc] sm:$0xff]  }
  0x61   : > { %880 = vmatpush1.bf16.msra.mxu1 %v2718_v44  ;;  %742 = vmatprep.mubr.bf16.mxu1 %v2765_v2  ;;  %v1675_v44 = vrot.slane %v1673_v15, 4 }
  0x62   : > { %2421 = vmatmul.mubr.msk.bf16.gmra.mrb[8].mxu0 %vm345_vm3, %v2721_v56  ;;  %881 = vmatprep.subr.bf16.mxu1 %v2727_v63  ;;  %v1059_v31 = vor.u32 %v1058_v21, %v1055_v9  ;;  %v1070_v56 = vrot.slane %v1069_v29, 4  ;;  %v2429_v63 = vld [vmem:[%s2838_s16 + $0x30] sm:$0xf]  ;;  %v3341_v9 = vld [vmem:[%s2838_s16 + $0x38] sm:$0x1]  ;;  %v1695_v21 = vrot.slane %v1693_v61, 5  ;;  %v1672_v19 = vsel %vm2881_vm4, %v1667_v7, %v3293_v25 }
  0x63   : > { %1596 = vmatprep.mubr.bf16.mxu0 %v2765_v2  ;;  %v1684_v57 = vshrl.u32 %v2429_v63, 16  ;;  %v1687_v54 = vshll.u32 %v2429_v63, 16  ;;  %v1703_v15 = vshll.u32 %v3341_v9, 16  ;;  %v2473_v29 = vld [vmem:[%s3524_s1 + $0x1f0] sm:$0x77]  ;;  %v2746_v7 = vld [vmem:[%s2838_s16 + $0x18] sm:$0xff]  }
  0x64   : > { %v1060_v33 = vrot.slane %v1059_v31, 4  ;;  %v1075_v42 = vsel %vm2881_vm4, %v1070_v56, %v1074_v27  ;;  %v1717_v31 = vshll.u32 %v3355_v50, 16  ;;  %v3385_v56 = vld [vmem:[%s2838_s16 + $0x44] sm:$0x1]  ;;  %v2485_v63 = vcombine.high %v2473_v29, %v2473_v29  ;;  %v2753_v61 = vld [vmem:[%s3524_s1 + $0xf4] ss:$8 sps:$4 sm:$0xff]  }
  0x65   : > { %882 = vmatpush1.bf16.msra.mxu1 %v2725_v8  ;;  %v1686_v12 = vrot.slane %v1684_v57, 4  ;;  %v1689_v8 = vrot.slane %v1687_v54, 5  ;;  %v1705_v36 = vrot.slane %v1703_v15, 5  ;;  %v2752_v54 = vld [vmem:[%s3524_s1 + $0xe0] ss:$8 sps:$4 sm:$0xff]   ;;  %v1928_v60 = vrot.slane %v3341_v9, 5 }
  0x66   : > { %883 = vmatprep.subr.bf16.mxu1 %v2733_v16  ;;  %v1065_v52 = vsel %vm2881_vm4, %v1060_v33, %v1064_v13  ;;  %v1699_v13 = vrot.slane %v1697_v3, 4  ;;  %v2740_v16 = vld [vmem:[%s3524_s1 + $0x1d4] ss:$8 sps:$4 sm:$0xff]   ;;  %v2743_v33 = vld [vmem:[%s3524_s1 + $0x1e0] ss:$8 sps:$4 sm:$0xff]  }
  0x67   : > { %v3328_v34 = vcombine.low %v1065_v52, %v1075_v42  ;;  %v1690_v47 = vor.u32 %v1689_v8, %v1686_v12  ;;  %v2484_v52 = vcombine.low %v2473_v29, %v2473_v29  ;;  %v2755_v8 = vld [vmem:[%s3524_s1 + $0x104] ss:$8 sps:$4 sm:$0xff]   ;;  %v1932_v29 = vrot.slane %v3355_v50, 5 }
  0x68   : > { %2288 = vmatmul.mubr.msk.bf16.gmra.mrb[4].mxu1 %vm345_vm3, %v2275_v43  ;;  %v1676_v43 = vor.u32 %v1675_v44, %v3293_v25  ;;  %v1719_v44 = vrot.slane %v1717_v31, 5  ;;  %v2460_v15 = vld [vmem:[%s2838_s16 + $0x24] sm:$0xe] }
  0x69   : > { %752 = vmatprep.mubr.bf16.mxu1 %v2765_v2  ;;  %884 = vmatpush1.bf16.msra.mxu1 %v2731_v0  ;;  %v1691_v0 = vrot.slane %v1690_v47, 4  ;;  %v2005_v20 = vsel %vm358_vm0, %v2484_v52, 0  ;;  %v1934_v9 = vrot.slane %v1932_v29, 4 }
  0x6a   : > { %2422 = vmatmul.mubr.msk.bf16.gmra.mrb[12].mxu0 %vm345_vm3, %v2728_v58  ;;  %2318 = vmatprep.subr.msk.bf16.mxu1 %vm358_vm0, %v2317_v23  ;;  %v1677_v51 = vrot.slane %v1676_v43, 4  ;;  %v1700_v23 = vor.u32 %v1699_v13, %v1695_v21  ;;  %v1713_v58 = vrot.slane %v1711_v30, 5  ;;  %v1724_v4 = vor.u32 %v1723_v49, %v1719_v44 }
  0x6b   : > { %1836 = vmatprep.mubr.bf16.mxu0 %v2765_v2  ;;  %v1696_v26 = vsel %vm2881_vm4, %v1691_v0, %v1695_v21  ;;  %v1914_v21 = vrot.slane %v3248_v40, 5 }
  0x6c   : > { %v1682_v46 = vsel %vm2881_vm4, %v1677_v51, %v1681_v6  ;;  %v1701_v38 = vrot.slane %v1700_v23, 4  ;;  %v1911_v6 = vrot.slane %v3224_v10, 5  ;;  %v2459_v51 = vld [vmem:[%s2838_s16 + $0x18] sm:$0xe]  ;;  %v2756_v10 = vld [vmem:[%s3524_s1 + $0x100] ss:$8 sps:$4 sm:$0xff]  }
  0x6d   : > { %886 = vmatpush1.bf16.msra.mxu1 %v874_v35  ;;  %v2443_v27 = vcombine.low %v1672_v19, %v1682_v46  ;;  %v1725_v35 = vrot.slane %v1724_v4, 4  ;;  %v2464_v46 = vrot.slane %v2460_v15, 9  ;;  %v2461_v23 = vld [vmem:[%s2838_s16 + $0x30] sm:$0xe] }
  0x6e   : > { %2494 = vmatprep.subr.bf16.mxu1 %v2751_v55  ;;  %v1706_v42 = vsel %vm2881_vm4, %v1701_v38, %v1705_v36  ;;  %v2754_v55 = vld [vmem:[%s3524_s1 + $0xf0] ss:$8 sps:$4 sm:$0xff]   ;;  %v1913_v41 = vrot.slane %v1911_v6, 4  ;;  %v2465_v30 = vrot.slane %v2461_v23, 9 }
  0x6f   : > { %v2444_v28 = vcombine.low %v1696_v26, %v1706_v42 }
  0x70   : > { %2289 = vmatmul.mubr.msk.bf16.gmra.mrb[8].mxu1 %vm345_vm3, %v2276_v62  ;;  %v1708_v62 = vshrl.u32 %v2432_v14, 16  ;;  %v1915_v40 = vsel %vm2994_vm6, %v1913_v41, %v1914_v21  ;;  %v1918_v14 = vrot.slane %v3261_v37, 5 }
  0x71   : > { %762 = vmatprep.mubr.bf16.mxu1 %v2765_v2 }
  0x72   : > { %2455 = vmatmul.mubr.msk.bf16.vlgmr.msra.gmra.mrb[0].mxu0 %vm345_vm3, %v2442_v39  ;;  %v1710_v25 = vrot.slane %v1708_v62, 4  ;;  %v1920_v47 = vrot.slane %v1918_v14, 4  ;;  %v1919_v37 = vsel %vm2994_vm6, %v2464_v46, %v1918_v14  ;;  %v1925_v62 = vrot.slane %v3320_v53, 5 }
  0x73   : > { %2011 = vmatpush1.bf16.msra.mxu0 %v2734_v11  ;;  %1846 = vmatprep.mubr.bf16.mxu0 %v2765_v2  ;;  %v2463_v11 = vrot.slane %v2459_v51, 9 }
  0x74   : > { %2012 = vmatprep.subr.bf16.mxu0 %v2740_v16  ;;  %v1714_v1 = vor.u32 %v1713_v58, %v1710_v25  ;;  %v2749_v16 = vld [vmem:[%s2838_s16 + $0x24] sm:$0xff]   ;;  %v1927_v31 = vrot.slane %v1925_v62, 4  ;;  %v1935_v25 = vrot.slane %v3385_v56, 5 }
  0x75   : > { %v1912_v13 = vsel %vm2994_vm6, %v2463_v11, %v1911_v6 }
  0x76   : > { %v1715_v43 = vrot.slane %v1714_v1, 4  ;;  %v2474_v19 = vcombine.low %v1912_v13, %v1915_v40  ;;  %v1929_v53 = vsel %vm2994_vm6, %v1927_v31, %v1928_v60  ;;  %v1936_v50 = vsel %vm2994_vm6, %v1934_v9, %v1935_v25 }
  0x77   : > { %2013 = vmatpush1.bf16.msra.mxu0 %v2738_v22  ;;  %v2750_v22 = vld [vmem:[%s2838_s16 + $0x30] sm:$0xff]  }
  0x78   : > { %2290 = vmatmul.mubr.msk.bf16.gmra.mrb[12].mxu1 %vm345_vm3, %v2277_v5  ;;  %2014 = vmatprep.subr.bf16.mxu0 %v2745_v24  ;;  %v1727_v5 = vshll.u32 %v3385_v56, 16  ;;  %v1720_v3 = vsel %vm2881_vm4, %v1715_v43, %v1719_v44  ;;  %v1926_v24 = vsel %vm2994_vm6, %v2465_v30, %v1925_v62  ;;  %v2101_v56 = vlaneseq }
  0x79   : > { %911 = vmatprep.mubr.bf16.mxu1 %v2765_v2  ;;  %v2476_v0 = vcombine.low %v1926_v24, %v1929_v53 }
  0x7a   : > { %2456 = vmatmul.mubr.msk.bf16.gmra.mrb[4].mxu0 %vm345_vm3, %v2443_v27  ;;  %v1729_v57 = vrot.slane %v1727_v5, 5  ;;  %v2462_v27 = vld [vmem:[%s2838_s16 + $0x3c] sm:$0xe]  ;;  %v2102_v52 = vshrl.u32 %v2101_v56, 7 }
  0x7b   : > { %1856 = vmatprep.mubr.bf16.mxu0 %v2765_v2  ;;  %2015 = vmatpush1.bf16.msra.mxu0 %v2743_v33  ;;  %v2466_v36 = vrot.slane %v2462_v27, 9 }
  0x7c   : > { %2486 = vmatprep.subr.msk.bf16.mxu0 %vm358_vm0, %v2485_v63  ;;  %v1730_v39 = vsel %vm2881_vm4, %v1725_v35, %v1729_v57  ;;  %v2103_v1 = vsub.s32 0, %v2102_v52  ;;  %v2107_v4 = vsub.s32 1, %v2102_v52 }
  0x7d   : > { %v2445_v12 = vcombine.low %v1720_v3, %v1730_v39  ;;  %v1933_v38 = vsel %vm2994_vm6, %v2466_v36, %v1932_v29 }
  0x7e   : > { %v2477_v33 = vcombine.low %v1933_v38, %v1936_v50 }
  0x7f   : > { %2017 = vmatpush1.bf16.msra.mxu0 %v2005_v20 }
  0x80   : > { %2319 = vmatmul.mubr.msk.bf16.vlgmr.msra.gmra.mrb[0].mxu1 %vm345_vm3, %v2742_v45  ;;  %v3480_v45 = vrot.slane %v2099_v18, %v2107_v4 }
  0x81   : > { %2498 = vmatpush1.bf16.msra.mxu1 %v2752_v54  ;;  %921 = vmatprep.mubr.bf16.mxu1 %v2765_v2 }
  0x82   : > { %2457 = vmatmul.mubr.msk.bf16.gmra.mrb[8].mxu0 %vm345_vm3, %v2444_v28  ;;  %2495 = vmatprep.subr.bf16.mxu1 %v2753_v61 }
  0x83   : > { %1866 = vmatprep.mubr.bf16.mxu0 %v2765_v2 }
  0x85   : > { %2499 = vmatpush1.bf16.msra.mxu1 %v2754_v55 }
  0x86   : > { %2496 = vmatprep.subr.bf16.mxu1 %v2755_v8 }
  0x88   : > { %2320 = vmatmul.mubr.msk.bf16.gmra.mrb[4].mxu1 %vm345_vm3, %v2746_v7 }
  0x89   : > { %931 = vmatprep.mubr.bf16.mxu1 %v2765_v2  ;;  %2500 = vmatpush1.bf16.msra.mxu1 %v2756_v10 }
  0x8a   : > { %2458 = vmatmul.mubr.msk.bf16.gmra.mrb[12].mxu0 %vm345_vm3, %v2445_v12  ;;  %2497 = vmatprep.subr.msk.bf16.mxu1 %vm358_vm0, %v2849_v17  ;;  %v1921_v17 = vrot.slane %v3300_v59, 5 }
  0x8b   : > { %2042 = vmatprep.mubr.bf16.mxu0 %v2765_v2 }
  0x8d   : > { %2501 = vmatpush1.bf16.msra.mxu1 %v2870_v32  ;;  %v1922_v32 = vsel %vm2994_vm6, %v1920_v47, %v1921_v17 }
  0x8e   : > { %v2475_v59 = vcombine.low %v1919_v37, %v1922_v32 }
  0x90   : > { %2321 = vmatmul.mubr.msk.bf16.gmra.mrb[8].mxu1 %vm345_vm3, %v2749_v16 }
  0x91   : > { %941 = vmatprep.mubr.bf16.mxu1 %v2765_v2 }
  0x92   : > { %2487 = vmatmul.mubr.msk.bf16.vlgmr.msra.gmra.mrb[0].mxu0 %vm345_vm3, %v2474_v19 }
  0x93   : > { %2052 = vmatprep.mubr.bf16.mxu0 %v2765_v2 }
  0x98   : > { %2322 = vmatmul.mubr.msk.bf16.gmra.mrb[12].mxu1 %vm345_vm3, %v2750_v22 }
  0x99   : > { %1201 = vmatprep.mubr.bf16.mxu1 %v2765_v2 }
  0x9a   : > { %2488 = vmatmul.mubr.msk.bf16.gmra.mrb[4].mxu0 %vm345_vm3, %v2475_v59 }
  0x9b   : > { %2062 = vmatprep.mubr.bf16.mxu0 %v2765_v2 }
  0xa0   : > { %2357 = vmatmul.mubr.msk.bf16.vlgmr.msra.gmra.mrb[8].mxu1 %vm345_vm3, %v3307_v48 }
  0xa1   : > { %1211 = vmatprep.mubr.bf16.mxu1 %v2765_v2 }
  0xa2   : > { %2489 = vmatmul.mubr.msk.bf16.gmra.mrb[8].mxu0 %vm345_vm3, %v2476_v0 }
  0xa3   : > { %2072 = vmatprep.mubr.bf16.mxu0 %v2765_v2 }
  0xa8   : > { %2358 = vmatmul.mubr.msk.bf16.gmra.mrb[12].mxu1 %vm345_vm3, %v3328_v34  ;;  %v3478_v34 = vrot.slane %v2099_v18, %v2103_v1 }
  0xaa   : > { %2490 = vmatmul.mubr.msk.bf16.gmra.mrb[12].mxu0 %vm345_vm3, %v2477_v33 }
 0x153   : > { %v913_v58 = vpop.f32.mrb[0].mxu1 }
 0x154   : > { %v915_v48 = vpop.f32.mrb[1].mxu1 }
 0x155   : > { %v917_v44 = vpop.f32.mrb[2].mxu1 }
 0x156   : > { %v919_v49 = vpop.f32.mrb[3].mxu1 }
 0x15b   : > { %v923_v63 = vpop.f32.mrb[4].mxu1 }
 0x15c   : > { %v925_v2 = vpop.f32.mrb[5].mxu1 }
 0x15d   : > { %v927_v26 = vpop.f32.mrb[6].mxu1 }
 0x15e   : > { %v929_v42 = vpop.f32.mrb[7].mxu1 }
 0x165   : > { %v2044_v5 = vpop.f32.mrb[0].mxu0 }
 0x166   : > { %v2502_v20 = vadd.f32 %v2044_v5, %v913_v58  ;;  %v2046_v28 = vpop.f32.mrb[1].mxu0 }
 0x167   : > { %v2503_v43 = vadd.f32 %v2046_v28, %v915_v48  ;;  %v2048_v35 = vpop.f32.mrb[2].mxu0 }
 0x168   : > { %v2111_v57 = vadd.f32 %v2502_v20, %v3478_v34  ;;  %v2504_v54 = vadd.f32 %v2048_v35, %v917_v44  ;;  %v2050_v61 = vpop.f32.mrb[3].mxu0 }
 0x169   : > { %v2112_v3 = vadd.f32 %v2503_v43, %v3480_v45  ;;  %v2505_v39 = vadd.f32 %v2050_v61, %v919_v49 }
 0x16a   : > { %v2127_v6 = vmax.f32 %v2111_v57, 0.0  ;;  %v2113_v7 = vadd.f32 %v2504_v54, %v3478_v34 }
 0x16b   : > { %v2128_v51 = vmax.f32 %v2112_v3, 0.0  ;;  %v2114_v55 = vadd.f32 %v2505_v39, %v3480_v45 }
 0x16c   : > { %2143 = vst [vmem:[%s3487_s14] sm:$0xff] %v2127_v6  ;;  %v2129_v12 = vmax.f32 %v2113_v7, 0.0 }
 0x16d   : > { %2144 = vst [vmem:[%s3487_s14 + $0x8] sm:$0xff] %v2128_v51  ;;  %v2130_v8 = vmax.f32 %v2114_v55, 0.0  ;;  %v2054_v11 = vpop.f32.mrb[4].mxu0 }
 0x16e   : > { %2145 = vst [vmem:[%s3487_s14 + $0x10] sm:$0xff] %v2129_v12  ;;  %v2506_v41 = vadd.f32 %v2054_v11, %v923_v63  ;;  %v2056_v21 = vpop.f32.mrb[5].mxu0 }
 0x16f   : > { %2146 = vst [vmem:[%s3487_s14 + $0x18] sm:$0xff] %v2130_v8  ;;  %v2507_v10 = vadd.f32 %v2056_v21, %v925_v2  ;;  %v2058_v13 = vpop.f32.mrb[6].mxu0 }
 0x170   : > { %v2115_v40 = vadd.f32 %v2506_v41, %v3478_v34  ;;  %v2508_v14 = vadd.f32 %v2058_v13, %v927_v26  ;;  %v2060_v16 = vpop.f32.mrb[7].mxu0 }
 0x171   : > { %v2116_v15 = vadd.f32 %v2507_v10, %v3480_v45  ;;  %v2509_v19 = vadd.f32 %v2060_v16, %v929_v42 }
 0x172   : > { %v2131_v46 = vmax.f32 %v2115_v40, 0.0  ;;  %v2117_v47 = vadd.f32 %v2508_v14, %v3478_v34 }
 0x173   : > { %v2132_v17 = vmax.f32 %v2116_v15, 0.0  ;;  %v2118_v37 = vadd.f32 %v2509_v19, %v3480_v45  ;;  %v1203_v32 = vpop.f32.mrb[8].mxu1 }
 0x174   : > { %2147 = vst [vmem:[%s3487_s14 + $0x20] sm:$0xff] %v2131_v46  ;;  %v2133_v62 = vmax.f32 %v2117_v47, 0.0  ;;  %v1205_v22 = vpop.f32.mrb[9].mxu1 }
 0x175   : > { %2148 = vst [vmem:[%s3487_s14 + $0x28] sm:$0xff] %v2132_v17  ;;  %v2134_v23 = vmax.f32 %v2118_v37, 0.0  ;;  %v2064_v59 = vpop.f32.mrb[8].mxu0  ;;  %v1207_v30 = vpop.f32.mrb[10].mxu1 }
 0x176   : > { %2149 = vst [vmem:[%s3487_s14 + $0x30] sm:$0xff] %v2133_v62  ;;  %v2510_v31 = vadd.f32 %v2064_v59, %v1203_v32  ;;  %v2066_v60 = vpop.f32.mrb[9].mxu0  ;;  %v1209_v24 = vpop.f32.mrb[11].mxu1 }
 0x177   : > { %2150 = vst [vmem:[%s3487_s14 + $0x38] sm:$0xff] %v2134_v23  ;;  %v2511_v53 = vadd.f32 %v2066_v60, %v1205_v22  ;;  %v2068_v29 = vpop.f32.mrb[10].mxu0 }
 0x178   : > { %v2119_v27 = vadd.f32 %v2510_v31, %v3478_v34  ;;  %v2512_v0 = vadd.f32 %v2068_v29, %v1207_v30  ;;  %v2070_v36 = vpop.f32.mrb[11].mxu0 }
 0x179   : > { %v2120_v9 = vadd.f32 %v2511_v53, %v3480_v45  ;;  %v2513_v25 = vadd.f32 %v2070_v36, %v1209_v24 }
 0x17a   : > { %v2135_v38 = vmax.f32 %v2119_v27, 0.0  ;;  %v2121_v50 = vadd.f32 %v2512_v0, %v3478_v34 }
 0x17b   : > { %v2136_v33 = vmax.f32 %v2120_v9, 0.0  ;;  %v2122_v58 = vadd.f32 %v2513_v25, %v3480_v45  ;;  %v1213_v48 = vpop.f32.mrb[12].mxu1 }
 0x17c   : > { %2151 = vst [vmem:[%s3487_s14 + $0x40] sm:$0xff] %v2135_v38  ;;  %v2137_v44 = vmax.f32 %v2121_v50, 0.0  ;;  %v1215_v49 = vpop.f32.mrb[13].mxu1 }
 0x17d   : > { %2152 = vst [vmem:[%s3487_s14 + $0x48] sm:$0xff] %v2136_v33  ;;  %v2138_v56 = vmax.f32 %v2122_v58, 0.0  ;;  %v2074_v63 = vpop.f32.mrb[12].mxu0  ;;  %v1217_v2 = vpop.f32.mrb[14].mxu1 }
 0x17e   : > { %2153 = vst [vmem:[%s3487_s14 + $0x50] sm:$0xff] %v2137_v44  ;;  %v2514_v52 = vadd.f32 %v2074_v63, %v1213_v48  ;;  %v2076_v26 = vpop.f32.mrb[13].mxu0  ;;  %v1219_v42 = vpop.f32.mrb[15].mxu1 }
 0x17f   : > { %2154 = vst [vmem:[%s3487_s14 + $0x58] sm:$0xff] %v2138_v56  ;;  %v2515_v1 = vadd.f32 %v2076_v26, %v1215_v49  ;;  %v2078_v18 = vpop.f32.mrb[14].mxu0 }
 0x180   : > { %v2123_v4 = vadd.f32 %v2514_v52, %v3478_v34  ;;  %v2516_v5 = vadd.f32 %v2078_v18, %v1217_v2  ;;  %v2080_v20 = vpop.f32.mrb[15].mxu0 }
 0x181   : > { %v2124_v28 = vadd.f32 %v2515_v1, %v3480_v45  ;;  %v2517_v43 = vadd.f32 %v2080_v20, %v1219_v42 }
 0x182   : > { %v2139_v35 = vmax.f32 %v2123_v4, 0.0  ;;  %v2125_v57 = vadd.f32 %v2516_v5, %v3478_v34 }
 0x183   : > { %v2140_v54 = vmax.f32 %v2124_v28, 0.0  ;;  %v2126_v61 = vadd.f32 %v2517_v43, %v3480_v45 }
 0x184   : > { %2155 = vst [vmem:[%s3487_s14 + $0x60] sm:$0xff] %v2139_v35  ;;  %v2141_v3 = vmax.f32 %v2125_v57, 0.0 }
 0x185   : > { %2156 = vst [vmem:[%s3487_s14 + $0x68] sm:$0xff] %v2140_v54  ;;  %v2142_v39 = vmax.f32 %v2126_v61, 0.0 }
 0x186   : > { %2157 = vst [vmem:[%s3487_s14 + $0x70] sm:$0xff] %v2141_v3 }
 0x187   : > { %2158 = vst [vmem:[%s3487_s14 + $0x78] sm:$0xff] %v2142_v39 }
 0x188 PF: > { %s13_s12 = sadd.s32 1, %s2763_s12  }
 0x189   : > { %p10_p4 = scmp.ge.s32.totalorder %s13_s12, 4  }
 0x18b   :  { %12 = sbr.rel (!%p10_p4) target bundleno = 1 (0x1), region = 72 }

// kernel: tile.23
= control target key start
LH: loop header
LB: loop body
LE: loop exit
PB: predicated region body
PF: predicated region fallthrough
CT: control target
= control target key end

     0   :  { %s22_s0 = inlined_call_operand.vmem [shape: f32[32], index: 0, kind: input, shape index: {}]   ;;  %s23_s1 = inlined_call_operand.vmem [shape: f32[8,32], index: 1, kind: output, shape index: {}]  }
   0x1   :  { %v4_v0 = vld [vmem:[%s22_s0] ss:$0 sm:$0xff] }
   0x2   :  { %5 = vst [vmem:[%s23_s1] sm:$0xff] %v4_v0 }

// kernel: tile.24
= control target key start
LH: loop header
LB: loop body
LE: loop exit
PB: predicated region body
PF: predicated region fallthrough
CT: control target
= control target key end

     0   :  { %s7_s6 = smov 3  ;;  %s14_s9 = smov 3  ;;  %vm4_vm0 = vcmask 261120   ;;  %vm11_vm1 = vcmask 1048320   ;;  %vm18_vm2 = vcmask 785920   ;;  %vm25_vm3 = vcmask 523520   ;;  %s76_s0 = inlined_call_operand.vmem [shape: f32[8,32], index: 0, kind: input, shape index: {}]   ;;  %s77_s1 = inlined_call_operand.vmem [shape: f32[1,256], index: 1, kind: output, shape index: {}]  }
   0x1   :  { %v38_v0 = vld [vmem:[%s76_s0 + $0x3] ss:$4 sm:%s7_s6]   ;;  %s45_s10 = smov 96   ;;  %s21_s11 = smov 3  ;;  %v39_v1 = vld [vmem:[%s76_s0 + $0x2] ss:$4 sm:%s14_s9]  }
   0x2   :  { %9 = vrot.lane.b32.xlu0 %v38_v0, %s45_s10  ;;  %v40_v2 = vld [vmem:[%s76_s0 + $0x1] ss:$4 sm:%s21_s11]   ;;  %s2_s16 = smov 3  ;;  %s46_s17 = smov 32  }
   0x3   :  { %23 = vrot.lane.b32.xlu1 %v40_v2, %s46_s17  ;;  %v3_v3 = vld [vmem:[%s76_s0] ss:$4 sm:%s2_s16]   ;;  %s47_s0 = smov 64  }
   0x4   :  { %5 = vst.msk [vmem:[#allocation0] ss:$8 sm:$0x3] %vm4_vm0, %v3_v3  }
   0x6   :  { %16 = vrot.lane.b32.xlu0 %v39_v1, %s47_s0 }
  0x74   :  { %v10_v4 = vpop.permute.xlu0 %9  }
  0x75   :  { %12 = vst.msk [vmem:[#allocation0] ss:$8 sm:$0x3] %vm11_vm1, %v10_v4   ;;  %v24_v5 = vpop.permute.xlu1 %23  }
  0x78   :  { %v17_v6 = vpop.permute.xlu0 %16  }
  0x79   :  { %19 = vst.msk [vmem:[#allocation0] ss:$8 sm:$0x3] %vm18_vm2, %v17_v6  }
  0x7a   :  { %26 = vst.msk [vmem:[#allocation0] ss:$8 sm:$0x3] %vm25_vm3, %v24_v5  }
  0x81   :  { %v30_v7 = vld [vmem:[#allocation0] sm:$0x1]  ;;  %v34_v8 = vld [vmem:[#allocation0 + $0x8] sm:$0x1] }
  0x82   :  { %32 = vst [vmem:[%s77_s1] sm:$0x1] %v30_v7  ;;  %41 = vst [vmem:[%s77_s1 + $0x1] sm:$0x1] %v34_v8 }

// kernel: encoder3d_forward.4
= control target key start
LH: loop header
LB: loop body
LE: loop exit
PB: predicated region body
PF: predicated region fallthrough
CT: control target
= control target key end

     0   :  { %s5430_s12 = smov 0   ;;  %s6758_s0 = inlined_call_operand.vmem [shape: bf16[2,6,2,9,288], index: 0, kind: input, shape index: {}]   ;;  %s6759_s1 = inlined_call_operand.vmem [shape: bf16[9,288,256], index: 1, kind: input, shape index: {}]   ;;  %s6760_s2 = inlined_call_operand.vmem [shape: f32[1,256], index: 2, kind: input, shape index: {}]   ;;  %s6761_s3 = inlined_call_operand.vmem [shape: f32[2,32,256], index: 3, kind: output, shape index: {}]  }
   0x1 LB: > { %s3966_s13 = sadd.s32 4294967295, %s5407_s12   ;;  %p3970_p0 = scmp.ge.s32.totalorder %s5407_s12, 1  ;;  %s5407_s12 = sphi %s5430_s12, %s13_s12  }
   0x2   : > { %p137_p1 = scmp.lt.s32.totalorder %s5407_s12, 3 }
   0x4   : > { %p138_p2 = pnand %p3970_p0, %p137_p1 }
   0x5   : > { %v4879_v0 = vld [vmem:[%s6759_s1 + $0x124] ss:$8 sps:$4 sm:$0xff] (!%p138_p2)   ;;  %p161_p3 = scmp.lt.s32.totalorder (!%p138_p2), %s3966_s13, 1  ;;  %v4881_v1 = vld [vmem:[%s6759_s1 + $0x120] ss:$8 sps:$4 sm:$0xff] (!%p138_p2)   ;;  %v5409_v2 = vmov (!%p138_p2), 0  }
   0x6   : > { %141 = sbr.rel (%p138_p2) target bundleno = 612 (0x264), region = 32  ;;  %1368 = vmatprep.mubr.bf16.mxu0 (!%p138_p2), %v5409_v2  ;;  %479 = vmatprep.subr.bf16.mxu1 (!%p138_p2), %v4879_v0  ;;  %v4882_v3 = vld [vmem:[%s6759_s1 + $0x134] ss:$8 sps:$4 sm:$0xff] (!%p138_p2)   ;;  %v4884_v4 = vld [vmem:[%s6759_s1 + $0x130] ss:$8 sps:$4 sm:$0xff] (!%p138_p2)   ;;  %vm472_vm3 = vcmask (!%p138_p2), 261120  }
   0x7   : > { %480 = vmatpush1.bf16.msra.mxu1 (!%p138_p2), %v4881_v1  ;;  %v4885_v5 = vld [vmem:[%s6759_s1 + $0x144] ss:$8 sps:$4 sm:$0xff] (!%p138_p2)   ;;  %v4890_v7 = vld [vmem:[%s6759_s1 + $0x340] ss:$8 sps:$4 sm:$0xff] (!%p138_p2)   ;;  %vm923_vm0 = vsmask.f32 (!%p138_p2), 3328 }
   0x8   : > { %481 = vmatprep.subr.bf16.mxu1 (!%p138_p2), %v4882_v3  ;;  %v4887_v6 = vld [vmem:[%s6759_s1 + $0x344] ss:$8 sps:$4 sm:$0xff] (!%p138_p2)   ;;  %v4889_v8 = vld [vmem:[%s6759_s1 + $0x140] ss:$8 sps:$4 sm:$0xff] (!%p138_p2)   ;;  %v4893_v9 = vld [vmem:[%s6759_s1 + $0x354] ss:$8 sps:$4 sm:$0xff] (!%p138_p2)  }
   0x9   : > { %1336 = vmatprep.subr.bf16.mxu0 (!%p138_p2), %v4887_v6  ;;  %v4896_v10 = vld [vmem:[%s6759_s1 + $0x350] ss:$8 sps:$4 sm:$0xff] (!%p138_p2)   ;;  %v4891_v11 = vld [vmem:[%s6759_s1 + $0x154] ss:$8 sps:$4 sm:$0xff] (!%p138_p2)   ;;  %vm924_vm1 = vsmask.f32 (!%p138_p2), 7440 }
   0xa   : > { %1337 = vmatpush1.bf16.msra.mxu0 (!%p138_p2), %v4890_v7  ;;  %v4895_v12 = vld [vmem:[%s6759_s1 + $0x150] ss:$8 sps:$4 sm:$0xff] (!%p138_p2)   ;;  %v4897_v21 = vld [vmem:[%s6759_s1 + $0x164] ss:$8 sps:$4 sm:$0xff] (!%p138_p2)   ;;  %vm5495_vm2 = vmor (!%p138_p2), %vm923_vm0, %vm924_vm1 }
   0xb   : > { %482 = vmatpush1.bf16.msra.mxu1 (!%p138_p2), %v4884_v4  ;;  %1338 = vmatprep.subr.bf16.mxu0 (!%p138_p2), %v4893_v9  ;;  %v4901_v27 = vld [vmem:[%s6759_s1 + $0x464] ss:$8 sps:$4 sm:$0xff] (!%p138_p2)   ;;  %v4902_v32 = vld [vmem:[%s6759_s1 + $0x160] ss:$8 sps:$4 sm:$0xff] (!%p138_p2)   ;;  %v4903_v35 = vld [vmem:[%s6759_s1 + $0x174] ss:$8 sps:$4 sm:$0xff] (!%p138_p2)  }
   0xc   : > { %483 = vmatprep.subr.bf16.mxu1 (!%p138_p2), %v4885_v5  ;;  %v4899_v42 = vld [vmem:[%s6759_s1 + $0x460] ss:$8 sps:$4 sm:$0xff] (!%p138_p2)   ;;  %v4905_v52 = vld [vmem:[%s6759_s1 + $0x170] ss:$8 sps:$4 sm:$0xff] (!%p138_p2)   ;;  %v4906_v56 = vld [vmem:[%s6759_s1 + $0x184] ss:$8 sps:$4 sm:$0xff] (!%p138_p2)  }
   0xd   : > { %s6765_s13 = smov (!%p161_p3, %s3966_s13), 1  ;;  %v4910_v60 = vld [vmem:[%s6759_s1 + $0x474] ss:$8 sps:$4 sm:$0xff]   ;;  %v4908_v63 = vld [vmem:[%s6759_s1 + $0x470] ss:$8 sps:$4 sm:$0xff]  }
   0xe   : > { %s4869_s26 = smul.u32 288, %s6765_s13  ;;  %1339 = vmatpush1.bf16.msra.mxu0 %v4896_v10  ;;  %v4911_v1 = vld [vmem:[%s6759_s1 + $0x180] ss:$8 sps:$4 sm:$0xff]   ;;  %v4912_v4 = vld [vmem:[%s6759_s1 + $0x194] ss:$8 sps:$4 sm:$0xff]   ;;  %s4732_s18 = sshll.u32 %s6765_s13, 6 }
   0xf   : > { %484 = vmatpush1.bf16.msra.mxu1 %v4889_v8  ;;  %1712 = vmatprep.subr.bf16.mxu0 %v4901_v27  ;;  %v4920_v5 = vld [vmem:[%s6759_s1 + $0x584] ss:$8 sps:$4 sm:$0xff]   ;;  %v4914_v9 = vld [vmem:[%s6759_s1 + $0x190] ss:$8 sps:$4 sm:$0xff]   ;;  %v4945_v27 = vld [vmem:[%s6759_s1 + $0x1f4] ss:$8 sps:$4 sm:$0xff]   ;;  %s6745_s21 = scalar_lea.vmem %s6761_s3, %s4732_s18 }
  0x10   : > { %s5466_s4 = scalar_lea.vmem %s6758_s0, %s4869_s26  ;;  %485 = vmatprep.subr.bf16.mxu1 %v4891_v11  ;;  %v4915_v10 = vld [vmem:[%s6759_s1 + $0x1a4] ss:$8 sps:$4 sm:$0xff]   ;;  %v4921_v11 = vld [vmem:[%s6759_s1 + $0x1a0] ss:$8 sps:$4 sm:$0xff]  }
  0x11   : > { %v908_v13 = vld [vmem:[%s5466_s4 + $0x8] sm:$0xf]  ;;  %v910_v14 = vld [vmem:[%s5466_s4 + $0x14] sm:$0x1]  ;;  %v912_v15 = vld [vmem:[%s5466_s4 + $0x38] sm:$0xf] }
  0x12   : > { %v914_v16 = vld [vmem:[%s5466_s4 + $0x44] sm:$0x1]  ;;  %v941_v17 = vshrl.u32 %v908_v13, 16  ;;  %v944_v18 = vshll.u32 %v908_v13, 16  ;;  %v950_v19 = vshll.u32 %v910_v14, 16  ;;  %v969_v20 = vshrl.u32 %v912_v15, 16 }
  0x13   : > { %v972_v22 = vshll.u32 %v912_v15, 16  ;;  %v978_v23 = vshll.u32 %v914_v16, 16  ;;  %486 = vmatpush1.bf16.msra.mxu1 %v4895_v12  ;;  %v916_v36 = vld [vmem:[%s5466_s4 + $0x68] sm:$0xf]  ;;  %v918_v38 = vld [vmem:[%s5466_s4 + $0x74] sm:$0x1] }
  0x14   : > { %v943_v24 = vrot.slane %v941_v17, 4  ;;  %v946_v25 = vrot.slane %v944_v18, 5  ;;  %v971_v26 = vrot.slane %v969_v20, 4  ;;  %v952_v31 = vrot.slane %v950_v19, 5  ;;  %487 = vmatprep.subr.bf16.mxu1 %v4897_v21  ;;  %v920_v39 = vld [vmem:[%s5466_s4 + $0x98] sm:$0xf] }
  0x15   : > { %v974_v28 = vrot.slane %v972_v22, 5  ;;  %v980_v34 = vrot.slane %v978_v23, 5  ;;  %v997_v40 = vshrl.u32 %v916_v36, 16  ;;  %v922_v43 = vld [vmem:[%s5466_s4 + $0xa4] sm:$0x1]  ;;  %v1000_v44 = vshll.u32 %v916_v36, 16 }
  0x16   : > { %v947_v30 = vor.u32 %v946_v25, %v943_v24  ;;  %v1006_v45 = vshll.u32 %v918_v38, 16  ;;  %v1025_v46 = vshrl.u32 %v920_v39, 16  ;;  %v1028_v49 = vshll.u32 %v920_v39, 16  ;;  %v4922_v12 = vld [vmem:[%s6759_s1 + $0x1b4] ss:$8 sps:$4 sm:$0xff]  }
  0x17   : > { %v975_v33 = vor.u32 %v974_v28, %v971_v26  ;;  %v999_v48 = vrot.slane %v997_v40, 4  ;;  %v1034_v50 = vshll.u32 %v922_v43, 16  ;;  %488 = vmatpush1.bf16.msra.mxu1 %v4902_v32  ;;  %v1002_v53 = vrot.slane %v1000_v44, 5  ;;  %v4917_v13 = vld [vmem:[%s5466_s4 + $0x38] ss:$48 sps:$4 sm:$0xff]  }
  0x18   : > { %v948_v37 = vrot.slane %v947_v30, 4  ;;  %v1027_v54 = vrot.slane %v1025_v46, 4  ;;  %489 = vmatprep.subr.bf16.mxu1 %v4903_v35  ;;  %v1030_v57 = vrot.slane %v1028_v49, 5  ;;  %v1008_v59 = vrot.slane %v1006_v45, 5  ;;  %v4918_v14 = vld [vmem:[%s6759_s1 + $0x580] ss:$8 sps:$4 sm:$0xff]  }
  0x19   : > { %v976_v41 = vrot.slane %v975_v33, 4  ;;  %v1003_v58 = vor.u32 %v1002_v53, %v999_v48  ;;  %v1036_v62 = vrot.slane %v1034_v50, 5  ;;  %v4924_v15 = vld [vmem:[%s6759_s1 + $0x1b0] ss:$8 sps:$4 sm:$0xff]   ;;  %v4925_v16 = vld [vmem:[%s6759_s1 + $0x1c4] ss:$8 sps:$4 sm:$0xff]  }
  0x1a   : > { %v953_v47 = vsel %vm5495_vm2, %v948_v37, %v952_v31  ;;  %v1031_v61 = vor.u32 %v1030_v57, %v1027_v54  ;;  %v4930_v17 = vld [vmem:[%s6759_s1 + $0x594] ss:$8 sps:$4 sm:$0xff]   ;;  %v4928_v18 = vld [vmem:[%s6759_s1 + $0x590] ss:$8 sps:$4 sm:$0xff]   ;;  %v4931_v19 = vld [vmem:[%s6759_s1 + $0x1c0] ss:$8 sps:$4 sm:$0xff]  }
  0x1b   : > { %v981_v51 = vsel %vm5495_vm2, %v976_v41, %v980_v34  ;;  %490 = vmatpush1.bf16.msra.mxu1 %v4905_v52  ;;  %v1004_v0 = vrot.slane %v1003_v58, 4  ;;  %v4932_v20 = vld [vmem:[%s6759_s1 + $0x1d4] ss:$8 sps:$4 sm:$0xff]   ;;  %v4937_v21 = vld [vmem:[%s6759_s1 + $0x5a4] ss:$8 sps:$4 sm:$0xff]  }
  0x1c   : > { %v4144_v55 = vcombine.low %v953_v47, %v981_v51  ;;  %491 = vmatprep.subr.bf16.mxu1 %v4906_v56  ;;  %v1032_v3 = vrot.slane %v1031_v61, 4  ;;  %v4927_v22 = vld [vmem:[%s5466_s4 + $0x98] ss:$48 sps:$4 sm:$0xff]   ;;  %v4938_v24 = vld [vmem:[%s6759_s1 + $0x1e4] ss:$8 sps:$4 sm:$0xff]   ;;  %v5689_v61 = vld [vmem:[%s5466_s4 + $0x30] sm:$0xff] }
  0x1d   : > { %v1009_v6 = vsel %vm5495_vm2, %v1004_v0, %v1008_v59  ;;  %v4934_v23 = vld [vmem:[%s6759_s1 + $0x1d0] ss:$8 sps:$4 sm:$0xff]   ;;  %v4962_v25 = vld [vmem:[%s5466_s4 + $0x1c] ss:$48 sps:$4 sm:$0xff]   ;;  %v4941_v26 = vld [vmem:[%s6759_s1 + $0x1e0] ss:$8 sps:$4 sm:$0xff]  }
  0x1e   : > { %4184 = vmatmul.mubr.msk.bf16.vlgmr.msra.gmra.mrb[0].mxu0 %vm472_vm3, %v4144_v55  ;;  %v1037_v7 = vsel %vm5495_vm2, %v1032_v3, %v1036_v62  ;;  %511 = vmatprep.mubr.bf16.mxu1 %v4962_v25  ;;  %v4935_v28 = vld [vmem:[%s6759_s1 + $0x5a0] ss:$8 sps:$4 sm:$0xff]   ;;  %v4947_v31 = vld [vmem:[%s6759_s1 + $0x1f0] ss:$8 sps:$4 sm:$0xff]   ;;  %v4944_v32 = vld [vmem:[%s6759_s1 + $0x5b4] ss:$8 sps:$4 sm:$0xff]  }
  0x1f   : > { %1713 = vmatpush1.bf16.msra.mxu0 %v4899_v42  ;;  %1378 = vmatprep.mubr.bf16.mxu0 %v5409_v2  ;;  %v4147_v8 = vcombine.low %v1009_v6, %v1037_v7  ;;  %v4940_v30 = vld [vmem:[%s5466_s4 + $0x50] ss:$48 sps:$4 sm:$0xff]   ;;  %v4951_v33 = vld [vmem:[%s6759_s1 + $0x204] ss:$8 sps:$4 sm:$0xff]   ;;  %v4957_v37 = vld [vmem:[%s6759_s1 + $0x214] ss:$8 sps:$4 sm:$0xff]  }
  0x20   : > { %1714 = vmatprep.subr.bf16.mxu0 %v4910_v60  ;;  %492 = vmatpush1.bf16.msra.mxu1 %v4911_v1  ;;  %v4942_v34 = vld [vmem:[%s6759_s1 + $0x5b0] ss:$8 sps:$4 sm:$0xff]   ;;  %v4953_v35 = vld [vmem:[%s6759_s1 + $0x200] ss:$8 sps:$4 sm:$0xff]   ;;  %v4950_v36 = vld [vmem:[%s6759_s1 + $0x5c4] ss:$8 sps:$4 sm:$0xff]  }
  0x21   : > { %493 = vmatprep.subr.bf16.mxu1 %v4912_v4  ;;  %v4948_v38 = vld [vmem:[%s6759_s1 + $0x5c0] ss:$8 sps:$4 sm:$0xff]   ;;  %v4956_v39 = vld [vmem:[%s6759_s1 + $0x5d4] ss:$8 sps:$4 sm:$0xff]   ;;  %v4959_v40 = vld [vmem:[%s6759_s1 + $0x210] ss:$8 sps:$4 sm:$0xff]  }
  0x22   : > { %v4973_v41 = vld [vmem:[%s6759_s1 + $0x224] ss:$8 sps:$4 sm:$0xff]   ;;  %v4954_v42 = vld [vmem:[%s6759_s1 + $0x5d0] ss:$8 sps:$4 sm:$0xff]   ;;  %v4971_v46 = vld [vmem:[%s6759_s1 + $0x220] ss:$8 sps:$4 sm:$0xff]  }
  0x23   : > { %1715 = vmatpush1.bf16.msra.mxu0 %v4908_v63  ;;  %v4960_v43 = vld [vmem:[%s5466_s4 + $0x18] ss:$48 sps:$4 sm:$0xff]   ;;  %v4965_v44 = vld [vmem:[%s6759_s1 + $0x5e4] ss:$8 sps:$4 sm:$0xff]   ;;  %v4980_v47 = vld [vmem:[%s6759_s1 + $0x234] ss:$8 sps:$4 sm:$0xff]  }
  0x24   : > { %2088 = vmatprep.subr.bf16.mxu0 %v4920_v5  ;;  %494 = vmatpush1.bf16.msra.mxu1 %v4914_v9  ;;  %v4969_v45 = vld [vmem:[%s5466_s4 + $0x7c] ss:$48 sps:$4 sm:$0xff]   ;;  %v4963_v48 = vld [vmem:[%s6759_s1 + $0x5e0] ss:$8 sps:$4 sm:$0xff]   ;;  %v4978_v50 = vld [vmem:[%s6759_s1 + $0x230] ss:$8 sps:$4 sm:$0xff]  }
  0x25   : > { %495 = vmatprep.subr.bf16.mxu1 %v4915_v10  ;;  %v4968_v49 = vld [vmem:[%s6759_s1 + $0x5f4] ss:$8 sps:$4 sm:$0xff]   ;;  %v4986_v51 = vld [vmem:[%s6759_s1 + $0x4] ss:$8 sps:$4 sm:$0xff]   ;;  %v4977_v52 = vld [vmem:[%s5466_s4 + $0x78] ss:$48 sps:$4 sm:$0xff]  }
  0x26   : > { %4185 = vmatmul.mubr.msk.bf16.gmra.mrb[4].mxu0 %vm472_vm3, %v4147_v8  ;;  %v4966_v53 = vld [vmem:[%s6759_s1 + $0x5f0] ss:$8 sps:$4 sm:$0xff]   ;;  %v4976_v54 = vld [vmem:[%s6759_s1 + $0x604] ss:$8 sps:$4 sm:$0xff]   ;;  %v4974_v56 = vld [vmem:[%s6759_s1 + $0x600] ss:$8 sps:$4 sm:$0xff]  }
  0x27   : > { %1744 = vmatprep.mubr.bf16.mxu0 %v5409_v2  ;;  %v5024_v55 = vld [vmem:[%s5466_s4 + $0xb0] ss:$48 sps:$4 sm:$0xff]   ;;  %v4983_v57 = vld [vmem:[%s6759_s1 + $0x614] ss:$8 sps:$4 sm:$0xff]   ;;  %v4989_v63 = vld [vmem:[%s6759_s1 + $0x624] ss:$8 sps:$4 sm:$0xff]  }
  0x28   : > { %496 = vmatpush1.bf16.msra.mxu1 %v4921_v11  ;;  %v4981_v58 = vld [vmem:[%s6759_s1 + $0x610] ss:$8 sps:$4 sm:$0xff]   ;;  %v4984_v59 = vld [vmem:[%s6759_s1] ss:$8 sps:$4 sm:$0xff]   ;;  %v2166_v3 = vshrl.u32 %v5689_v61, 16  ;;  %v2169_v4 = vshll.u32 %v5689_v61, 16 }
  0x29   : > { %497 = vmatprep.subr.bf16.mxu1 %v4922_v12  ;;  %v4990_v60 = vld [vmem:[%s5466_s4 + $0x20] ss:$48 sps:$4 sm:$0xff]   ;;  %v4993_v9 = vld [vmem:[%s6759_s1 + $0x14] ss:$8 sps:$4 sm:$0xff]  }
  0x2a   : > { %v4364_v62 = vld [vmem:[%s5466_s4 + $0x3c] sm:$0x11]  ;;  %v4368_v1 = vld [vmem:[%s5466_s4 + $0x6c] sm:$0x11]  ;;  %v2168_v10 = vrot.slane %v2166_v3, 4  ;;  %v2171_v11 = vrot.slane %v2169_v4, 5 }
  0x2b   : > { %v5696_v0 = vld [vmem:[%s5466_s4 + $0x60] sm:$0xff]  ;;  %v2175_v5 = vshll.u32 %v4364_v62, 16  ;;  %v2203_v8 = vshll.u32 %v4368_v1, 16  ;;  %v4994_v25 = vld [vmem:[%s6759_s1 + $0x630] ss:$8 sps:$4 sm:$0xff]  }
  0x2c   : > { %498 = vmatpush1.bf16.msra.mxu1 %v4924_v15  ;;  %v2194_v6 = vshrl.u32 %v5696_v0, 16  ;;  %v2197_v7 = vshll.u32 %v5696_v0, 16  ;;  %v5025_v1 = vld [vmem:[%s6759_s1 + $0x680] ss:$8 sps:$4 sm:$0xff]   ;;  %v5028_v3 = vld [vmem:[%s6759_s1 + $0x70] ss:$8 sps:$4 sm:$0xff]  }
  0x2d   : > { %499 = vmatprep.subr.bf16.mxu1 %v4925_v16  ;;  %v2177_v15 = vrot.slane %v2175_v5, 5  ;;  %v4987_v16 = vld [vmem:[%s6759_s1 + $0x620] ss:$8 sps:$4 sm:$0xff]  }
  0x2e   : > { %4272 = vmatmul.mubr.msk.bf16.vlgmr.msra.gmra.mrb[8].mxu0 %vm472_vm3, %v4917_v13  ;;  %v2196_v12 = vrot.slane %v2194_v6, 4  ;;  %v2199_v13 = vrot.slane %v2197_v7, 5 }
  0x2f   : > { %2089 = vmatpush1.bf16.msra.mxu0 %v4918_v14  ;;  %1754 = vmatprep.mubr.bf16.mxu0 %v5409_v2  ;;  %v2172_v14 = vor.u32 %v2171_v11, %v2168_v10  ;;  %v5036_v10 = vld [vmem:[%s6759_s1 + $0x84] ss:$8 sps:$4 sm:$0xff]   ;;  %v4367_v11 = vld [vmem:[%s5466_s4 + $0x68] sm:$0xf] }
  0x30   : > { %2090 = vmatprep.subr.bf16.mxu0 %v4930_v17  ;;  %500 = vmatpush1.bf16.msra.mxu1 %v4931_v19  ;;  %v4991_v17 = vld [vmem:[%s6759_s1 + $0x10] ss:$8 sps:$4 sm:$0xff]   ;;  %v2205_v19 = vrot.slane %v2203_v8, 5  ;;  %v5033_v8 = vld [vmem:[%s6759_s1 + $0x694] ss:$8 sps:$4 sm:$0xff]  }
  0x31   : > { %501 = vmatprep.subr.bf16.mxu1 %v4932_v20  ;;  %v4996_v20 = vld [vmem:[%s6759_s1 + $0x634] ss:$8 sps:$4 sm:$0xff]  }
  0x33   : > { %2091 = vmatpush1.bf16.msra.mxu0 %v4928_v18  ;;  %v2200_v18 = vor.u32 %v2199_v13, %v2196_v12 }
  0x34   : > { %2522 = vmatprep.subr.bf16.mxu0 %v4937_v21  ;;  %502 = vmatpush1.bf16.msra.mxu1 %v4934_v23  ;;  %v4999_v21 = vld [vmem:[%s6759_s1 + $0x24] ss:$8 sps:$4 sm:$0xff]  }
  0x35   : > { %503 = vmatprep.subr.bf16.mxu1 %v4938_v24  ;;  %v5721_v23 = vrot.slane %v2200_v18, 4 }
  0x36   : > { %4273 = vmatmul.mubr.msk.bf16.gmra.mrb[12].mxu0 %vm472_vm3, %v4927_v22  ;;  %v5719_v22 = vrot.slane %v2172_v14, 4 }
  0x37   : > { %2120 = vmatprep.mubr.bf16.mxu0 %v5409_v2 }
  0x38   : > { %504 = vmatpush1.bf16.msra.mxu1 %v4941_v26  ;;  %v5727_v24 = vsel %vm5495_vm2, %v5719_v22, %v2177_v15  ;;  %v4997_v26 = vld [vmem:[%s6759_s1 + $0x20] ss:$8 sps:$4 sm:$0xff]  }
  0x39   : > { %505 = vmatprep.subr.bf16.mxu1 %v4945_v27  ;;  %v5738_v27 = vsel %vm5495_vm2, %v5721_v23, %v2205_v19  ;;  %v5034_v19 = vld [vmem:[%s6759_s1 + $0x80] ss:$8 sps:$4 sm:$0xff]  }
  0x3c   : > { %506 = vmatpush1.bf16.msra.mxu1 %v4947_v31  ;;  %v4415_v31 = vcombine.high %v5727_v24, %v5738_v27 }
  0x3d   : > { %507 = vmatprep.subr.bf16.mxu1 %v4951_v33  ;;  %v5003_v33 = vld [vmem:[%s6759_s1 + $0x30] ss:$8 sps:$4 sm:$0xff]  }
  0x3e   : > { %4360 = vmatmul.mubr.msk.bf16.vlgmr.msra.gmra.mrb[16].mxu0 %vm472_vm3, %v4940_v30  ;;  %v5005_v30 = vld [vmem:[%s6759_s1 + $0x34] ss:$8 sps:$4 sm:$0xff]  }
  0x3f   : > { %2523 = vmatpush1.bf16.msra.mxu0 %v4935_v28  ;;  %2130 = vmatprep.mubr.bf16.mxu0 %v5409_v2  ;;  %v5002_v28 = vld [vmem:[%s6759_s1 + $0x644] ss:$8 sps:$4 sm:$0xff]  }
  0x40   : > { %2524 = vmatprep.subr.bf16.mxu0 %v4944_v32  ;;  %508 = vmatpush1.bf16.msra.mxu1 %v4953_v35  ;;  %v5000_v32 = vld [vmem:[%s6759_s1 + $0x640] ss:$8 sps:$4 sm:$0xff]   ;;  %v5011_v35 = vld [vmem:[%s6759_s1 + $0x44] ss:$8 sps:$4 sm:$0xff]  }
  0x41   : > { %509 = vmatprep.subr.bf16.mxu1 %v4957_v37  ;;  %v5764_v37 = vld [vmem:[%s5466_s4 + $0x90] sm:$0xff] }
  0x43   : > { %2525 = vmatpush1.bf16.msra.mxu0 %v4942_v34  ;;  %v5008_v34 = vld [vmem:[%s6759_s1 + $0x654] ss:$8 sps:$4 sm:$0xff]  }
  0x44   : > { %2526 = vmatprep.subr.bf16.mxu0 %v4950_v36  ;;  %510 = vmatpush1.bf16.msra.mxu1 %v4959_v40  ;;  %v5006_v36 = vld [vmem:[%s6759_s1 + $0x650] ss:$8 sps:$4 sm:$0xff]   ;;  %v5014_v40 = vld [vmem:[%s6759_s1 + $0x664] ss:$8 sps:$4 sm:$0xff]  }
  0x45   : > { %532 = vmatprep.subr.bf16.mxu1 %v4973_v41  ;;  %v5017_v41 = vld [vmem:[%s6759_s1 + $0x54] ss:$8 sps:$4 sm:$0xff]  }
  0x46   : > { %4361 = vmatmul.mubr.msk.bf16.gmra.mrb[20].mxu0 %vm472_vm3, %v5024_v55 }
  0x47   : > { %2527 = vmatpush1.bf16.msra.mxu0 %v4948_v38  ;;  %512 = vmatmul.mubr.bf16.vlgmr.msra.gmra.mrb[0].mxu1 %v4960_v43  ;;  %v5767_v38 = vld [vmem:[%s5466_s4 + $0xc0] sm:$0xff]  ;;  %v5015_v43 = vld [vmem:[%s6759_s1 + $0x50] ss:$8 sps:$4 sm:$0xff]  }
  0x48   : > { %2528 = vmatprep.subr.bf16.mxu0 %v4956_v39  ;;  %521 = vmatprep.mubr.bf16.mxu1 %v4969_v45  ;;  %v5009_v39 = vld [vmem:[%s6759_s1 + $0x40] ss:$8 sps:$4 sm:$0xff]   ;;  %v2225_v45 = vshll.u32 %v5764_v37, 16 }
  0x49   : > { %533 = vmatpush1.bf16.msra.mxu1 %v4971_v46  ;;  %2554 = vmatprep.mubr.bf16.mxu0 %v4415_v31  ;;  %v2250_v46 = vshrl.u32 %v5767_v38, 16 }
  0x4a   : > { %534 = vmatprep.subr.bf16.mxu1 %v4980_v47  ;;  %v2253_v47 = vshll.u32 %v5767_v38, 16 }
  0x4b   : > { %2529 = vmatpush1.bf16.msra.mxu0 %v4954_v42  ;;  %v5012_v42 = vld [vmem:[%s6759_s1 + $0x660] ss:$8 sps:$4 sm:$0xff]   ;;  %v2252_v55 = vrot.slane %v2250_v46, 4 }
  0x4c   : > { %2530 = vmatprep.subr.bf16.mxu0 %v4965_v44  ;;  %v2222_v44 = vshrl.u32 %v5764_v37, 16 }
  0x4d   : > { %535 = vmatpush1.bf16.msra.mxu1 %v4978_v50  ;;  %v4372_v50 = vld [vmem:[%s5466_s4 + $0x9c] sm:$0x11] }
  0x4e   : > { %801 = vmatprep.subr.bf16.mxu1 %v4986_v51  ;;  %v5067_v51 = vld [vmem:[%s5466_s4 + $0x80] ss:$48 sps:$4 sm:$0xff]   ;;  %v2231_v62 = vshll.u32 %v4372_v50, 16  ;;  %v5054_v50 = vld [vmem:[%s6759_s1 + $0x6c4] ss:$8 sps:$4 sm:$0xff]  }
  0x4f   : > { %2531 = vmatpush1.bf16.msra.mxu0 %v4963_v48  ;;  %522 = vmatmul.mubr.bf16.gmra.mrb[4].mxu1 %v4977_v52  ;;  %v5020_v48 = vld [vmem:[%s6759_s1 + $0x674] ss:$8 sps:$4 sm:$0xff]   ;;  %v5018_v52 = vld [vmem:[%s6759_s1 + $0x670] ss:$8 sps:$4 sm:$0xff]  }
  0x50   : > { %2532 = vmatprep.subr.bf16.mxu0 %v4968_v49  ;;  %564 = vmatprep.mubr.bf16.mxu1 %v5409_v2  ;;  %v5023_v49 = vld [vmem:[%s6759_s1 + $0x64] ss:$8 sps:$4 sm:$0xff]   ;;  %v2233_v13 = vrot.slane %v2231_v62, 5  ;;  %v5063_v62 = vld [vmem:[%s6759_s1 + $0xd4] ss:$8 sps:$4 sm:$0xff]  }
  0x53   : > { %2533 = vmatpush1.bf16.msra.mxu0 %v4966_v53  ;;  %v2224_v53 = vrot.slane %v2222_v44, 4  ;;  %v5048_v44 = vld [vmem:[%s6759_s1 + $0x6b4] ss:$8 sps:$4 sm:$0xff]  }
  0x54   : > { %2534 = vmatprep.subr.bf16.mxu0 %v4976_v54  ;;  %v2227_v54 = vrot.slane %v2225_v45, 5  ;;  %v5051_v45 = vld [vmem:[%s6759_s1 + $0xb4] ss:$8 sps:$4 sm:$0xff]  }
  0x56   : > { %v2228_v4 = vor.u32 %v2227_v54, %v2224_v53 }
  0x57   : > { %2535 = vmatpush1.bf16.msra.mxu0 %v4974_v56  ;;  %4060 = vmatmul.mubr.msk.bf16.vlgmr.msra.gmra.mrb[0].mxu1 %vm472_vm3, %v4990_v60  ;;  %v2255_v56 = vrot.slane %v2253_v47, 5  ;;  %v5030_v60 = vld [vmem:[%s6759_s1 + $0x74] ss:$8 sps:$4 sm:$0xff]  }
  0x58   : > { %2536 = vmatprep.subr.bf16.mxu0 %v4983_v57  ;;  %802 = vmatpush1.bf16.msra.mxu1 %v4984_v59  ;;  %v5021_v57 = vld [vmem:[%s6759_s1 + $0x60] ss:$8 sps:$4 sm:$0xff]   ;;  %v5027_v59 = vld [vmem:[%s6759_s1 + $0x684] ss:$8 sps:$4 sm:$0xff]   ;;  %v5829_v12 = vrot.slane %v2228_v4, 4 }
  0x59   : > { %803 = vmatprep.subr.bf16.mxu1 %v4993_v9  ;;  %574 = vmatprep.mubr.bf16.mxu1 %v5409_v2  ;;  %v2256_v5 = vor.u32 %v2255_v56, %v2252_v55  ;;  %v4363_v9 = vld [vmem:[%s5466_s4 + $0x38] sm:$0xf]  ;;  %v5060_v4 = vld [vmem:[%s6759_s1 + $0x6d4] ss:$8 sps:$4 sm:$0xff]  }
  0x5a   : > { %v2183_v18 = vshll.u32 %v4363_v9, 16  ;;  %v2234_v31 = vsel %vm5495_vm2, %v5829_v12, %v2233_v13 }
  0x5b   : > { %2537 = vmatpush1.bf16.msra.mxu0 %v4981_v58  ;;  %v4376_v58 = vld [vmem:[%s5466_s4 + $0xcc] sm:$0x11]  ;;  %v2257_v14 = vrot.slane %v2256_v5, 4 }
  0x5c   : > { %2538 = vmatprep.subr.bf16.mxu0 %v4989_v63  ;;  %804 = vmatpush1.bf16.msra.mxu1 %v4991_v17  ;;  %v5811_v63 = vld [vmem:[%s5466_s4] sm:$0xff]  ;;  %v2259_v6 = vshll.u32 %v4376_v58, 16  ;;  %v2180_v17 = vshrl.u32 %v4363_v9, 16  ;;  %v5061_v5 = vld [vmem:[%s6759_s1 + $0xd0] ss:$8 sps:$4 sm:$0xff]  }
  0x5d   : > { %805 = vmatprep.subr.bf16.mxu1 %v4999_v21  ;;  %v4063_v7 = vcombine.high %v5811_v63, %v5689_v61  ;;  %v2211_v21 = vshll.u32 %v4367_v11, 16  ;;  %v5055_v58 = vld [vmem:[%s6759_s1 + $0xc0] ss:$8 sps:$4 sm:$0xff]  }
  0x5e   : > { %v2261_v15 = vrot.slane %v2259_v6, 5  ;;  %v5070_v6 = vld [vmem:[%s6759_s1 + $0xe4] ss:$8 sps:$4 sm:$0xff]   ;;  %v4375_v9 = vld [vmem:[%s5466_s4 + $0xc8] sm:$0xf] }
  0x5f   : > { %2539 = vmatpush1.bf16.msra.mxu0 %v4987_v16  ;;  %4061 = vmatmul.mubr.msk.bf16.gmra.mrb[4].mxu1 %vm472_vm3, %v5067_v51  ;;  %v5031_v16 = vld [vmem:[%s6759_s1 + $0x690] ss:$8 sps:$4 sm:$0xff]  }
  0x60   : > { %2540 = vmatprep.subr.bf16.mxu0 %v4996_v20  ;;  %806 = vmatpush1.bf16.msra.mxu1 %v4997_v26  ;;  %v2208_v20 = vshrl.u32 %v4367_v11, 16  ;;  %v5042_v26 = vld [vmem:[%s6759_s1 + $0x94] ss:$8 sps:$4 sm:$0xff]  }
  0x61   : > { %807 = vmatprep.subr.bf16.mxu1 %v5005_v30  ;;  %833 = vmatprep.mubr.bf16.mxu1 %v4063_v7  ;;  %v5040_v30 = vld [vmem:[%s6759_s1 + $0x90] ss:$8 sps:$4 sm:$0xff]  }
  0x62   : > { %v4371_v7 = vld [vmem:[%s5466_s4 + $0x98] sm:$0xf] }
  0x63   : > { %2541 = vmatpush1.bf16.msra.mxu0 %v4994_v25  ;;  %v5039_v25 = vld [vmem:[%s6759_s1 + $0x6a4] ss:$8 sps:$4 sm:$0xff]   ;;  %v2236_v11 = vshrl.u32 %v4371_v7, 16  ;;  %v2239_v13 = vshll.u32 %v4371_v7, 16  ;;  %v5108_v7 = vld [vmem:[%s6759_s1 + $0x254] ss:$8 sps:$4 sm:$0xff]  }
  0x64   : > { %2542 = vmatprep.subr.bf16.mxu0 %v5002_v28  ;;  %808 = vmatpush1.bf16.msra.mxu1 %v5003_v33  ;;  %v5037_v28 = vld [vmem:[%s6759_s1 + $0x6a0] ss:$8 sps:$4 sm:$0xff]   ;;  %v4414_v33 = vcombine.low %v5727_v24, %v5738_v27  ;;  %v5046_v27 = vld [vmem:[%s6759_s1 + $0x6b0] ss:$8 sps:$4 sm:$0xff]  }
  0x65   : > { %809 = vmatprep.subr.bf16.mxu1 %v5011_v35  ;;  %v4365_v35 = vld [vmem:[%s5466_s4 + $0x44] sm:$0x1]  ;;  %v5043_v24 = vld [vmem:[%s6759_s1 + $0xa0] ss:$8 sps:$4 sm:$0xff]  }
  0x66   : > { %v2189_v47 = vshll.u32 %v4365_v35, 16  ;;  %v5064_v35 = vld [vmem:[%s6759_s1 + $0x6e0] ss:$8 sps:$4 sm:$0xff]  }
  0x67   : > { %2543 = vmatpush1.bf16.msra.mxu0 %v5000_v32  ;;  %v2262_v32 = vsel %vm5495_vm2, %v2257_v14, %v2261_v15  ;;  %v2264_v15 = vshrl.u32 %v4375_v9, 16 }
  0x68   : > { %2544 = vmatprep.subr.bf16.mxu0 %v5008_v34  ;;  %810 = vmatpush1.bf16.msra.mxu1 %v5009_v39  ;;  %v5045_v34 = vld [vmem:[%s6759_s1 + $0xa4] ss:$8 sps:$4 sm:$0xff]   ;;  %v2185_v39 = vrot.slane %v2183_v18, 5  ;;  %v4417_v51 = vcombine.low %v2234_v31, %v2262_v32  ;;  %v2191_v54 = vrot.slane %v2189_v47, 5 }
  0x69   : > { %811 = vmatprep.subr.bf16.mxu1 %v5017_v41  ;;  %v2213_v41 = vrot.slane %v2211_v21, 5  ;;  %v2241_v21 = vrot.slane %v2239_v13, 5  ;;  %v5081_v47 = vld [vmem:[%s6759_s1 + $0x704] ss:$8 sps:$4 sm:$0xff]  }
  0x6b   : > { %2545 = vmatpush1.bf16.msra.mxu0 %v5006_v36  ;;  %v2182_v36 = vrot.slane %v2180_v17, 4  ;;  %v2267_v17 = vshll.u32 %v4375_v9, 16 }
  0x6c   : > { %2546 = vmatprep.subr.bf16.mxu0 %v5014_v40  ;;  %812 = vmatpush1.bf16.msra.mxu1 %v5015_v43  ;;  %v2210_v40 = vrot.slane %v2208_v20, 4  ;;  %v4369_v43 = vld [vmem:[%s5466_s4 + $0x74] sm:$0x1]  ;;  %v2238_v20 = vrot.slane %v2236_v11, 4 }
  0x6d   : > { %813 = vmatprep.subr.bf16.mxu1 %v5023_v49  ;;  %v2186_v46 = vor.u32 %v2185_v39, %v2182_v36  ;;  %v2217_v49 = vshll.u32 %v4369_v43, 16  ;;  %v5073_v36 = vld [vmem:[%s6759_s1 + $0x6f4] ss:$8 sps:$4 sm:$0xff]  }
  0x6f   : > { %2547 = vmatpush1.bf16.msra.mxu0 %v5012_v42  ;;  %v4418_v42 = vcombine.high %v2234_v31, %v2262_v32  ;;  %v2187_v53 = vrot.slane %v2186_v46, 4  ;;  %v2219_v56 = vrot.slane %v2217_v49, 5  ;;  %v2242_v31 = vor.u32 %v2241_v21, %v2238_v20  ;;  %v5079_v49 = vld [vmem:[%s6759_s1 + $0x700] ss:$8 sps:$4 sm:$0xff]  }
  0x70   : > { %2548 = vmatprep.subr.bf16.mxu0 %v5020_v48  ;;  %814 = vmatpush1.bf16.msra.mxu1 %v5021_v57  ;;  %v2214_v48 = vor.u32 %v2213_v41, %v2210_v40  ;;  %v5057_v57 = vld [vmem:[%s6759_s1 + $0xc4] ss:$8 sps:$4 sm:$0xff]   ;;  %v5074_v40 = vld [vmem:[%s6759_s1 + $0xf0] ss:$8 sps:$4 sm:$0xff]   ;;  %v4066_v46 = vcombine.high %v5696_v0, %v5764_v37  ;;  %v5112_v21 = vld [vmem:[%s6759_s1 + $0x260] ss:$8 sps:$4 sm:$0xff]  }
  0x71   : > { %815 = vmatprep.subr.bf16.mxu1 %v5030_v60  ;;  %v2243_v39 = vrot.slane %v2242_v31, 4  ;;  %v5123_v31 = vld [vmem:[%s6759_s1 + $0x774] ss:$8 sps:$4 sm:$0xff]  }
  0x72   : > { %v2215_v55 = vrot.slane %v2214_v48, 4  ;;  %v5086_v48 = vld [vmem:[%s6759_s1 + $0x100] ss:$8 sps:$4 sm:$0xff]  }
  0x73   : > { %2549 = vmatpush1.bf16.msra.mxu0 %v5018_v52  ;;  %v5049_v52 = vld [vmem:[%s6759_s1 + $0xb0] ss:$8 sps:$4 sm:$0xff]  }
  0x74   : > { %2550 = vmatprep.subr.bf16.mxu0 %v5027_v59  ;;  %816 = vmatpush1.bf16.msra.mxu1 %v5028_v3  ;;  %v2192_v59 = vsel %vm5495_vm2, %v2187_v53, %v2191_v54  ;;  %v2220_v60 = vsel %vm5495_vm2, %v2215_v55, %v2219_v56  ;;  %v5101_v53 = vld [vmem:[%s6759_s1 + $0x244] ss:$8 sps:$4 sm:$0xff]   ;;  %v930_v54 = vshll.u32 %v5811_v63, 16  ;;  %v5972_v55 = vcombine.low %v5696_v0, %v5764_v37  ;;  %v5082_v56 = vld [vmem:[%s6759_s1 + $0x710] ss:$8 sps:$4 sm:$0xff]  }
  0x75   : > { %817 = vmatprep.subr.bf16.mxu1 %v5036_v10  ;;  %v4416_v3 = vcombine.low %v2192_v59, %v2220_v60  ;;  %v4377_v10 = vld [vmem:[%s5466_s4 + $0xd4] sm:$0x1]  ;;  %v5089_v0 = vld [vmem:[%s6759_s1 + $0x720] ss:$8 sps:$4 sm:$0xff]   ;;  %v5096_v59 = vld [vmem:[%s6759_s1 + $0x730] ss:$8 sps:$4 sm:$0xff]  }
  0x76   : > { %v2273_v18 = vshll.u32 %v4377_v10, 16  ;;  %v5098_v37 = vld [vmem:[%s6759_s1 + $0x734] ss:$8 sps:$4 sm:$0xff]   ;;  %v5102_v10 = vld [vmem:[%s6759_s1 + $0x740] ss:$8 sps:$4 sm:$0xff]  }
  0x77   : > { %2551 = vmatpush1.bf16.msra.mxu0 %v5025_v1  ;;  %v5052_v1 = vld [vmem:[%s6759_s1 + $0x6c0] ss:$8 sps:$4 sm:$0xff]  }
  0x78   : > { %2552 = vmatprep.subr.bf16.mxu0 %v5033_v8  ;;  %818 = vmatpush1.bf16.msra.mxu1 %v5034_v19  ;;  %v4373_v8 = vld [vmem:[%s5466_s4 + $0xa4] sm:$0x1] }
  0x79   : > { %819 = vmatprep.subr.bf16.mxu1 %v5042_v26  ;;  %v2245_v14 = vshll.u32 %v4373_v8, 16  ;;  %v5066_v19 = vld [vmem:[%s6759_s1 + $0x6e4] ss:$8 sps:$4 sm:$0xff]   ;;  %v5068_v26 = vld [vmem:[%s6759_s1 + $0xe0] ss:$8 sps:$4 sm:$0xff]  }
  0x7b   : > { %2553 = vmatpush1.bf16.msra.mxu0 %v5031_v16  ;;  %v5058_v16 = vld [vmem:[%s6759_s1 + $0x6d0] ss:$8 sps:$4 sm:$0xff]   ;;  %v2247_v32 = vrot.slane %v2245_v14, 5 }
  0x7c   : > { %2575 = vmatprep.subr.bf16.mxu0 %v5039_v25  ;;  %820 = vmatpush1.bf16.msra.mxu1 %v5040_v30  ;;  %v2266_v25 = vrot.slane %v2264_v15, 4  ;;  %v5076_v30 = vld [vmem:[%s6759_s1 + $0xf4] ss:$8 sps:$4 sm:$0xff]   ;;  %v5106_v14 = vld [vmem:[%s6759_s1 + $0x250] ss:$8 sps:$4 sm:$0xff]  }
  0x7d   : > { %821 = vmatprep.subr.bf16.mxu1 %v5045_v34  ;;  %v2275_v34 = vrot.slane %v2273_v18, 5  ;;  %v2248_v43 = vsel %vm5495_vm2, %v2243_v39, %v2247_v32  ;;  %v5111_v15 = vld [vmem:[%s6759_s1 + $0x754] ss:$8 sps:$4 sm:$0xff]   ;;  %v5184_v18 = vld [vmem:[%s5466_s4 + $0x68] ss:$48 sps:$4 sm:$0xff]  }
  0x7e   : > { %2555 = vmatmul.mubr.bf16.vlgmr.msra.gmra.mrb[16].mxu0 %v4414_v33  ;;  %v5126_v32 = vld [vmem:[%s6759_s1 + $0x284] ss:$8 sps:$4 sm:$0xff]   ;;  %v5127_v39 = vld [vmem:[%s6759_s1 + $0x780] ss:$8 sps:$4 sm:$0xff]  }
  0x7f   : > { %2576 = vmatpush1.bf16.msra.mxu0 %v5037_v28  ;;  %2564 = vmatprep.mubr.bf16.mxu0 %v4418_v42  ;;  %v2269_v28 = vrot.slane %v2267_v17, 5  ;;  %v5088_v42 = vld [vmem:[%s6759_s1 + $0x104] ss:$8 sps:$4 sm:$0xff]   ;;  %v5109_v17 = vld [vmem:[%s6759_s1 + $0x750] ss:$8 sps:$4 sm:$0xff]  }
  0x80   : > { %2577 = vmatprep.subr.bf16.mxu0 %v5048_v44  ;;  %822 = vmatpush1.bf16.msra.mxu1 %v5043_v24  ;;  %v4062_v24 = vcombine.low %v5811_v63, %v5689_v61  ;;  %v5095_v61 = vld [vmem:[%s6759_s1 + $0x114] ss:$8 sps:$4 sm:$0xff]  }
  0x81   : > { %823 = vmatprep.subr.bf16.mxu1 %v5051_v45  ;;  %v2270_v33 = vor.u32 %v2269_v28, %v2266_v25  ;;  %v5071_v45 = vld [vmem:[%s6759_s1 + $0x6f0] ss:$8 sps:$4 sm:$0xff]   ;;  %v5117_v25 = vld [vmem:[%s6759_s1 + $0x764] ss:$8 sps:$4 sm:$0xff]   ;;  %v5115_v28 = vld [vmem:[%s6759_s1 + $0x760] ss:$8 sps:$4 sm:$0xff]  }
  0x83   : > { %2578 = vmatpush1.bf16.msra.mxu0 %v5046_v27  ;;  %v2271_v41 = vrot.slane %v2270_v33, 4  ;;  %v5121_v33 = vld [vmem:[%s6759_s1 + $0x770] ss:$8 sps:$4 sm:$0xff]  }
  0x84   : > { %2898 = vmatprep.subr.bf16.mxu0 %v5054_v50  ;;  %824 = vmatpush1.bf16.msra.mxu1 %v5049_v52  ;;  %v927_v50 = vshrl.u32 %v5811_v63, 16  ;;  %v5093_v52 = vld [vmem:[%s6759_s1 + $0x110] ss:$8 sps:$4 sm:$0xff]  }
  0x85   : > { %825 = vmatprep.subr.bf16.mxu1 %v5057_v57  ;;  %v2276_v44 = vsel %vm5495_vm2, %v2271_v41, %v2275_v34  ;;  %v5091_v57 = vld [vmem:[%s6759_s1 + $0x724] ss:$8 sps:$4 sm:$0xff]   ;;  %v5124_v34 = vld [vmem:[%s6759_s1 + $0x280] ss:$8 sps:$4 sm:$0xff]   ;;  %v5135_v41 = vld [vmem:[%s6759_s1 + $0x794] ss:$8 sps:$4 sm:$0xff]  }
  0x86   : > { %2565 = vmatmul.mubr.bf16.gmra.mrb[20].mxu0 %v4417_v51  ;;  %v4419_v27 = vcombine.low %v2248_v43, %v2276_v44  ;;  %v5084_v51 = vld [vmem:[%s6759_s1 + $0x714] ss:$8 sps:$4 sm:$0xff]   ;;  %v929_v63 = vrot.slane %v927_v50, 4  ;;  %v5133_v43 = vld [vmem:[%s6759_s1 + $0x790] ss:$8 sps:$4 sm:$0xff]  }
  0x87   : > { %2607 = vmatprep.mubr.bf16.mxu0 %v5409_v2  ;;  %v5136_v44 = vld [vmem:[%s6759_s1 + $0x2a0] ss:$8 sps:$4 sm:$0xff]   ;;  %v5153_v50 = vld [vmem:[%s6759_s1 + $0x7c4] ss:$8 sps:$4 sm:$0xff]  }
  0x88   : > { %826 = vmatpush1.bf16.msra.mxu1 %v5055_v58  ;;  %v932_v58 = vrot.slane %v930_v54, 5  ;;  %v5154_v54 = vld [vmem:[%s6759_s1 + $0x2d0] ss:$8 sps:$4 sm:$0xff]  }
  0x89   : > { %827 = vmatprep.subr.bf16.mxu1 %v5063_v62  ;;  %v5099_v62 = vld [vmem:[%s6759_s1 + $0x240] ss:$8 sps:$4 sm:$0xff]  }
  0x8a   : > { %v933_v60 = vor.u32 %v932_v58, %v929_v63  ;;  %v5164_v63 = vld [vmem:[%s6759_s1 + $0x7d4] ss:$8 sps:$4 sm:$0xff]   ;;  %v5158_v58 = vld [vmem:[%s6759_s1 + $0x2e0] ss:$8 sps:$4 sm:$0xff]  }
  0x8c   : > { %828 = vmatpush1.bf16.msra.mxu1 %v5061_v5  ;;  %v934_v9 = vrot.slane %v933_v60, 4  ;;  %v5165_v60 = vld [vmem:[%s6759_s1 + $0x2f0] ss:$8 sps:$4 sm:$0xff]  }
  0x8d   : > { %829 = vmatprep.subr.bf16.mxu1 %v5070_v6  ;;  %v5104_v6 = vld [vmem:[%s6759_s1 + $0x744] ss:$8 sps:$4 sm:$0xff]  }
  0x8e   : > { %4456 = vmatmul.mubr.msk.bf16.vlgmr.msra.gmra.mrb[16].mxu0 %vm472_vm3, %v4416_v3  ;;  %v909_v3 = vld [vmem:[%s5466_s4 + $0xc] sm:$0x11] }
  0x8f   : > { %2899 = vmatpush1.bf16.msra.mxu0 %v5052_v1  ;;  %2617 = vmatprep.mubr.bf16.mxu0 %v5409_v2  ;;  %v5105_v1 = vld [vmem:[%s5466_s4 + $0x8] ss:$48 sps:$4 sm:$0xff]   ;;  %v936_v5 = vshll.u32 %v909_v3, 16 }
  0x90   : > { %2900 = vmatprep.subr.bf16.mxu0 %v5060_v4  ;;  %830 = vmatpush1.bf16.msra.mxu1 %v5068_v26  ;;  %v913_v4 = vld [vmem:[%s5466_s4 + $0x3c] sm:$0x11] }
  0x91   : > { %831 = vmatprep.subr.bf16.mxu1 %v5076_v30  ;;  %v964_v8 = vshll.u32 %v913_v4, 16  ;;  %v938_v11 = vrot.slane %v936_v5, 5  ;;  %v5120_v26 = vld [vmem:[%s6759_s1 + $0x274] ss:$8 sps:$4 sm:$0xff]   ;;  %v5118_v30 = vld [vmem:[%s6759_s1 + $0x270] ss:$8 sps:$4 sm:$0xff]  }
  0x92   : > { %v5168_v3 = vld [vmem:[%s6759_s1 + $0x7e0] ss:$8 sps:$4 sm:$0xff]   ;;  %v5178_v5 = vld [vmem:[%s6759_s1 + $0x310] ss:$8 sps:$4 sm:$0xff]  }
  0x93   : > { %2901 = vmatpush1.bf16.msra.mxu0 %v5058_v16  ;;  %v966_v13 = vrot.slane %v964_v8, 5  ;;  %v5114_v16 = vld [vmem:[%s6759_s1 + $0x264] ss:$8 sps:$4 sm:$0xff]   ;;  %v5174_v4 = vld [vmem:[%s5466_s4 + $0x68] ss:$48 sps:$4 sm:$0xff]  }
  0x94   : > { %2902 = vmatprep.subr.bf16.mxu0 %v5066_v19  ;;  %832 = vmatpush1.bf16.msra.mxu1 %v5074_v40  ;;  %v6023_v19 = vsel %vm5495_vm2, %v934_v9, %v938_v11  ;;  %v5130_v40 = vld [vmem:[%s6759_s1 + $0x290] ss:$8 sps:$4 sm:$0xff]   ;;  %v5177_v8 = vld [vmem:[%s6759_s1 + $0x7f4] ss:$8 sps:$4 sm:$0xff]   ;;  %v5187_v9 = vld [vmem:[%s6759_s1 + $0x324] ss:$8 sps:$4 sm:$0xff]  }
  0x95   : > { %854 = vmatprep.subr.bf16.mxu1 %v5088_v42  ;;  %v6028_v20 = vsel %vm5495_vm2, %v5719_v22, %v966_v13  ;;  %v5138_v42 = vld [vmem:[%s6759_s1 + $0x2a4] ss:$8 sps:$4 sm:$0xff]  }
  0x96   : > { %4457 = vmatmul.mubr.msk.bf16.gmra.mrb[20].mxu0 %vm472_vm3, %v4419_v27  ;;  %v4143_v22 = vcombine.high %v6023_v19, %v6028_v20  ;;  %v5144_v27 = vld [vmem:[%s6759_s1 + $0x2b4] ss:$8 sps:$4 sm:$0xff]  }
  0x97   : > { %2903 = vmatpush1.bf16.msra.mxu0 %v5064_v35  ;;  %834 = vmatmul.mubr.bf16.vlgmr.msra.gmra.mrb[0].mxu1 %v4062_v24  ;;  %v5129_v35 = vld [vmem:[%s6759_s1 + $0x784] ss:$8 sps:$4 sm:$0xff]  }
  0x98   : > { %2904 = vmatprep.subr.bf16.mxu0 %v5073_v36  ;;  %2930 = vmatprep.mubr.bf16.mxu0 %v4066_v46  ;;  %v5132_v36 = vld [vmem:[%s6759_s1 + $0x294] ss:$8 sps:$4 sm:$0xff]   ;;  %v5141_v24 = vld [vmem:[%s6759_s1 + $0x7a4] ss:$8 sps:$4 sm:$0xff]  }
  0x99   : > { %843 = vmatprep.mubr.bf16.mxu1 %v4066_v46  ;;  %855 = vmatpush1.bf16.msra.mxu1 %v5086_v48  ;;  %v5142_v46 = vld [vmem:[%s6759_s1 + $0x2b0] ss:$8 sps:$4 sm:$0xff]   ;;  %v5150_v48 = vld [vmem:[%s6759_s1 + $0x2c4] ss:$8 sps:$4 sm:$0xff]  }
  0x9a   : > { %856 = vmatprep.subr.bf16.mxu1 %v5095_v61  ;;  %v5145_v61 = vld [vmem:[%s6759_s1 + $0x7b0] ss:$8 sps:$4 sm:$0xff]  }
  0x9b   : > { %2905 = vmatpush1.bf16.msra.mxu0 %v5071_v45  ;;  %v5139_v45 = vld [vmem:[%s6759_s1 + $0x7a0] ss:$8 sps:$4 sm:$0xff]  }
  0x9c   : > { %2906 = vmatprep.subr.bf16.mxu0 %v5081_v47  ;;  %v5147_v47 = vld [vmem:[%s6759_s1 + $0x7b4] ss:$8 sps:$4 sm:$0xff]  }
  0x9d   : > { %857 = vmatpush1.bf16.msra.mxu1 %v5093_v52  ;;  %v4464_v52 = vld [vmem:[%s5466_s4 + $0xf0] sm:$0xff] }
  0x9e   : > { %1283 = vmatprep.subr.bf16.mxu1 %v5101_v53  ;;  %v5151_v53 = vld [vmem:[%s6759_s1 + $0x7c0] ss:$8 sps:$4 sm:$0xff]  }
  0x9f   : > { %2907 = vmatpush1.bf16.msra.mxu0 %v5079_v49  ;;  %844 = vmatmul.mubr.bf16.gmra.mrb[4].mxu1 %v5972_v55  ;;  %v5148_v49 = vld [vmem:[%s6759_s1 + $0x2c0] ss:$8 sps:$4 sm:$0xff]  }
  0xa0   : > { %2908 = vmatprep.subr.bf16.mxu0 %v5084_v51  ;;  %886 = vmatprep.mubr.bf16.mxu1 %v5409_v2  ;;  %v5156_v51 = vld [vmem:[%s6759_s1 + $0x2d4] ss:$8 sps:$4 sm:$0xff]  }
  0xa3   : > { %2909 = vmatpush1.bf16.msra.mxu0 %v5082_v56  ;;  %v4506_v56 = vcombine.high %v5767_v38, %v4464_v52 }
  0xa4   : > { %2910 = vmatprep.subr.bf16.mxu0 %v5091_v57  ;;  %v5160_v57 = vld [vmem:[%s6759_s1 + $0x2e4] ss:$8 sps:$4 sm:$0xff]  }
  0xa7   : > { %2911 = vmatpush1.bf16.msra.mxu0 %v5089_v0  ;;  %4104 = vmatmul.mubr.msk.bf16.vlgmr.msra.gmra.mrb[0].mxu1 %vm472_vm3, %v5105_v1  ;;  %v5162_v0 = vld [vmem:[%s6759_s1 + $0x7d0] ss:$8 sps:$4 sm:$0xff]   ;;  %v5180_v1 = vld [vmem:[%s6759_s1 + $0x314] ss:$8 sps:$4 sm:$0xff]  }
  0xa8   : > { %2912 = vmatprep.subr.bf16.mxu0 %v5098_v37  ;;  %1284 = vmatpush1.bf16.msra.mxu1 %v5099_v62  ;;  %v5167_v37 = vld [vmem:[%s6759_s1 + $0x2f4] ss:$8 sps:$4 sm:$0xff]   ;;  %v5173_v62 = vld [vmem:[%s6759_s1 + $0x304] ss:$8 sps:$4 sm:$0xff]  }
  0xa9   : > { %1285 = vmatprep.subr.bf16.mxu1 %v5108_v7  ;;  %896 = vmatprep.mubr.bf16.mxu1 %v5409_v2  ;;  %v921_v7 = vld [vmem:[%s5466_s4 + $0x9c] sm:$0x11] }
  0xaa   : > { %v1020_v13 = vshll.u32 %v921_v7, 16  ;;  %v5224_v7 = vld [vmem:[%s6759_s1 + $0x870] ss:$8 sps:$4 sm:$0xff]  }
  0xab   : > { %2913 = vmatpush1.bf16.msra.mxu0 %v5096_v59  ;;  %v4505_v59 = vcombine.low %v5767_v38, %v4464_v52  ;;  %v5171_v38 = vld [vmem:[%s6759_s1 + $0x300] ss:$8 sps:$4 sm:$0xff]  }
  0xac   : > { %2914 = vmatprep.subr.bf16.mxu0 %v5104_v6  ;;  %1286 = vmatpush1.bf16.msra.mxu1 %v5106_v14  ;;  %v917_v6 = vld [vmem:[%s5466_s4 + $0x6c] sm:$0x11]  ;;  %v5185_v14 = vld [vmem:[%s6759_s1 + $0x320] ss:$8 sps:$4 sm:$0xff]  }
  0xad   : > { %1287 = vmatprep.subr.bf16.mxu1 %v5114_v16  ;;  %v992_v11 = vshll.u32 %v917_v6, 16  ;;  %v5193_v16 = vld [vmem:[%s6759_s1 + $0x334] ss:$8 sps:$4 sm:$0xff]   ;;  %v5235_v6 = vld [vmem:[%s6759_s1 + $0x3c4] ss:$8 sps:$4 sm:$0xff]  }
  0xaf   : > { %2915 = vmatpush1.bf16.msra.mxu0 %v5102_v10  ;;  %4105 = vmatmul.mubr.msk.bf16.gmra.mrb[4].mxu1 %vm472_vm3, %v5184_v18  ;;  %v5175_v10 = vld [vmem:[%s6759_s1 + $0x7f0] ss:$8 sps:$4 sm:$0xff]  }
  0xb0   : > { %2916 = vmatprep.subr.bf16.mxu0 %v5111_v15  ;;  %1288 = vmatpush1.bf16.msra.mxu1 %v5112_v21  ;;  %v5183_v15 = vld [vmem:[%s6759_s1 + $0x804] ss:$8 sps:$4 sm:$0xff]   ;;  %v5254_v18 = vld [vmem:[%s5466_s4 + $0xc8] ss:$48 sps:$4 sm:$0xff]  }
  0xb1   : > { %1289 = vmatprep.subr.bf16.mxu1 %v5120_v26  ;;  %1315 = vmatprep.mubr.bf16.mxu1 %v4143_v22  ;;  %v6189_v21 = vld [vmem:[%s5466_s4 + $0x78] sm:$0xff]  ;;  %v1022_v26 = vrot.slane %v1020_v13, 5  ;;  %v6192_v22 = vld [vmem:[%s5466_s4 + $0xa8] sm:$0xff] }
  0xb3   : > { %2917 = vmatpush1.bf16.msra.mxu0 %v5109_v17  ;;  %v5181_v17 = vld [vmem:[%s6759_s1 + $0x800] ss:$8 sps:$4 sm:$0xff]  }
  0xb4   : > { %2918 = vmatprep.subr.bf16.mxu0 %v5117_v25  ;;  %1290 = vmatpush1.bf16.msra.mxu1 %v5118_v30  ;;  %v994_v25 = vrot.slane %v992_v11, 5  ;;  %v5190_v30 = vld [vmem:[%s6759_s1 + $0x814] ss:$8 sps:$4 sm:$0xff]  }
  0xb5   : > { %1291 = vmatprep.subr.bf16.mxu1 %v5126_v32  ;;  %v4591_v32 = vcombine.high %v6189_v21, %v6192_v22 }
  0xb7   : > { %2919 = vmatpush1.bf16.msra.mxu0 %v5115_v28  ;;  %v5191_v28 = vld [vmem:[%s6759_s1 + $0x330] ss:$8 sps:$4 sm:$0xff]  }
  0xb8   : > { %2920 = vmatprep.subr.bf16.mxu0 %v5123_v31  ;;  %1292 = vmatpush1.bf16.msra.mxu1 %v5124_v34  ;;  %v5199_v31 = vld [vmem:[%s6759_s1 + $0x364] ss:$8 sps:$4 sm:$0xff]   ;;  %v4142_v34 = vcombine.low %v6023_v19, %v6028_v20  ;;  %v5194_v20 = vld [vmem:[%s6759_s1 + $0x820] ss:$8 sps:$4 sm:$0xff]  }
  0xb9   : > { %1293 = vmatprep.subr.bf16.mxu1 %v5132_v36  ;;  %v1023_v36 = vsel %vm5495_vm2, %v5829_v12, %v1022_v26  ;;  %v5196_v19 = vld [vmem:[%s6759_s1 + $0x824] ss:$8 sps:$4 sm:$0xff]   ;;  %v5236_v26 = vld [vmem:[%s6759_s1 + $0x890] ss:$8 sps:$4 sm:$0xff]  }
  0xbb   : > { %2921 = vmatpush1.bf16.msra.mxu0 %v5121_v33  ;;  %v5188_v33 = vld [vmem:[%s6759_s1 + $0x810] ss:$8 sps:$4 sm:$0xff]  }
  0xbc   : > { %2922 = vmatprep.subr.bf16.mxu0 %v5129_v35  ;;  %1294 = vmatpush1.bf16.msra.mxu1 %v5130_v40  ;;  %v995_v35 = vsel %vm5495_vm2, %v5721_v23, %v994_v25  ;;  %v5205_v23 = vld [vmem:[%s6759_s1 + $0x374] ss:$8 sps:$4 sm:$0xff]   ;;  %v5203_v40 = vld [vmem:[%s6759_s1 + $0x370] ss:$8 sps:$4 sm:$0xff]   ;;  %v5247_v25 = vld [vmem:[%s6759_s1 + $0x3e4] ss:$8 sps:$4 sm:$0xff]  }
  0xbd   : > { %1295 = vmatprep.subr.bf16.mxu1 %v5138_v42  ;;  %v4146_v12 = vcombine.high %v995_v35, %v1023_v36  ;;  %v5211_v42 = vld [vmem:[%s6759_s1 + $0x384] ss:$8 sps:$4 sm:$0xff]  }
  0xbf   : > { %2923 = vmatpush1.bf16.msra.mxu0 %v5127_v39  ;;  %v5197_v39 = vld [vmem:[%s6759_s1 + $0x360] ss:$8 sps:$4 sm:$0xff]  }
  0xc0   : > { %2924 = vmatprep.subr.bf16.mxu0 %v5135_v41  ;;  %1296 = vmatpush1.bf16.msra.mxu1 %v5136_v44  ;;  %v5202_v41 = vld [vmem:[%s6759_s1 + $0x834] ss:$8 sps:$4 sm:$0xff]  }
  0xc1   : > { %1297 = vmatprep.subr.bf16.mxu1 %v5144_v27  ;;  %v6242_v44 = vld [vmem:[%s5466_s4 + $0x30] sm:$0xff]  ;;  %v6245_v27 = vld [vmem:[%s5466_s4 + $0x60] sm:$0xff] }
  0xc3   : > { %2925 = vmatpush1.bf16.msra.mxu0 %v5133_v43  ;;  %v5200_v43 = vld [vmem:[%s6759_s1 + $0x830] ss:$8 sps:$4 sm:$0xff]  }
  0xc4   : > { %2926 = vmatprep.subr.bf16.mxu0 %v5141_v24  ;;  %1298 = vmatpush1.bf16.msra.mxu1 %v5142_v46  ;;  %v4145_v24 = vcombine.low %v995_v35, %v1023_v36  ;;  %v5208_v46 = vld [vmem:[%s6759_s1 + $0x844] ss:$8 sps:$4 sm:$0xff]   ;;  %v5242_v35 = vld [vmem:[%s6759_s1 + $0x8a0] ss:$8 sps:$4 sm:$0xff]   ;;  %v5251_v36 = vld [vmem:[%s6759_s1 + $0x3f0] ss:$8 sps:$4 sm:$0xff]  }
  0xc5   : > { %1299 = vmatprep.subr.bf16.mxu1 %v5150_v48 }
  0xc7   : > { %2927 = vmatpush1.bf16.msra.mxu0 %v5139_v45  ;;  %v5209_v45 = vld [vmem:[%s6759_s1 + $0x380] ss:$8 sps:$4 sm:$0xff]  }
  0xc8   : > { %2928 = vmatprep.subr.bf16.mxu0 %v5147_v47  ;;  %1300 = vmatpush1.bf16.msra.mxu1 %v5148_v49  ;;  %v5217_v47 = vld [vmem:[%s6759_s1 + $0x394] ss:$8 sps:$4 sm:$0xff]   ;;  %v4231_v49 = vcombine.high %v6242_v44, %v6245_v27 }
  0xc9   : > { %1301 = vmatprep.subr.bf16.mxu1 %v5156_v51  ;;  %v5215_v51 = vld [vmem:[%s6759_s1 + $0x390] ss:$8 sps:$4 sm:$0xff]  }
  0xcb   : > { %2929 = vmatpush1.bf16.msra.mxu0 %v5145_v61  ;;  %v5206_v61 = vld [vmem:[%s6759_s1 + $0x840] ss:$8 sps:$4 sm:$0xff]  }
  0xcc   : > { %2951 = vmatprep.subr.bf16.mxu0 %v5153_v50  ;;  %1302 = vmatpush1.bf16.msra.mxu1 %v5154_v54 }
  0xcd   : > { %1303 = vmatprep.subr.bf16.mxu1 %v5160_v57  ;;  %v5223_v57 = vld [vmem:[%s6759_s1 + $0x3a4] ss:$8 sps:$4 sm:$0xff]  }
  0xce   : > { %2931 = vmatmul.mubr.bf16.vlgmr.msra.gmra.mrb[16].mxu0 %v5972_v55  ;;  %v5170_v55 = vld [vmem:[%s6759_s1 + $0x7e4] ss:$8 sps:$4 sm:$0xff]  }
  0xcf   : > { %2952 = vmatpush1.bf16.msra.mxu0 %v5151_v53  ;;  %2940 = vmatprep.mubr.bf16.mxu0 %v4506_v56  ;;  %v6271_v53 = vld [vmem:[%s5466_s4 + $0xd8] sm:$0xff] }
  0xd0   : > { %2953 = vmatprep.subr.bf16.mxu0 %v5164_v63  ;;  %1304 = vmatpush1.bf16.msra.mxu1 %v5158_v58  ;;  %v5214_v56 = vld [vmem:[%s6759_s1 + $0x854] ss:$8 sps:$4 sm:$0xff]   ;;  %v4322_v63 = vcombine.high %v6192_v22, %v6271_v53  ;;  %v4321_v58 = vcombine.low %v6192_v22, %v6271_v53 }
  0xd1   : > { %1305 = vmatprep.subr.bf16.mxu1 %v5167_v37  ;;  %v5221_v37 = vld [vmem:[%s6759_s1 + $0x3a0] ss:$8 sps:$4 sm:$0xff]  }
  0xd3   : > { %2954 = vmatpush1.bf16.msra.mxu0 %v5162_v0  ;;  %v5212_v0 = vld [vmem:[%s6759_s1 + $0x850] ss:$8 sps:$4 sm:$0xff]  }
  0xd4   : > { %3274 = vmatprep.subr.bf16.mxu0 %v5170_v55  ;;  %1306 = vmatpush1.bf16.msra.mxu1 %v5165_v60  ;;  %v5220_v55 = vld [vmem:[%s6759_s1 + $0x864] ss:$8 sps:$4 sm:$0xff]  }
  0xd5   : > { %1307 = vmatprep.subr.bf16.mxu1 %v5173_v62  ;;  %v5218_v62 = vld [vmem:[%s6759_s1 + $0x860] ss:$8 sps:$4 sm:$0xff]  }
  0xd6   : > { %2941 = vmatmul.mubr.bf16.gmra.mrb[20].mxu0 %v4505_v59  ;;  %v5229_v59 = vld [vmem:[%s6759_s1 + $0x3b4] ss:$8 sps:$4 sm:$0xff]  }
  0xd7   : > { %2983 = vmatprep.mubr.bf16.mxu0 %v5409_v2 }
  0xd8   : > { %1308 = vmatpush1.bf16.msra.mxu1 %v5171_v38 }
  0xd9   : > { %1309 = vmatprep.subr.bf16.mxu1 %v5180_v1 }
  0xdc   : > { %1310 = vmatpush1.bf16.msra.mxu1 %v5178_v5 }
  0xdd   : > { %1311 = vmatprep.subr.bf16.mxu1 %v5187_v9  ;;  %v5232_v9 = vld [vmem:[%s6759_s1 + $0x884] ss:$8 sps:$4 sm:$0xff]  }
  0xde   : > { %4544 = vmatmul.mubr.msk.bf16.vlgmr.msra.gmra.mrb[16].mxu0 %vm472_vm3, %v5174_v4  ;;  %v5227_v4 = vld [vmem:[%s6759_s1 + $0x3b0] ss:$8 sps:$4 sm:$0xff]  }
  0xdf   : > { %3275 = vmatpush1.bf16.msra.mxu0 %v5168_v3  ;;  %2993 = vmatprep.mubr.bf16.mxu0 %v5409_v2  ;;  %v5226_v3 = vld [vmem:[%s6759_s1 + $0x874] ss:$8 sps:$4 sm:$0xff]  }
  0xe0   : > { %3276 = vmatprep.subr.bf16.mxu0 %v5177_v8  ;;  %1312 = vmatpush1.bf16.msra.mxu1 %v5185_v14  ;;  %v5233_v8 = vld [vmem:[%s6759_s1 + $0x3c0] ss:$8 sps:$4 sm:$0xff]  }
  0xe1   : > { %1313 = vmatprep.subr.bf16.mxu1 %v5193_v16  ;;  %v5239_v16 = vld [vmem:[%s6759_s1 + $0x3d0] ss:$8 sps:$4 sm:$0xff]  }
  0xe3   : > { %3277 = vmatpush1.bf16.msra.mxu0 %v5175_v10  ;;  %v5241_v10 = vld [vmem:[%s6759_s1 + $0x3d4] ss:$8 sps:$4 sm:$0xff]  }
  0xe4   : > { %3278 = vmatprep.subr.bf16.mxu0 %v5183_v15  ;;  %1314 = vmatpush1.bf16.msra.mxu1 %v5191_v28  ;;  %v5230_v15 = vld [vmem:[%s6759_s1 + $0x880] ss:$8 sps:$4 sm:$0xff]  }
  0xe5   : > { %1659 = vmatprep.subr.bf16.mxu1 %v5199_v31  ;;  %v5245_v28 = vld [vmem:[%s6759_s1 + $0x3e0] ss:$8 sps:$4 sm:$0xff]   ;;  %v5253_v31 = vld [vmem:[%s6759_s1 + $0x3f4] ss:$8 sps:$4 sm:$0xff]  }
  0xe6   : > { %4545 = vmatmul.mubr.msk.bf16.gmra.mrb[20].mxu0 %vm472_vm3, %v5254_v18  ;;  %v5238_v18 = vld [vmem:[%s6759_s1 + $0x894] ss:$8 sps:$4 sm:$0xff]  }
  0xe7   : > { %3279 = vmatpush1.bf16.msra.mxu0 %v5181_v17  ;;  %3306 = vmatprep.mubr.bf16.mxu0 %v4591_v32 }
  0xe8   : > { %3280 = vmatprep.subr.bf16.mxu0 %v5190_v30  ;;  %1316 = vmatmul.mubr.bf16.vlgmr.msra.gmra.mrb[0].mxu1 %v4142_v34  ;;  %v5244_v30 = vld [vmem:[%s6759_s1 + $0x8a4] ss:$8 sps:$4 sm:$0xff]  }
  0xe9   : > { %1660 = vmatpush1.bf16.msra.mxu1 %v5197_v39  ;;  %1325 = vmatprep.mubr.bf16.mxu1 %v4146_v12  ;;  %v5248_v12 = vld [vmem:[%s6759_s1 + $0x8b0] ss:$8 sps:$4 sm:$0xff]  }
  0xea   : > { %1661 = vmatprep.subr.bf16.mxu1 %v5205_v23  ;;  %v5260_v23 = vld [vmem:[%s6759_s1 + $0x404] ss:$8 sps:$4 sm:$0xff]  }
  0xeb   : > { %3281 = vmatpush1.bf16.msra.mxu0 %v5188_v33 }
  0xec   : > { %3282 = vmatprep.subr.bf16.mxu0 %v5196_v19  ;;  %v5250_v19 = vld [vmem:[%s6759_s1 + $0x8b4] ss:$8 sps:$4 sm:$0xff]  }
  0xed   : > { %1662 = vmatpush1.bf16.msra.mxu1 %v5203_v40  ;;  %v5257_v40 = vld [vmem:[%s6759_s1 + $0x8c4] ss:$8 sps:$4 sm:$0xff]  }
  0xee   : > { %1663 = vmatprep.subr.bf16.mxu1 %v5211_v42  ;;  %v5255_v42 = vld [vmem:[%s6759_s1 + $0x8c0] ss:$8 sps:$4 sm:$0xff]  }
  0xef   : > { %3283 = vmatpush1.bf16.msra.mxu0 %v5194_v20  ;;  %v5258_v20 = vld [vmem:[%s6759_s1 + $0x400] ss:$8 sps:$4 sm:$0xff]  }
  0xf0   : > { %3284 = vmatprep.subr.bf16.mxu0 %v5202_v41  ;;  %1326 = vmatmul.mubr.bf16.gmra.mrb[4].mxu1 %v4145_v24  ;;  %v5266_v41 = vld [vmem:[%s6759_s1 + $0x414] ss:$8 sps:$4 sm:$0xff]  }
  0xf1   : > { %v6256_v48 = vpop.f32.mrb[0].mxu0  ;;  %1664 = vmatpush1.bf16.msra.mxu1 %v5209_v45  ;;  %1691 = vmatprep.mubr.bf16.mxu1 %v4231_v49  ;;  %v5263_v24 = vld [vmem:[%s6759_s1 + $0x8d4] ss:$8 sps:$4 sm:$0xff]   ;;  %v5274_v45 = vld [vmem:[%s6759_s1 + $0x424] ss:$8 sps:$4 sm:$0xff]  }
  0xf2   : > { %v6263_v50 = vpop.f32.mrb[1].mxu0  ;;  %1665 = vmatprep.subr.bf16.mxu1 %v5217_v47  ;;  %v5272_v47 = vld [vmem:[%s6759_s1 + $0x420] ss:$8 sps:$4 sm:$0xff]   ;;  %v5277_v49 = vld [vmem:[%s6759_s1 + $0x434] ss:$8 sps:$4 sm:$0xff]  }
  0xf3   : > { %3285 = vmatpush1.bf16.msra.mxu0 %v5200_v43  ;;  %v6268_v52 = vpop.f32.mrb[2].mxu0  ;;  %v5264_v43 = vld [vmem:[%s6759_s1 + $0x410] ss:$8 sps:$4 sm:$0xff]  }
  0xf4   : > { %3286 = vmatprep.subr.bf16.mxu0 %v5208_v46  ;;  %v6273_v54 = vpop.f32.mrb[3].mxu0  ;;  %v5261_v46 = vld [vmem:[%s6759_s1 + $0x8d0] ss:$8 sps:$4 sm:$0xff]  }
  0xf5   : > { %1666 = vmatpush1.bf16.msra.mxu1 %v5215_v51  ;;  %v4552_v51 = vld [vmem:[%s5466_s4 + $0x108] sm:$0xff] }
  0xf6   : > { %1667 = vmatprep.subr.bf16.mxu1 %v5223_v57  ;;  %v5269_v57 = vld [vmem:[%s6759_s1 + $0x8e0] ss:$8 sps:$4 sm:$0xff]  }
  0xf7   : > { %3287 = vmatpush1.bf16.msra.mxu0 %v5206_v61  ;;  %v5271_v61 = vld [vmem:[%s6759_s1 + $0x8e4] ss:$8 sps:$4 sm:$0xff]  }
  0xf8   : > { %3288 = vmatprep.subr.bf16.mxu0 %v5214_v56  ;;  %v4590_v56 = vcombine.low %v6189_v21, %v6192_v22 }
  0xf9   : > { %v6297_v60 = vpop.f32.mrb[4].mxu0  ;;  %1668 = vmatpush1.bf16.msra.mxu1 %v5221_v37  ;;  %v4594_v37 = vcombine.high %v6271_v53, %v4552_v51 }
  0xfa   : > { %v6302_v38 = vpop.f32.mrb[5].mxu0  ;;  %1669 = vmatprep.subr.bf16.mxu1 %v5229_v59  ;;  %v5285_v59 = vld [vmem:[%s6759_s1 + $0x444] ss:$8 sps:$4 sm:$0xff]  }
  0xfb   : > { %3289 = vmatpush1.bf16.msra.mxu0 %v5212_v0  ;;  %v6304_v1 = vpop.f32.mrb[6].mxu0  ;;  %v5275_v0 = vld [vmem:[%s6759_s1 + $0x430] ss:$8 sps:$4 sm:$0xff]  }
  0xfc   : > { %3290 = vmatprep.subr.bf16.mxu0 %v5220_v55  ;;  %v6312_v5 = vpop.f32.mrb[7].mxu0  ;;  %v5282_v55 = vld [vmem:[%s6759_s1 + $0x8f4] ss:$8 sps:$4 sm:$0xff]  }
  0xfd   : > { %1670 = vmatpush1.bf16.msra.mxu1 %v5227_v4  ;;  %v5288_v4 = vld [vmem:[%s6759_s1 + $0x454] ss:$8 sps:$4 sm:$0xff]  }
  0xfe   : > { %1671 = vmatprep.subr.bf16.mxu1 %v5235_v6  ;;  %v5291_v6 = vld [vmem:[%s6759_s1 + $0x904] ss:$8 sps:$4 sm:$0xff]  }
  0xff   : > { %3291 = vmatpush1.bf16.msra.mxu0 %v5218_v62  ;;  %v5280_v62 = vld [vmem:[%s6759_s1 + $0x8f0] ss:$8 sps:$4 sm:$0xff]  }
 0x100   : > { %3292 = vmatprep.subr.bf16.mxu0 %v5226_v3  ;;  %v5283_v3 = vld [vmem:[%s6759_s1 + $0x440] ss:$8 sps:$4 sm:$0xff]  }
 0x101   : > { %v6329_v11 = vpop.f32.mrb[8].mxu0  ;;  %1672 = vmatpush1.bf16.msra.mxu1 %v5233_v8  ;;  %v4190_v8 = vld [vmem:[%s5466_s4 + $0x90] sm:$0xff] }
 0x102   : > { %v6331_v13 = vpop.f32.mrb[9].mxu0  ;;  %1673 = vmatprep.subr.bf16.mxu1 %v5241_v10  ;;  %v3408_v10 = vshll.u32 %v6245_v27, 16 }
 0x103   : > { %3293 = vmatpush1.bf16.msra.mxu0 %v5224_v7  ;;  %v6333_v14 = vpop.f32.mrb[10].mxu0  ;;  %v4593_v7 = vcombine.low %v6271_v53, %v4552_v51 }
 0x104   : > { %3294 = vmatprep.subr.bf16.mxu0 %v5232_v9  ;;  %v6341_v17 = vpop.f32.mrb[11].mxu0  ;;  %v3405_v9 = vshrl.u32 %v6245_v27, 16 }
 0x105   : > { %1674 = vmatpush1.bf16.msra.mxu1 %v5239_v16  ;;  %v3436_v16 = vshll.u32 %v4190_v8, 16 }
 0x106   : > { %1675 = vmatprep.subr.bf16.mxu1 %v5247_v25  ;;  %v5297_v25 = vld [vmem:[%s6759_s1 + $0x484] ss:$8 sps:$4 sm:$0xff]  }
 0x107   : > { %3295 = vmatpush1.bf16.msra.mxu0 %v5230_v15  ;;  %v3433_v15 = vshrl.u32 %v4190_v8, 16 }
 0x108   : > { %3296 = vmatprep.subr.bf16.mxu0 %v5238_v18  ;;  %v5286_v18 = vld [vmem:[%s6759_s1 + $0x450] ss:$8 sps:$4 sm:$0xff]  }
 0x109   : > { %v6361_v32 = vpop.f32.mrb[12].mxu0  ;;  %1676 = vmatpush1.bf16.msra.mxu1 %v5245_v28  ;;  %v4230_v28 = vcombine.low %v6242_v44, %v6245_v27  ;;  %v5303_v44 = vld [vmem:[%s6759_s1 + $0x494] ss:$8 sps:$4 sm:$0xff]   ;;  %v5294_v27 = vld [vmem:[%s5466_s4 + $0x80] ss:$48 sps:$4 sm:$0xff]  }
 0x10a   : > { %v6363_v33 = vpop.f32.mrb[13].mxu0  ;;  %1677 = vmatprep.subr.bf16.mxu1 %v5253_v31  ;;  %v3410_v31 = vrot.slane %v3408_v10, 5  ;;  %v5314_v10 = vld [vmem:[%s6759_s1 + $0x934] ss:$8 sps:$4 sm:$0xff]  }
 0x10b   : > { %3297 = vmatpush1.bf16.msra.mxu0 %v5236_v26  ;;  %v6365_v34 = vpop.f32.mrb[14].mxu0  ;;  %v6456_v26 = vld [vmem:[%s5466_s4 + $0xc0] sm:$0xff] }
 0x10c   : > { %3298 = vmatprep.subr.bf16.mxu0 %v5244_v30  ;;  %v6373_v39 = vpop.f32.mrb[15].mxu0  ;;  %v3407_v30 = vrot.slane %v3405_v9, 4  ;;  %v5315_v9 = vld [vmem:[%s6759_s1 + $0x4b0] ss:$8 sps:$4 sm:$0xff]  }
 0x10d   : > { %1678 = vmatpush1.bf16.msra.mxu1 %v5251_v36  ;;  %v3438_v36 = vrot.slane %v3436_v16, 5 }
 0x10e   : > { %1679 = vmatprep.subr.bf16.mxu1 %v5260_v23  ;;  %v4234_v23 = vcombine.high %v4190_v8, %v6456_v26 }
 0x10f   : > { %3299 = vmatpush1.bf16.msra.mxu0 %v5242_v35  ;;  %v3435_v35 = vrot.slane %v3433_v15, 4  ;;  %v5323_v15 = vld [vmem:[%s6759_s1 + $0x4c4] ss:$8 sps:$4 sm:$0xff]  }
 0x110   : > { %3300 = vmatprep.subr.bf16.mxu0 %v5250_v19  ;;  %v5295_v19 = vld [vmem:[%s6759_s1 + $0x480] ss:$8 sps:$4 sm:$0xff]  }
 0x111   : > { %1680 = vmatpush1.bf16.msra.mxu1 %v5258_v20  ;;  %v4640_v20 = vld [vmem:[%s5466_s4 + $0x9c] sm:$0x11] }
 0x112   : > { %1681 = vmatprep.subr.bf16.mxu1 %v5266_v41 }
 0x113   : > { %3301 = vmatpush1.bf16.msra.mxu0 %v5248_v12  ;;  %v4636_v12 = vld [vmem:[%s5466_s4 + $0x6c] sm:$0x11] }
 0x114   : > { %3302 = vmatprep.subr.bf16.mxu0 %v5257_v40  ;;  %v3411_v40 = vor.u32 %v3410_v31, %v3407_v30  ;;  %v3414_v41 = vshll.u32 %v4636_v12, 16  ;;  %v5329_v30 = vld [vmem:[%s6759_s1 + $0x4d4] ss:$8 sps:$4 sm:$0xff]   ;;  %v5318_v31 = vld [vmem:[%s6759_s1 + $0x940] ss:$8 sps:$4 sm:$0xff]  }
 0x115   : > { %1682 = vmatpush1.bf16.msra.mxu1 %v5264_v43  ;;  %v3442_v43 = vshll.u32 %v4640_v20, 16  ;;  %v5333_v12 = vld [vmem:[%s6759_s1 + $0x4e0] ss:$8 sps:$4 sm:$0xff]   ;;  %v5332_v20 = vld [vmem:[%s6759_s1 + $0x964] ss:$8 sps:$4 sm:$0xff]  }
 0x116   : > { %1683 = vmatprep.subr.bf16.mxu1 %v5274_v45  ;;  %v5301_v45 = vld [vmem:[%s6759_s1 + $0x490] ss:$8 sps:$4 sm:$0xff]   ;;  %v3416_v51 = vrot.slane %v3414_v41, 5  ;;  %v5338_v41 = vld [vmem:[%s6759_s1 + $0x974] ss:$8 sps:$4 sm:$0xff]  }
 0x117   : > { %3303 = vmatpush1.bf16.msra.mxu0 %v5255_v42  ;;  %v3439_v42 = vor.u32 %v3438_v36, %v3435_v35  ;;  %v5327_v35 = vld [vmem:[%s6759_s1 + $0x4d0] ss:$8 sps:$4 sm:$0xff]   ;;  %v5326_v36 = vld [vmem:[%s6759_s1 + $0x954] ss:$8 sps:$4 sm:$0xff]  }
 0x118   : > { %3304 = vmatprep.subr.bf16.mxu0 %v5263_v24  ;;  %v5289_v24 = vld [vmem:[%s6759_s1 + $0x900] ss:$8 sps:$4 sm:$0xff]  }
 0x119   : > { %1684 = vmatpush1.bf16.msra.mxu1 %v5272_v47  ;;  %v5311_v47 = vld [vmem:[%s6759_s1 + $0x4a4] ss:$8 sps:$4 sm:$0xff]  }
 0x11a   : > { %1685 = vmatprep.subr.bf16.mxu1 %v5277_v49  ;;  %v3412_v49 = vrot.slane %v3411_v40, 4  ;;  %v5339_v40 = vld [vmem:[%s6759_s1 + $0x4f0] ss:$8 sps:$4 sm:$0xff]  }
 0x11b   : > { %3305 = vmatpush1.bf16.msra.mxu0 %v5261_v46  ;;  %v5300_v46 = vld [vmem:[%s6759_s1 + $0x914] ss:$8 sps:$4 sm:$0xff]  }
 0x11c   : > { %3327 = vmatprep.subr.bf16.mxu0 %v5271_v61  ;;  %v4233_v61 = vcombine.low %v4190_v8, %v6456_v26  ;;  %v5304_v8 = vld [vmem:[%s6759_s1 + $0x920] ss:$8 sps:$4 sm:$0xff]  }
 0x11d   : > { %1686 = vmatpush1.bf16.msra.mxu1 %v5275_v0  ;;  %v6486_v0 = vld [vmem:[%s5466_s4 + $0x48] sm:$0xff] }
 0x11e   : > { %3307 = vmatmul.mubr.bf16.vlgmr.msra.gmra.mrb[16].mxu0 %v4590_v56  ;;  %1687 = vmatprep.subr.bf16.mxu1 %v5285_v59  ;;  %v3440_v56 = vrot.slane %v3439_v42, 4  ;;  %v5306_v59 = vld [vmem:[%s6759_s1 + $0x924] ss:$8 sps:$4 sm:$0xff]  }
 0x11f   : > { %3328 = vmatpush1.bf16.msra.mxu0 %v5269_v57  ;;  %3316 = vmatprep.mubr.bf16.mxu0 %v4594_v37  ;;  %v3444_v57 = vrot.slane %v3442_v43, 5  ;;  %v5298_v37 = vld [vmem:[%s6759_s1 + $0x910] ss:$8 sps:$4 sm:$0xff]   ;;  %v5347_v42 = vld [vmem:[%s6759_s1 + $0x504] ss:$8 sps:$4 sm:$0xff]  }
 0x120   : > { %3329 = vmatprep.subr.bf16.mxu0 %v5282_v55  ;;  %v5309_v55 = vld [vmem:[%s6759_s1 + $0x4a0] ss:$8 sps:$4 sm:$0xff]   ;;  %v5336_v43 = vld [vmem:[%s6759_s1 + $0x970] ss:$8 sps:$4 sm:$0xff]  }
 0x121   : > { %1688 = vmatpush1.bf16.msra.mxu1 %v5283_v3  ;;  %v4319_v3 = vcombine.high %v6486_v0, %v6189_v21 }
 0x122   : > { %1689 = vmatprep.subr.bf16.mxu1 %v5288_v4  ;;  %v5378_v4 = vld [vmem:[%s5466_s4 + $0xe0] ss:$48 sps:$4 sm:$0xff]  }
 0x123   : > { %3330 = vmatpush1.bf16.msra.mxu0 %v5280_v62  ;;  %v5317_v62 = vld [vmem:[%s6759_s1 + $0x4b4] ss:$8 sps:$4 sm:$0xff]  }
 0x124   : > { %3761 = vmatprep.subr.bf16.mxu0 %v5291_v6  ;;  %v6506_v6 = vsel %vm5495_vm2, %v3412_v49, %v3416_v51  ;;  %v5350_v49 = vld [vmem:[%s6759_s1 + $0x994] ss:$8 sps:$4 sm:$0xff]   ;;  %v5359_v51 = vld [vmem:[%s6759_s1 + $0x524] ss:$8 sps:$4 sm:$0xff]  }
 0x125   : > { %1690 = vmatpush1.bf16.msra.mxu1 %v5286_v18  ;;  %v5312_v18 = vld [vmem:[%s6759_s1 + $0x930] ss:$8 sps:$4 sm:$0xff]  }
 0x126   : > { %3317 = vmatmul.mubr.bf16.gmra.mrb[20].mxu0 %v4593_v7  ;;  %2035 = vmatprep.subr.bf16.mxu1 %v5297_v25  ;;  %v6510_v7 = vsel %vm5495_vm2, %v3440_v56, %v3444_v57  ;;  %v5321_v25 = vld [vmem:[%s6759_s1 + $0x4c0] ss:$8 sps:$4 sm:$0xff]   ;;  %v5348_v56 = vld [vmem:[%s6759_s1 + $0x990] ss:$8 sps:$4 sm:$0xff]  }
 0x127   : > { %3359 = vmatprep.mubr.bf16.mxu0 %v5409_v2  ;;  %v4687_v16 = vcombine.high %v6506_v6, %v6510_v7  ;;  %v5357_v57 = vld [vmem:[%s6759_s1 + $0x520] ss:$8 sps:$4 sm:$0xff]  }
 0x128   : > { %1692 = vmatmul.mubr.bf16.vlgmr.msra.gmra.mrb[8].mxu1 %v4230_v28  ;;  %v5320_v28 = vld [vmem:[%s6759_s1 + $0x944] ss:$8 sps:$4 sm:$0xff]  }
 0x129   : > { %2036 = vmatpush1.bf16.msra.mxu1 %v5295_v19  ;;  %1701 = vmatprep.mubr.bf16.mxu1 %v4234_v23  ;;  %v5335_v19 = vld [vmem:[%s6759_s1 + $0x4e4] ss:$8 sps:$4 sm:$0xff]   ;;  %v5324_v23 = vld [vmem:[%s6759_s1 + $0x950] ss:$8 sps:$4 sm:$0xff]  }
 0x12a   : > { %2037 = vmatprep.subr.bf16.mxu1 %v5303_v44  ;;  %v5341_v44 = vld [vmem:[%s6759_s1 + $0x4f4] ss:$8 sps:$4 sm:$0xff]  }
 0x12d   : > { %2038 = vmatpush1.bf16.msra.mxu1 %v5301_v45  ;;  %v5344_v45 = vld [vmem:[%s6759_s1 + $0x984] ss:$8 sps:$4 sm:$0xff]  }
 0x12e   : > { %4632 = vmatmul.mubr.msk.bf16.vlgmr.msra.gmra.mrb[16].mxu0 %vm472_vm3, %v5294_v27  ;;  %2039 = vmatprep.subr.bf16.mxu1 %v5311_v47  ;;  %v5330_v27 = vld [vmem:[%s6759_s1 + $0x960] ss:$8 sps:$4 sm:$0xff]  }
 0x12f   : > { %3762 = vmatpush1.bf16.msra.mxu0 %v5289_v24  ;;  %3369 = vmatprep.mubr.bf16.mxu0 %v5409_v2  ;;  %v5345_v24 = vld [vmem:[%s6759_s1 + $0x500] ss:$8 sps:$4 sm:$0xff]  }
 0x130   : > { %3763 = vmatprep.subr.bf16.mxu0 %v5300_v46  ;;  %1702 = vmatmul.mubr.bf16.gmra.mrb[12].mxu1 %v4233_v61  ;;  %v5353_v46 = vld [vmem:[%s6759_s1 + $0x514] ss:$8 sps:$4 sm:$0xff]   ;;  %v5342_v47 = vld [vmem:[%s6759_s1 + $0x980] ss:$8 sps:$4 sm:$0xff]   ;;  %v5351_v61 = vld [vmem:[%s6759_s1 + $0x510] ss:$8 sps:$4 sm:$0xff]  }
 0x131   : > { %2040 = vmatpush1.bf16.msra.mxu1 %v5309_v55  ;;  %2067 = vmatprep.mubr.bf16.mxu1 %v4319_v3  ;;  %v5365_v55 = vld [vmem:[%s6759_s1 + $0x534] ss:$8 sps:$4 sm:$0xff]  }
 0x132   : > { %2041 = vmatprep.subr.bf16.mxu1 %v5317_v62  ;;  %v5363_v62 = vld [vmem:[%s6759_s1 + $0x530] ss:$8 sps:$4 sm:$0xff]   ;;  %v5362_v3 = vld [vmem:[%s6759_s1 + $0x9b4] ss:$8 sps:$4 sm:$0xff]  }
 0x133   : > { %3764 = vmatpush1.bf16.msra.mxu0 %v5298_v37  ;;  %v5356_v37 = vld [vmem:[%s6759_s1 + $0x9a4] ss:$8 sps:$4 sm:$0xff]  }
 0x134   : > { %3765 = vmatprep.subr.bf16.mxu0 %v5306_v59  ;;  %v5354_v59 = vld [vmem:[%s6759_s1 + $0x9a0] ss:$8 sps:$4 sm:$0xff]  }
 0x135   : > { %2042 = vmatpush1.bf16.msra.mxu1 %v5315_v9  ;;  %v5360_v9 = vld [vmem:[%s6759_s1 + $0x9b0] ss:$8 sps:$4 sm:$0xff]  }
 0x136   : > { %4633 = vmatmul.mubr.msk.bf16.gmra.mrb[20].mxu0 %vm472_vm3, %v5378_v4  ;;  %2043 = vmatprep.subr.bf16.mxu1 %v5323_v15  ;;  %v5371_v4 = vld [vmem:[%s6759_s1 + $0x544] ss:$8 sps:$4 sm:$0xff]   ;;  %v3461_v15 = vshrl.u32 %v6456_v26, 16 }
 0x137   : > { %3766 = vmatpush1.bf16.msra.mxu0 %v5304_v8  ;;  %3793 = vmatprep.mubr.bf16.mxu0 %v4687_v16  ;;  %v4646_v8 = vld [vmem:[%s5466_s4 + $0xf0] sm:$0xff]  ;;  %v3464_v16 = vshll.u32 %v6456_v26, 16 }
 0x138   : > { %3767 = vmatprep.subr.bf16.mxu0 %v5314_v10  ;;  %v5369_v10 = vld [vmem:[%s6759_s1 + $0x540] ss:$8 sps:$4 sm:$0xff]   ;;  %v5375_v26 = vld [vmem:[%s6759_s1 + $0x550] ss:$8 sps:$4 sm:$0xff]  }
 0x139   : > { %2044 = vmatpush1.bf16.msra.mxu1 %v5321_v25  ;;  %v5377_v25 = vld [vmem:[%s6759_s1 + $0x554] ss:$8 sps:$4 sm:$0xff]  }
 0x13a   : > { %2045 = vmatprep.subr.bf16.mxu1 %v5329_v30  ;;  %v3492_v30 = vshll.u32 %v4646_v8, 16 }
 0x13b   : > { %3768 = vmatpush1.bf16.msra.mxu0 %v5312_v18  ;;  %v5368_v18 = vld [vmem:[%s6759_s1 + $0x9c4] ss:$8 sps:$4 sm:$0xff]  }
 0x13c   : > { %3769 = vmatprep.subr.bf16.mxu0 %v5320_v28  ;;  %v3489_v28 = vshrl.u32 %v4646_v8, 16 }
 0x13d   : > { %2046 = vmatpush1.bf16.msra.mxu1 %v5327_v35  ;;  %v3463_v35 = vrot.slane %v3461_v15, 4 }
 0x13e   : > { %2047 = vmatprep.subr.bf16.mxu1 %v5335_v19  ;;  %v5374_v19 = vld [vmem:[%s6759_s1 + $0x9d4] ss:$8 sps:$4 sm:$0xff]  }
 0x13f   : > { %3770 = vmatpush1.bf16.msra.mxu0 %v5318_v31  ;;  %v5366_v31 = vld [vmem:[%s6759_s1 + $0x9c0] ss:$8 sps:$4 sm:$0xff]  }
 0x140   : > { %3771 = vmatprep.subr.bf16.mxu0 %v5326_v36  ;;  %v3466_v36 = vrot.slane %v3464_v16, 5  ;;  %v5393_v16 = vld [vmem:[%s6759_s1 + $0xa04] ss:$8 sps:$4 sm:$0xff]  }
 0x141   : > { %2048 = vmatpush1.bf16.msra.mxu1 %v5333_v12  ;;  %v3491_v12 = vrot.slane %v3489_v28, 4  ;;  %v4637_v28 = vld [vmem:[%s5466_s4 + $0x74] sm:$0x1] }
 0x142   : > { %2049 = vmatprep.subr.bf16.mxu1 %v5341_v44  ;;  %v4644_v44 = vld [vmem:[%s5466_s4 + $0xcc] sm:$0x11] }
 0x143   : > { %3772 = vmatpush1.bf16.msra.mxu0 %v5324_v23  ;;  %v5384_v23 = vld [vmem:[%s6759_s1 + $0x564] ss:$8 sps:$4 sm:$0xff]  }
 0x144   : > { %3773 = vmatprep.subr.bf16.mxu0 %v5332_v20  ;;  %v3494_v20 = vrot.slane %v3492_v30, 5 }
 0x145   : > { %2050 = vmatpush1.bf16.msra.mxu1 %v5339_v40  ;;  %v5372_v40 = vld [vmem:[%s6759_s1 + $0x9d0] ss:$8 sps:$4 sm:$0xff]  }
 0x146   : > { %2051 = vmatprep.subr.bf16.mxu1 %v5347_v42  ;;  %v5381_v42 = vld [vmem:[%s6759_s1 + $0x9e4] ss:$8 sps:$4 sm:$0xff]  }
 0x147   : > { %3774 = vmatpush1.bf16.msra.mxu0 %v5330_v27  ;;  %v4648_v27 = vld [vmem:[%s5466_s4 + $0xfc] sm:$0x11] }
 0x148   : > { %3775 = vmatprep.subr.bf16.mxu0 %v5338_v41  ;;  %v5382_v41 = vld [vmem:[%s6759_s1 + $0x560] ss:$8 sps:$4 sm:$0xff]  }
 0x149   : > { %2052 = vmatpush1.bf16.msra.mxu1 %v5345_v24  ;;  %v3467_v24 = vor.u32 %v3466_v36, %v3463_v35  ;;  %v4641_v35 = vld [vmem:[%s5466_s4 + $0xa4] sm:$0x1] }
 0x14a   : > { %2053 = vmatprep.subr.bf16.mxu1 %v5353_v46  ;;  %v3495_v46 = vor.u32 %v3494_v20, %v3491_v12  ;;  %v3428_v12 = vshll.u32 %v4637_v28, 16 }
 0x14b   : > { %3776 = vmatpush1.bf16.msra.mxu0 %v5336_v43  ;;  %v5390_v43 = vld [vmem:[%s6759_s1 + $0x574] ss:$8 sps:$4 sm:$0xff]  }
 0x14c   : > { %3777 = vmatprep.subr.bf16.mxu0 %v5344_v45  ;;  %v3470_v45 = vshll.u32 %v4644_v44, 16  ;;  %v3456_v44 = vshll.u32 %v4641_v35, 16 }
 0x14d   : > { %2054 = vmatpush1.bf16.msra.mxu1 %v5351_v61  ;;  %v5379_v61 = vld [vmem:[%s6759_s1 + $0x9e0] ss:$8 sps:$4 sm:$0xff]  }
 0x14e   : > { %2055 = vmatprep.subr.bf16.mxu1 %v5359_v51  ;;  %v5388_v51 = vld [vmem:[%s6759_s1 + $0x570] ss:$8 sps:$4 sm:$0xff]  }
 0x14f   : > { %3778 = vmatpush1.bf16.msra.mxu0 %v5342_v47  ;;  %v3498_v47 = vshll.u32 %v4648_v27, 16 }
 0x150   : > { %3779 = vmatprep.subr.bf16.mxu0 %v5350_v49  ;;  %v5387_v49 = vld [vmem:[%s6759_s1 + $0x9f4] ss:$8 sps:$4 sm:$0xff]  }
 0x151   : > { %2056 = vmatpush1.bf16.msra.mxu1 %v5357_v57  ;;  %v3468_v57 = vrot.slane %v3467_v24, 4  ;;  %v3430_v24 = vrot.slane %v3428_v12, 5 }
 0x152   : > { %2057 = vmatprep.subr.bf16.mxu1 %v5365_v55  ;;  %v3496_v55 = vrot.slane %v3495_v46, 4 }
 0x153   : > { %3780 = vmatpush1.bf16.msra.mxu0 %v5348_v56  ;;  %v4635_v56 = vld [vmem:[%s5466_s4 + $0x68] sm:$0xf] }
 0x154   : > { %3781 = vmatprep.subr.bf16.mxu0 %v5356_v37  ;;  %v3472_v37 = vrot.slane %v3470_v45, 5  ;;  %v3422_v8 = vshll.u32 %v4635_v56, 16 }
 0x155   : > { %2058 = vmatpush1.bf16.msra.mxu1 %v5363_v62  ;;  %v4639_v62 = vld [vmem:[%s5466_s4 + $0x98] sm:$0xf] }
 0x156   : > { %2059 = vmatprep.subr.bf16.mxu1 %v5371_v4  ;;  %v3419_v4 = vshrl.u32 %v4635_v56, 16  ;;  %v3450_v15 = vshll.u32 %v4639_v62, 16  ;;  %v4649_v56 = vld [vmem:[%s5466_s4 + $0x104] sm:$0x1] }
 0x157   : > { %3782 = vmatpush1.bf16.msra.mxu0 %v5354_v59  ;;  %v3500_v59 = vrot.slane %v3498_v47, 5  ;;  %v3458_v47 = vrot.slane %v3456_v44, 5 }
 0x158   : > { %3783 = vmatprep.subr.bf16.mxu0 %v5362_v3  ;;  %v4318_v3 = vcombine.low %v6486_v0, %v6189_v21  ;;  %v3473_v21 = vsel %vm5495_vm2, %v3468_v57, %v3472_v37  ;;  %v3421_v30 = vrot.slane %v3419_v4, 4 }
 0x159   : > { %2060 = vmatpush1.bf16.msra.mxu1 %v5369_v10  ;;  %v3447_v10 = vshrl.u32 %v4639_v62, 16  ;;  %v3501_v0 = vsel %vm5495_vm2, %v3496_v55, %v3500_v59  ;;  %v3512_v62 = vshll.u32 %v4649_v56, 16 }
 0x15a   : > { %2061 = vmatprep.subr.bf16.mxu1 %v5377_v25  ;;  %v5391_v25 = vld [vmem:[%s6759_s1 + $0xa00] ss:$8 sps:$4 sm:$0xff]   ;;  %v4689_v45 = vcombine.low %v3473_v21, %v3501_v0 }
 0x15b   : > { %3784 = vmatpush1.bf16.msra.mxu0 %v5360_v9  ;;  %v5385_v9 = vld [vmem:[%s6759_s1 + $0x9f0] ss:$8 sps:$4 sm:$0xff]   ;;  %v3449_v36 = vrot.slane %v3447_v10, 4 }
 0x15c   : > { %3785 = vmatprep.subr.bf16.mxu0 %v5368_v18  ;;  %v4686_v18 = vcombine.low %v6506_v6, %v6510_v7  ;;  %v5398_v6 = vld [vmem:[%s6759_s1 + $0xa14] ss:$8 sps:$4 sm:$0xff]   ;;  %v4647_v7 = vld [vmem:[%s5466_s4 + $0xf8] sm:$0xf] }
 0x15d   : > { %2062 = vmatpush1.bf16.msra.mxu1 %v5375_v26  ;;  %v4690_v26 = vcombine.high %v3473_v21, %v3501_v0 }
 0x15e   : > { %2063 = vmatprep.subr.bf16.mxu1 %v5384_v23  ;;  %v4643_v23 = vld [vmem:[%s5466_s4 + $0xc8] sm:$0xf] }
 0x15f   : > { %3786 = vmatpush1.bf16.msra.mxu0 %v5366_v31  ;;  %v3424_v31 = vrot.slane %v3422_v8, 5  ;;  %v3475_v27 = vshrl.u32 %v4643_v23, 16 }
 0x160   : > { %3787 = vmatprep.subr.bf16.mxu0 %v5374_v19  ;;  %v3452_v19 = vrot.slane %v3450_v15, 5  ;;  %v3514_v15 = vrot.slane %v3512_v62, 5 }
 0x161   : > { %2064 = vmatpush1.bf16.msra.mxu1 %v5382_v41  ;;  %v3425_v20 = vor.u32 %v3424_v31, %v3421_v30  ;;  %v3478_v41 = vshll.u32 %v4643_v23, 16 }
 0x162   : > { %2065 = vmatprep.subr.bf16.mxu1 %v5390_v43  ;;  %v3506_v43 = vshll.u32 %v4647_v7, 16 }
 0x163   : > { %3788 = vmatpush1.bf16.msra.mxu0 %v5372_v40  ;;  %v3453_v40 = vor.u32 %v3452_v19, %v3449_v36  ;;  %v3426_v46 = vrot.slane %v3425_v20, 4  ;;  %v3480_v57 = vrot.slane %v3478_v41, 5 }
 0x164   : > { %3789 = vmatprep.subr.bf16.mxu0 %v5381_v42  ;;  %v3503_v42 = vshrl.u32 %v4647_v7, 16  ;;  %v3508_v55 = vrot.slane %v3506_v43, 5 }
 0x165   : > { %2066 = vmatpush1.bf16.msra.mxu1 %v5388_v51  ;;  %v3454_v51 = vrot.slane %v3453_v40, 4 }
 0x166   : > { %v3505_v37 = vrot.slane %v3503_v42, 4 }
 0x167   : > { %3790 = vmatpush1.bf16.msra.mxu0 %v5379_v61  ;;  %v4645_v61 = vld [vmem:[%s5466_s4 + $0xd4] sm:$0x1]  ;;  %v3459_v22 = vsel %vm5495_vm2, %v3454_v51, %v3458_v47 }
 0x168   : > { %3791 = vmatprep.subr.bf16.mxu0 %v5387_v49  ;;  %2068 = vmatmul.mubr.bf16.vlgmr.msra.gmra.mrb[16].mxu1 %v4318_v3  ;;  %v3477_v49 = vrot.slane %v3475_v27, 4  ;;  %v3484_v59 = vshll.u32 %v4645_v61, 16  ;;  %v3431_v3 = vsel %vm5495_vm2, %v3426_v46, %v3430_v24 }
 0x169   : > { %2077 = vmatprep.mubr.bf16.mxu1 %v4322_v63  ;;  %v5396_v63 = vld [vmem:[%s6759_s1 + $0xa10] ss:$8 sps:$4 sm:$0xff]   ;;  %v4688_v4 = vcombine.low %v3431_v3, %v3459_v22  ;;  %v3877_v3 = vlaneseq }
 0x16a   : > { %v3481_v53 = vor.u32 %v3480_v57, %v3477_v49 }
 0x16b   : > { %3792 = vmatpush1.bf16.msra.mxu0 %v5385_v9  ;;  %v3486_v9 = vrot.slane %v3484_v59, 5 }
 0x16c   : > { %3814 = vmatprep.subr.bf16.mxu0 %v5393_v16  ;;  %v3482_v8 = vrot.slane %v3481_v53, 4 }
 0x16e   : > { %3794 = vmatmul.mubr.bf16.vlgmr.msra.gmra.mrb[16].mxu0 %v4686_v18  ;;  %v3487_v16 = vsel %vm5495_vm2, %v3482_v8, %v3486_v9 }
 0x16f   : > { %3815 = vmatpush1.bf16.msra.mxu0 %v5391_v25  ;;  %3803 = vmatprep.mubr.bf16.mxu0 %v4690_v26 }
 0x170   : > { %3816 = vmatprep.subr.bf16.mxu0 %v5398_v6  ;;  %2078 = vmatmul.mubr.bf16.gmra.mrb[20].mxu1 %v4321_v58  ;;  %v3509_v58 = vor.u32 %v3508_v55, %v3505_v37 }
 0x172   : > { %v3510_v10 = vrot.slane %v3509_v58, 4 }
 0x173   : > { %3817 = vmatpush1.bf16.msra.mxu0 %v5396_v63 }
 0x174   : > { %v3515_v21 = vsel %vm5495_vm2, %v3510_v10, %v3514_v15  ;;  %v3875_v10 = vld [vmem:[%s6760_s2] sm:$0x3] }
 0x175   : > { %v4691_v0 = vcombine.low %v3487_v16, %v3515_v21 }
 0x176   : > { %3804 = vmatmul.mubr.bf16.gmra.mrb[20].mxu0 %v4689_v45 }
 0x177   : > { %3846 = vmatprep.mubr.bf16.mxu0 %v5409_v2 }
 0x17e   : > { %4728 = vmatmul.mubr.msk.bf16.vlgmr.msra.gmra.mrb[16].mxu0 %vm472_vm3, %v4688_v4 }
 0x17f   : > { %3856 = vmatprep.mubr.bf16.mxu0 %v5409_v2 }
 0x186   : > { %4729 = vmatmul.mubr.msk.bf16.gmra.mrb[20].mxu0 %vm472_vm3, %v4691_v0 }
 0x1bb   : > { %v1317_v18 = vpop.f32.mrb[0].mxu1 }
 0x1bc   : > { %v1371_v25 = vadd.f32 %v6256_v48, %v1317_v18  ;;  %v1319_v28 = vpop.f32.mrb[1].mxu1 }
 0x1bd   : > { %v1373_v30 = vadd.f32 %v6263_v50, %v1319_v28  ;;  %v1321_v31 = vpop.f32.mrb[2].mxu1 }
 0x1be   : > { %v1375_v26 = vadd.f32 %v6268_v52, %v1321_v31  ;;  %v1323_v35 = vpop.f32.mrb[3].mxu1 }
 0x1bf   : > { %v1377_v2 = vadd.f32 %v6273_v54, %v1323_v35 }
 0x1c3   : > { %v1327_v36 = vpop.f32.mrb[4].mxu1 }
 0x1c4   : > { %v1381_v19 = vadd.f32 %v6297_v60, %v1327_v36  ;;  %v1329_v29 = vpop.f32.mrb[5].mxu1 }
 0x1c5   : > { %v1383_v23 = vadd.f32 %v6302_v38, %v1329_v29  ;;  %v1331_v6 = vpop.f32.mrb[6].mxu1 }
 0x1c6   : > { %v1385_v7 = vadd.f32 %v6304_v1, %v1331_v6  ;;  %v1333_v12 = vpop.f32.mrb[7].mxu1 }
 0x1c7   : > { %v1387_v48 = vadd.f32 %v6312_v5, %v1333_v12 }
 0x1fb   : > { %v1693_v20 = vpop.f32.mrb[8].mxu1 }
 0x1fc   : > { %v4734_v50 = vadd.f32 %v1693_v20, %v1371_v25  ;;  %v1695_v44 = vpop.f32.mrb[9].mxu1 }
 0x1fd   : > { %v4739_v27 = vadd.f32 %v1695_v44, %v1373_v30  ;;  %v1697_v52 = vpop.f32.mrb[10].mxu1 }
 0x1fe   : > { %v4744_v63 = vadd.f32 %v1697_v52, %v1375_v26  ;;  %v1699_v40 = vpop.f32.mrb[11].mxu1  ;;  %v4735_v54 = vadd.f32 %v4734_v50, %v6329_v11 }
 0x1ff   : > { %v4749_v41 = vadd.f32 %v1699_v40, %v1377_v2  ;;  %v4740_v60 = vadd.f32 %v4739_v27, %v6331_v13 }
 0x200   : > { %v4745_v38 = vadd.f32 %v4744_v63, %v6333_v14 }
 0x201   : > { %v4750_v42 = vadd.f32 %v4749_v41, %v6341_v17 }
 0x203   : > { %v1703_v1 = vpop.f32.mrb[12].mxu1 }
 0x204   : > { %v4754_v43 = vadd.f32 %v1703_v1, %v1381_v19  ;;  %v1705_v24 = vpop.f32.mrb[13].mxu1 }
 0x205   : > { %v4759_v5 = vadd.f32 %v1705_v24, %v1383_v23  ;;  %v1707_v45 = vpop.f32.mrb[14].mxu1 }
 0x206   : > { %v4764_v46 = vadd.f32 %v1707_v45, %v1385_v7  ;;  %v1709_v47 = vpop.f32.mrb[15].mxu1  ;;  %v4755_v61 = vadd.f32 %v4754_v43, %v6361_v32 }
 0x207   : > { %v4769_v49 = vadd.f32 %v1709_v47, %v1387_v48  ;;  %v4760_v51 = vadd.f32 %v4759_v5, %v6363_v33 }
 0x208   : > { %v4765_v11 = vadd.f32 %v4764_v46, %v6365_v34  ;;  %v3878_v34 = vshrl.u32 %v3877_v3, 7 }
 0x209   : > { %v4770_v13 = vadd.f32 %v4769_v49, %v6373_v39 }
 0x20a   : > { %v3879_v39 = vsub.s32 0, %v3878_v34  ;;  %v3883_v15 = vsub.s32 1, %v3878_v34 }
 0x20c   : > { %v3880_v16 = vrot.slane %v3875_v10, %v3879_v39  ;;  %v3884_v0 = vrot.slane %v3875_v10, %v3883_v15 }
 0x23b   : > { %v2069_v56 = vpop.f32.mrb[16].mxu1 }
 0x23c   : > { %v4736_v14 = vadd.f32 %v4735_v54, %v2069_v56  ;;  %v2071_v57 = vpop.f32.mrb[17].mxu1 }
 0x23d   : > { %v4741_v17 = vadd.f32 %v4740_v60, %v2071_v57  ;;  %v2073_v37 = vpop.f32.mrb[18].mxu1 }
 0x23e   : > { %v4746_v55 = vadd.f32 %v4745_v38, %v2073_v37  ;;  %v2075_v59 = vpop.f32.mrb[19].mxu1 }
 0x23f   : > { %v4751_v62 = vadd.f32 %v4750_v42, %v2075_v59 }
 0x243   : > { %v2079_v22 = vpop.f32.mrb[20].mxu1 }
 0x244   : > { %v4756_v53 = vadd.f32 %v4755_v61, %v2079_v22  ;;  %v2081_v32 = vpop.f32.mrb[21].mxu1 }
 0x245   : > { %v4761_v58 = vadd.f32 %v4760_v51, %v2081_v32  ;;  %v2083_v4 = vpop.f32.mrb[22].mxu1 }
 0x246   : > { %v4766_v33 = vadd.f32 %v4765_v11, %v2083_v4  ;;  %v2085_v8 = vpop.f32.mrb[23].mxu1 }
 0x247   : > { %v4771_v9 = vadd.f32 %v4770_v13, %v2085_v8 }
 0x251   : > { %v3848_v21 = vpop.f32.mrb[16].mxu0 }
 0x252   : > { %v4737_v18 = vadd.f32 %v4736_v14, %v3848_v21  ;;  %v3850_v25 = vpop.f32.mrb[17].mxu0 }
 0x253   : > { %v4742_v28 = vadd.f32 %v4741_v17, %v3850_v25  ;;  %v3852_v30 = vpop.f32.mrb[18].mxu0 }
 0x254   : > { %v3887_v31 = vadd.f32 %v4737_v18, %v3880_v16  ;;  %v4747_v26 = vadd.f32 %v4746_v55, %v3852_v30  ;;  %v3854_v35 = vpop.f32.mrb[19].mxu0 }
 0x255   : > { %v3888_v2 = vadd.f32 %v4742_v28, %v3884_v0  ;;  %v4752_v36 = vadd.f32 %v4751_v62, %v3854_v35 }
 0x256   : > { %v3895_v19 = vmax.f32 %v3887_v31, 0.0  ;;  %v3889_v29 = vadd.f32 %v4747_v26, %v3880_v16 }
 0x257   : > { %v3896_v23 = vmax.f32 %v3888_v2, 0.0  ;;  %v3890_v6 = vadd.f32 %v4752_v36, %v3884_v0 }
 0x258   : > { %3903 = vst [vmem:[%s6745_s21] sm:$0xff] %v3895_v19  ;;  %v3897_v7 = vmax.f32 %v3889_v29, 0.0 }
 0x259   : > { %3904 = vst [vmem:[%s6745_s21 + $0x8] sm:$0xff] %v3896_v23  ;;  %v3898_v12 = vmax.f32 %v3890_v6, 0.0  ;;  %v3858_v48 = vpop.f32.mrb[20].mxu0 }
 0x25a   : > { %3905 = vst [vmem:[%s6745_s21 + $0x10] sm:$0xff] %v3897_v7  ;;  %v4757_v20 = vadd.f32 %v4756_v53, %v3858_v48  ;;  %v3860_v50 = vpop.f32.mrb[21].mxu0 }
 0x25b   : > { %3906 = vst [vmem:[%s6745_s21 + $0x18] sm:$0xff] %v3898_v12  ;;  %v4762_v44 = vadd.f32 %v4761_v58, %v3860_v50  ;;  %v3862_v27 = vpop.f32.mrb[22].mxu0 }
 0x25c   : > { %v3891_v52 = vadd.f32 %v4757_v20, %v3880_v16  ;;  %v4767_v63 = vadd.f32 %v4766_v33, %v3862_v27  ;;  %v3864_v40 = vpop.f32.mrb[23].mxu0 }
 0x25d   : > { %v3892_v54 = vadd.f32 %v4762_v44, %v3884_v0  ;;  %v4772_v41 = vadd.f32 %v4771_v9, %v3864_v40 }
 0x25e   : > { %v3899_v60 = vmax.f32 %v3891_v52, 0.0  ;;  %v3893_v38 = vadd.f32 %v4767_v63, %v3880_v16 }
 0x25f   : > { %v3900_v42 = vmax.f32 %v3892_v54, 0.0  ;;  %v3894_v1 = vadd.f32 %v4772_v41, %v3884_v0 }
 0x260   : > { %3907 = vst [vmem:[%s6745_s21 + $0x20] sm:$0xff] %v3899_v60  ;;  %v3901_v43 = vmax.f32 %v3893_v38, 0.0 }
 0x261   : > { %3908 = vst [vmem:[%s6745_s21 + $0x28] sm:$0xff] %v3900_v42  ;;  %v3902_v24 = vmax.f32 %v3894_v1, 0.0 }
 0x262   : > { %3909 = vst [vmem:[%s6745_s21 + $0x30] sm:$0xff] %v3901_v43 }
 0x263   : > { %3910 = vst [vmem:[%s6745_s21 + $0x38] sm:$0xff] %v3902_v24 }
 0x264 PF: > { %s13_s12 = sadd.s32 1, %s5407_s12  }
 0x265   : > { %p10_p4 = scmp.ge.s32.totalorder %s13_s12, 4  }
 0x267   :  { %12 = sbr.rel (!%p10_p4) target bundleno = 1 (0x1), region = 75 }

// kernel: tile.28
= control target key start
LH: loop header
LB: loop body
LE: loop exit
PB: predicated region body
PF: predicated region fallthrough
CT: control target
= control target key end

     0   :  { %s22_s0 = inlined_call_operand.vmem [shape: f32[64], index: 0, kind: input, shape index: {}]   ;;  %s23_s1 = inlined_call_operand.vmem [shape: f32[4,64], index: 1, kind: output, shape index: {}]  }
   0x1   :  { %v4_v0 = vld [vmem:[%s22_s0] ss:$0 sm:$0xff] }
   0x2   :  { %5 = vst [vmem:[%s23_s1] sm:$0xf] %v4_v0 }

// kernel: tile.29
= control target key start
LH: loop header
LB: loop body
LE: loop exit
PB: predicated region body
PF: predicated region fallthrough
CT: control target
= control target key end

     0   :  { %s6_s8 = smov 3  ;;  %vm8_vm0 = vcmask 523264   ;;  %s30_s9 = smov 64   ;;  %vm15_vm1 = vcmask 1048064   ;;  %s50_s0 = inlined_call_operand.vmem [shape: f32[4,64], index: 0, kind: input, shape index: {}]   ;;  %s51_s1 = inlined_call_operand.vmem [shape: f32[1,256], index: 1, kind: output, shape index: {}]  }
   0x1   :  { %v4_v0 = vld [vmem:[%s50_s0] sm:$0xf]  ;;  %s11_s0 = smov 3 }
   0x2   :  { %5 = vst [vmem:[#allocation1] sm:$0xf] %v4_v0 }
   0x9   :  { %v12_v1 = vld [vmem:[#allocation1 + $0x1] ss:$2 sm:%s11_s0]   ;;  %v7_v2 = vld [vmem:[#allocation1] ss:$2 sm:%s6_s8]  }
   0xa   :  { %13 = vrot.lane.b32.xlu0 %v12_v1, %s30_s9  ;;  %9 = vst.msk [vmem:[#allocation0] ss:$8 sm:$0x3] %vm8_vm0, %v7_v2  }
  0x7c   :  { %v14_v3 = vpop.permute.xlu0 %13  }
  0x7d   :  { %16 = vst.msk [vmem:[#allocation0] ss:$8 sm:$0x3] %vm15_vm1, %v14_v3  }
  0x84   :  { %v20_v4 = vld [vmem:[#allocation0] sm:$0x1]  ;;  %v24_v5 = vld [vmem:[#allocation0 + $0x8] sm:$0x1] }
  0x85   :  { %22 = vst [vmem:[%s51_s1] sm:$0x1] %v20_v4  ;;  %28 = vst [vmem:[%s51_s1 + $0x1] sm:$0x1] %v24_v5 }

// kernel: encoder3d_forward.5
= control target key start
LH: loop header
LB: loop body
LE: loop exit
PB: predicated region body
PF: predicated region fallthrough
CT: control target
= control target key end

     0   :  { %s5959_s12 = smov 0   ;;  %s7398_s0 = inlined_call_operand.vmem [shape: bf16[2,6,2,5,320], index: 0, kind: input, shape index: {}]   ;;  %s7399_s1 = inlined_call_operand.vmem [shape: bf16[9,320,256], index: 1, kind: input, shape index: {}]   ;;  %s7400_s2 = inlined_call_operand.vmem [shape: f32[1,256], index: 2, kind: input, shape index: {}]   ;;  %s7401_s3 = inlined_call_operand.vmem [shape: f32[2,16,256], index: 3, kind: output, shape index: {}]  }
   0x1 LB: > { %s4458_s13 = sadd.s32 4294967295, %s5935_s12   ;;  %p4462_p0 = scmp.ge.s32.totalorder %s5935_s12, 1  ;;  %s5935_s12 = sphi %s5959_s12, %s13_s12  }
   0x2   : > { %p137_p1 = scmp.lt.s32.totalorder %s5935_s12, 3 }
   0x4   : > { %p138_p2 = pnand %p4462_p0, %p137_p1 }
   0x5   : > { %v5389_v0 = vld [vmem:[%s7399_s1 + $0x144] ss:$8 sps:$4 sm:$0xff] (!%p138_p2)   ;;  %p161_p3 = scmp.lt.s32.totalorder (!%p138_p2), %s4458_s13, 1  ;;  %v5391_v1 = vld [vmem:[%s7399_s1 + $0x140] ss:$8 sps:$4 sm:$0xff] (!%p138_p2)   ;;  %v5937_v2 = vmov (!%p138_p2), 0   ;;  %v413_v44 = vlaneseq (!%p138_p2) }
   0x6   : > { %141 = sbr.rel (%p138_p2) target bundleno = 617 (0x269), region = 32  ;;  %1558 = vmatprep.mubr.bf16.mxu0 (!%p138_p2), %v5937_v2  ;;  %647 = vmatprep.subr.bf16.mxu1 (!%p138_p2), %v5389_v0  ;;  %v5392_v3 = vld [vmem:[%s7399_s1 + $0x154] ss:$8 sps:$4 sm:$0xff] (!%p138_p2)   ;;  %v5394_v4 = vld [vmem:[%s7399_s1 + $0x150] ss:$8 sps:$4 sm:$0xff] (!%p138_p2)   ;;  %vm643_vm7 = vcmask (!%p138_p2), 523264  }
   0x7   : > { %648 = vmatpush1.bf16.msra.mxu1 (!%p138_p2), %v5391_v1  ;;  %v5395_v5 = vld [vmem:[%s7399_s1 + $0x384] ss:$8 sps:$4 sm:$0xff] (!%p138_p2)   ;;  %v5397_v6 = vld [vmem:[%s7399_s1 + $0x380] ss:$8 sps:$4 sm:$0xff] (!%p138_p2)   ;;  %v5401_v8 = vld [vmem:[%s7399_s1 + $0x394] ss:$8 sps:$4 sm:$0xff] (!%p138_p2)  }
   0x8   : > { %649 = vmatprep.subr.bf16.mxu1 (!%p138_p2), %v5392_v3  ;;  %v5398_v7 = vld [vmem:[%s7399_s1 + $0x164] ss:$8 sps:$4 sm:$0xff] (!%p138_p2)   ;;  %1526 = vmatprep.subr.bf16.mxu0 (!%p138_p2), %v5395_v5  ;;  %v5403_v9 = vld [vmem:[%s7399_s1 + $0x390] ss:$8 sps:$4 sm:$0xff] (!%p138_p2)   ;;  %v5400_v10 = vld [vmem:[%s7399_s1 + $0x160] ss:$8 sps:$4 sm:$0xff] (!%p138_p2)  }
   0x9   : > { %1527 = vmatpush1.bf16.msra.mxu0 (!%p138_p2), %v5397_v6  ;;  %v5404_v11 = vld [vmem:[%s7399_s1 + $0x174] ss:$8 sps:$4 sm:$0xff] (!%p138_p2)   ;;  %v5407_v12 = vld [vmem:[%s7399_s1 + $0x3a4] ss:$8 sps:$4 sm:$0xff] (!%p138_p2)   ;;  %v5409_v13 = vld [vmem:[%s7399_s1 + $0x3a0] ss:$8 sps:$4 sm:$0xff] (!%p138_p2)  }
   0xa   : > { %1528 = vmatprep.subr.bf16.mxu0 (!%p138_p2), %v5401_v8  ;;  %vm1139_vm0 = vsmask.f32 (!%p138_p2), 1280  ;;  %v5406_v14 = vld [vmem:[%s7399_s1 + $0x170] ss:$8 sps:$4 sm:$0xff] (!%p138_p2)   ;;  %v5413_v15 = vld [vmem:[%s7399_s1 + $0x3b4] ss:$8 sps:$4 sm:$0xff] (!%p138_p2)  }
   0xb   : > { %650 = vmatpush1.bf16.msra.mxu1 (!%p138_p2), %v5394_v4  ;;  %v5410_v16 = vld [vmem:[%s7399_s1 + $0x184] ss:$8 sps:$4 sm:$0xff] (!%p138_p2)   ;;  %vm1140_vm1 = vsmask.f32 (!%p138_p2), 3336  ;;  %v5412_v17 = vld [vmem:[%s7399_s1 + $0x180] ss:$8 sps:$4 sm:$0xff] (!%p138_p2)  }
   0xc   : > { %651 = vmatprep.subr.bf16.mxu1 (!%p138_p2), %v5398_v7  ;;  %vm1142_vm2 = vsmask.f32 (!%p138_p2), 5392  ;;  %v5415_v18 = vld [vmem:[%s7399_s1 + $0x3b0] ss:$8 sps:$4 sm:$0xff] (!%p138_p2)   ;;  %v5416_v19 = vld [vmem:[%s7399_s1 + $0x194] ss:$8 sps:$4 sm:$0xff] (!%p138_p2)   ;;  %vm6050_vm4 = vmor (!%p138_p2), %vm1139_vm0, %vm1140_vm1 }
   0xd   : > { %s7409_s13 = smov (!%p161_p3, %s4458_s13), 1  ;;  %1529 = vmatpush1.bf16.msra.mxu0 %v5403_v9  ;;  %v5421_v20 = vld [vmem:[%s7399_s1 + $0x4c4] ss:$8 sps:$4 sm:$0xff]   ;;  %vm1144_vm3 = vsmask.f32 7448  ;;  %vm6059_vm5 = vmor %vm6050_vm4, %vm1142_vm2  ;;  %v6069_v63 = vshrl.u32 %v413_v44, 7 }
   0xe   : > { %s5378_s11 = smul.u32 144, %s7409_s13  ;;  %1530 = vmatprep.subr.bf16.mxu0 %v5407_v12  ;;  %v5418_v23 = vld [vmem:[%s7399_s1 + $0x190] ss:$8 sps:$4 sm:$0xff]   ;;  %v5422_v28 = vld [vmem:[%s7399_s1 + $0x1a4] ss:$8 sps:$4 sm:$0xff]   ;;  %vm6074_vm6 = vmor %vm6059_vm5, %vm1144_vm3  ;;  %s5309_s10 = sshll.u32 %s7409_s13, 5 }
   0xf   : > { %652 = vmatpush1.bf16.msra.mxu1 %v5400_v10  ;;  %v5938_v42 = vmov 1983009808   ;;  %v5424_v53 = vld [vmem:[%s7399_s1 + $0x1a0] ss:$8 sps:$4 sm:$0xff]   ;;  %v5428_v62 = vld [vmem:[%s7399_s1 + $0x1b4] ss:$8 sps:$4 sm:$0xff]   ;;  %s170_s15 = scalar_lea.vmem %s7401_s3, %s5309_s10 }
  0x10   : > { %653 = vmatprep.subr.bf16.mxu1 %v5404_v11  ;;  %s6022_s24 = scalar_lea.vmem %s7398_s0, %s5378_s11  ;;  %v411_v43 = vunpack.c.l.s4 %v5938_v42  ;;  %v5430_v9 = vld [vmem:[%s7399_s1 + $0x1b0] ss:$8 sps:$4 sm:$0xff]   ;;  %v5427_v35 = vld [vmem:[%s7399_s1 + $0x4d4] ss:$8 sps:$4 sm:$0xff]  }
  0x11   : > { %1531 = vmatpush1.bf16.msra.mxu0 %v5409_v13  ;;  %v4620_v21 = vld.sshfl [vmem:[%s6022_s24] sm:$0x5f pattern:$0x76325410]  ;;  %v5454_v44 = vld [vmem:[%s7399_s1 + $0x1f0] ss:$8 sps:$4 sm:$0xff]  }
  0x12   : > { %1532 = vmatprep.subr.bf16.mxu0 %v5413_v15  ;;  %v4621_v22 = vld.sshfl [vmem:[%s6022_s24 + $0x8] sm:$0x13 pattern:$0x76325410]  ;;  %v412_v5 = vunpack.c.0.s8 %v411_v43  ;;  %v5433_v43 = vld [vmem:[%s7399_s1 + $0x4e4] ss:$8 sps:$4 sm:$0xff]  }
  0x13   : > { %654 = vmatpush1.bf16.msra.mxu1 %v5406_v14  ;;  %v4622_v24 = vld.sshfl [vmem:[%s6022_s24 + $0x18] sm:$0x5f pattern:$0x76325410]  ;;  %v1089_v25 = vcombine.low %v4620_v21, %v4621_v22  ;;  %v1090_v26 = vcombine.high %v4620_v21, %v4621_v22  ;;  %v5436_v22 = vld [vmem:[%s7399_s1 + $0x1c0] ss:$8 sps:$4 sm:$0xff]  }
  0x14   : > { %655 = vmatprep.subr.bf16.mxu1 %v5410_v16  ;;  %v4623_v27 = vld.sshfl [vmem:[%s6022_s24 + $0x20] sm:$0x13 pattern:$0x76325410]  ;;  %v5434_v16 = vld [vmem:[%s7399_s1 + $0x1c4] ss:$8 sps:$4 sm:$0xff]  }
  0x15   : > { %1533 = vmatpush1.bf16.msra.mxu0 %v5415_v18  ;;  %v4624_v29 = vld.sshfl [vmem:[%s6022_s24 + $0x30] sm:$0x5f pattern:$0x76325410]  ;;  %v1105_v30 = vcombine.low %v4622_v24, %v4623_v27  ;;  %v1147_v31 = vshrl.u32 %v1089_v25, 16  ;;  %v1150_v32 = vshll.u32 %v1089_v25, 16  ;;  %v1106_v34 = vcombine.high %v4622_v24, %v4623_v27 }
  0x16   : > { %1974 = vmatprep.subr.bf16.mxu0 %v5421_v20  ;;  %v4625_v33 = vld.sshfl [vmem:[%s6022_s24 + $0x38] sm:$0x13 pattern:$0x76325410]  ;;  %v1156_v36 = vshll.u32 %v1090_v26, 16  ;;  %v6089_v20 = vsub.s32 %v412_v5, %v6069_v63 }
  0x17   : > { %656 = vmatpush1.bf16.msra.mxu1 %v5412_v17  ;;  %v4626_v37 = vld.sshfl [vmem:[%s6022_s24 + $0x48] sm:$0x5f pattern:$0x76325410]  ;;  %v1121_v38 = vcombine.low %v4624_v29, %v4625_v33  ;;  %v1122_v39 = vcombine.high %v4624_v29, %v4625_v33  ;;  %v1149_v40 = vrot.slane %v1147_v31, 6  ;;  %v1152_v41 = vrot.slane %v1150_v32, 7 }
  0x18   : > { %657 = vmatprep.subr.bf16.mxu1 %v5416_v19  ;;  %v4627_v45 = vld.sshfl [vmem:[%s6022_s24 + $0x50] sm:$0x13 pattern:$0x76325410]  ;;  %v1158_v46 = vrot.slane %v1156_v36, 7  ;;  %v1161_v47 = vshrl.u32 %v1105_v30, 16 }
  0x19   : > { %v1137_v48 = vcombine.low %v4626_v37, %v4627_v45  ;;  %v1138_v49 = vcombine.high %v4626_v37, %v4627_v45  ;;  %v1153_v51 = vor.u32 %v1152_v41, %v1149_v40  ;;  %v1164_v52 = vshll.u32 %v1105_v30, 16  ;;  %v5440_v26 = vld [vmem:[%s7399_s1 + $0x1d4] ss:$8 sps:$4 sm:$0xff]   ;;  %v5442_v30 = vld [vmem:[%s7399_s1 + $0x1d0] ss:$8 sps:$4 sm:$0xff]  }
  0x1a   : > { %v1163_v54 = vrot.slane %v1161_v47, 6  ;;  %v1170_v55 = vshll.u32 %v1106_v34, 16  ;;  %v1175_v56 = vshrl.u32 %v1121_v38, 16  ;;  %v1178_v57 = vshll.u32 %v1121_v38, 16  ;;  %v5446_v31 = vld [vmem:[%s7399_s1 + $0x1e4] ss:$8 sps:$4 sm:$0xff]  }
  0x1b   : > { %658 = vmatpush1.bf16.msra.mxu1 %v5418_v23  ;;  %v1154_v58 = vrot.slane %v1153_v51, 2  ;;  %v1166_v59 = vrot.slane %v1164_v52, 7  ;;  %v1184_v60 = vshll.u32 %v1122_v39, 16  ;;  %v1189_v61 = vshrl.u32 %v1137_v48, 16  ;;  %v5419_v33 = vld [vmem:[%s7399_s1 + $0x4c0] ss:$8 sps:$4 sm:$0xff]  }
  0x1c   : > { %659 = vmatprep.subr.bf16.mxu1 %v5422_v28  ;;  %v1177_v1 = vrot.slane %v1175_v56, 6  ;;  %v1180_v3 = vrot.slane %v1178_v57, 7  ;;  %v1192_v4 = vshll.u32 %v1137_v48, 16  ;;  %v1172_v7 = vrot.slane %v1170_v55, 7  ;;  %v5448_v36 = vld [vmem:[%s7399_s1 + $0x1e0] ss:$8 sps:$4 sm:$0xff]  }
  0x1d   : > { %v1167_v6 = vor.u32 %v1166_v59, %v1163_v54  ;;  %v1191_v8 = vrot.slane %v1189_v61, 6  ;;  %v1186_v11 = vrot.slane %v1184_v60, 7  ;;  %v1198_v13 = vshll.u32 %v1138_v49, 16  ;;  %v5425_v37 = vld [vmem:[%s7399_s1 + $0x4d0] ss:$8 sps:$4 sm:$0xff]  }
  0x1e   : > { %v1181_v10 = vor.u32 %v1180_v3, %v1177_v1  ;;  %v1194_v12 = vrot.slane %v1192_v4, 7  ;;  %v6083_v14 = vsel %vm6074_vm6, %v1154_v58, %v1158_v46  ;;  %v6134_v38 = vld.sshfl [vmem:[%s6022_s24 + $0x20] sm:$0x3 pattern:$0x76325410] }
  0x1f   : > { %660 = vmatpush1.bf16.msra.mxu1 %v5424_v53  ;;  %v1168_v15 = vrot.slane %v1167_v6, 2  ;;  %v1200_v19 = vrot.slane %v1198_v13, 7  ;;  %v6137_v39 = vld.sshfl [vmem:[%s6022_s24 + $0x38] sm:$0x3 pattern:$0x76325410] }
  0x20   : > { %661 = vmatprep.subr.bf16.mxu1 %v5428_v62  ;;  %v1182_v17 = vrot.slane %v1181_v10, 2  ;;  %v1195_v18 = vor.u32 %v1194_v12, %v1191_v8  ;;  %v5452_v40 = vld [vmem:[%s7399_s1 + $0x1f4] ss:$8 sps:$4 sm:$0xff]   ;;  %v5458_v45 = vld [vmem:[%s7399_s1 + $0x204] ss:$8 sps:$4 sm:$0xff]   ;;  %v4766_v46 = vcombine.low %v6134_v38, %v6137_v39 }
  0x21   : > { %v6093_v21 = vsel %vm6074_vm6, %v1168_v15, %v1172_v7  ;;  %v6144_v41 = vld.sshfl [vmem:[%s6022_s24 + $0x50] sm:$0x3 pattern:$0x76325410]  ;;  %v5431_v48 = vld [vmem:[%s7399_s1 + $0x4e0] ss:$8 sps:$4 sm:$0xff]  }
  0x22   : > { %v6100_v23 = vsel %vm6074_vm6, %v1182_v17, %v1186_v11  ;;  %v1196_v24 = vrot.slane %v1195_v18, 2  ;;  %v1244_v25 = vcombine.high %v6083_v14, %v6093_v21  ;;  %v4724_v42 = vld.sshfl [vmem:[%s6022_s24 + $0x68] sm:$0x3 pattern:$0x76325410]  ;;  %v4578_v50 = vcombine.low %v6137_v39, %v6144_v41 }
  0x23   : > { %662 = vmatpush1.bf16.msra.mxu1 %v5430_v9  ;;  %v4768_v47 = vcombine.low %v6144_v41, %v4724_v42  ;;  %v5439_v49 = vld [vmem:[%s7399_s1 + $0x4f4] ss:$8 sps:$4 sm:$0xff]   ;;  %v5460_v51 = vld [vmem:[%s7399_s1 + $0x200] ss:$8 sps:$4 sm:$0xff]   ;;  %v1708_v53 = vrot.slane %v4766_v46, %v6089_v20  ;;  %v5437_v55 = vld [vmem:[%s7399_s1 + $0x4f0] ss:$8 sps:$4 sm:$0xff]  }
  0x24   : > { %663 = vmatprep.subr.bf16.mxu1 %v5434_v16  ;;  %v6109_v27 = vsel %vm6074_vm6, %v1196_v24, %v1200_v19  ;;  %v1260_v29 = vrot.slane %v1244_v25, %v6089_v20  ;;  %v5464_v52 = vld [vmem:[%s7399_s1 + $0x214] ss:$8 sps:$4 sm:$0xff]   ;;  %v5445_v56 = vld [vmem:[%s7399_s1 + $0x604] ss:$8 sps:$4 sm:$0xff]   ;;  %v5466_v57 = vld [vmem:[%s7399_s1 + $0x210] ss:$8 sps:$4 sm:$0xff]  }
  0x25   : > { %v1246_v28 = vcombine.high %v6100_v23, %v6109_v27  ;;  %v1722_v54 = vrot.slane %v4768_v47, %v6089_v20  ;;  %v5470_v58 = vld [vmem:[%s7399_s1 + $0x224] ss:$8 sps:$4 sm:$0xff]   ;;  %v5443_v60 = vld [vmem:[%s7399_s1 + $0x600] ss:$8 sps:$4 sm:$0xff]   ;;  %v5451_v61 = vld [vmem:[%s7399_s1 + $0x614] ss:$8 sps:$4 sm:$0xff]  }
  0x26   : > { %v4482_v62 = vld.sshfl [vmem:[%s6022_s24 + $0xc] sm:$0xf pattern:$0x76325410]  ;;  %v5472_v1 = vld [vmem:[%s7399_s1 + $0x220] ss:$8 sps:$4 sm:$0xff]  }
  0x27   : > { %664 = vmatpush1.bf16.msra.mxu1 %v5436_v22  ;;  %v1274_v32 = vrot.slane %v1246_v28, %v6089_v20  ;;  %v1725_v59 = vcombine.low %v1708_v53, %v1722_v54  ;;  %v4484_v3 = vld.sshfl [vmem:[%s6022_s24 + $0x24] sm:$0xf pattern:$0x76325410]  ;;  %v5449_v4 = vld [vmem:[%s7399_s1 + $0x610] ss:$8 sps:$4 sm:$0xff]  }
  0x28   : > { %665 = vmatprep.subr.bf16.mxu1 %v5440_v26  ;;  %v6203_v5 = vld.sshfl [vmem:[%s6022_s24 + $0x2c] sm:$0x3 pattern:$0x76325410]  ;;  %v5476_v8 = vld [vmem:[%s7399_s1 + $0x234] ss:$8 sps:$4 sm:$0xff]   ;;  %v4530_v10 = vcombine.low %v4482_v62, %v4484_v3 }
  0x29   : > { %v1277_v34 = vcombine.low %v1260_v29, %v1274_v32  ;;  %v6206_v6 = vld.sshfl [vmem:[%s6022_s24 + $0x44] sm:$0x3 pattern:$0x76325410]  ;;  %v5478_v17 = vld [vmem:[%s7399_s1 + $0x230] ss:$8 sps:$4 sm:$0xff]  }
  0x2a   : > { %v4823_v7 = vld.sshfl [vmem:[%s6022_s24 + $0x5c] sm:$0x3 pattern:$0x76325410]  ;;  %v416_v15 = vrot.slane %v4530_v10, %v6089_v20  ;;  %v5457_v16 = vld [vmem:[%s7399_s1 + $0x624] ss:$8 sps:$4 sm:$0xff]   ;;  %v4867_v22 = vcombine.low %v6203_v5, %v6206_v6 }
  0x2b   : > { %666 = vmatpush1.bf16.msra.mxu1 %v5442_v30  ;;  %4708 = vmatmul.mubr.msk.bf16.vlgmr.msra.gmra.mrb[0].mxu0 %vm643_vm7, %v1277_v34  ;;  %v4486_v9 = vld.sshfl [vmem:[%s6022_s24 + $0x3c] sm:$0xf pattern:$0x76325410]  ;;  %v5484_v19 = vld [vmem:[%s7399_s1 + $0x244] ss:$8 sps:$4 sm:$0xff]   ;;  %v4533_v46 = vcombine.low %v6206_v6, %v4823_v7 }
  0x2c   : > { %667 = vmatprep.subr.bf16.mxu1 %v5446_v31  ;;  %1975 = vmatpush1.bf16.msra.mxu0 %v5419_v33  ;;  %v4488_v11 = vld.sshfl [vmem:[%s6022_s24 + $0x54] sm:$0xf pattern:$0x76325410]  ;;  %v5455_v25 = vld [vmem:[%s7399_s1 + $0x620] ss:$8 sps:$4 sm:$0xff]   ;;  %v2156_v32 = vrot.slane %v4867_v22, %v6089_v20 }
  0x2d   : > { %2006 = vmatprep.mubr.bf16.mxu0 %v5937_v2  ;;  %1976 = vmatprep.subr.bf16.mxu0 %v5427_v35  ;;  %v4825_v12 = vld.sshfl [vmem:[%s6022_s24 + $0x74] sm:$0x3 pattern:$0x76325410]  ;;  %v4532_v13 = vcombine.low %v4486_v9, %v4488_v11  ;;  %v5482_v30 = vld [vmem:[%s7399_s1 + $0x240] ss:$8 sps:$4 sm:$0xff]   ;;  %v437_v53 = vrot.slane %v4533_v46, %v6089_v20 }
  0x2e   : > { %v4869_v24 = vcombine.low %v4823_v7, %v4825_v12  ;;  %v5463_v29 = vld [vmem:[%s7399_s1 + $0x634] ss:$8 sps:$4 sm:$0xff]   ;;  %v5461_v34 = vld [vmem:[%s7399_s1 + $0x630] ss:$8 sps:$4 sm:$0xff]   ;;  %v5469_v35 = vld [vmem:[%s7399_s1 + $0x644] ss:$8 sps:$4 sm:$0xff]  }
  0x2f   : > { %668 = vmatpush1.bf16.msra.mxu1 %v5448_v36  ;;  %v430_v18 = vrot.slane %v4532_v13, %v6089_v20  ;;  %v5490_v31 = vld [vmem:[%s7399_s1 + $0x254] ss:$8 sps:$4 sm:$0xff]   ;;  %v5488_v36 = vld [vmem:[%s7399_s1 + $0x250] ss:$8 sps:$4 sm:$0xff]   ;;  %v5494_v47 = vld [vmem:[%s7399_s1 + $0x260] ss:$8 sps:$4 sm:$0xff]  }
  0x30   : > { %669 = vmatprep.subr.bf16.mxu1 %v5452_v40  ;;  %1977 = vmatpush1.bf16.msra.mxu0 %v5425_v37  ;;  %v2170_v33 = vrot.slane %v4869_v24, %v6089_v20  ;;  %v5496_v37 = vld [vmem:[%s7399_s1 + $0x264] ss:$8 sps:$4 sm:$0xff]   ;;  %v4483_v40 = vld.sshfl [vmem:[%s6022_s24 + $0x14] sm:$0x3 pattern:$0x76325410] }
  0x31   : > { %1978 = vmatprep.subr.bf16.mxu0 %v5433_v43  ;;  %v439_v26 = vcombine.high %v416_v15, %v430_v18  ;;  %v438_v28 = vcombine.low %v416_v15, %v430_v18  ;;  %v5467_v43 = vld [vmem:[%s7399_s1 + $0x640] ss:$8 sps:$4 sm:$0xff]   ;;  %v5500_v54 = vld [vmem:[%s7399_s1 + $0x270] ss:$8 sps:$4 sm:$0xff]   ;;  %v5493_v62 = vld [vmem:[%s7399_s1 + $0x684] ss:$8 sps:$4 sm:$0xff]  }
  0x32   : > { %v2173_v42 = vcombine.low %v2156_v32, %v2170_v33  ;;  %v5520_v3 = vld [vmem:[%s7399_s1 + $0x24] ss:$8 sps:$4 sm:$0xff]   ;;  %v5518_v6 = vld [vmem:[%s7399_s1 + $0x20] ss:$8 sps:$4 sm:$0xff]   ;;  %v5526_v7 = vld [vmem:[%s7399_s1 + $0x34] ss:$8 sps:$4 sm:$0xff]  }
  0x33   : > { %670 = vmatpush1.bf16.msra.mxu1 %v5454_v44  ;;  %679 = vmatprep.mubr.bf16.mxu1 %v439_v26  ;;  %v5475_v44 = vld [vmem:[%s7399_s1 + $0x654] ss:$8 sps:$4 sm:$0xff]   ;;  %v5505_v9 = vld [vmem:[%s7399_s1 + $0x6a4] ss:$8 sps:$4 sm:$0xff]   ;;  %v5524_v10 = vld [vmem:[%s7399_s1 + $0x30] ss:$8 sps:$4 sm:$0xff]  }
  0x34   : > { %671 = vmatprep.subr.bf16.mxu1 %v5458_v45  ;;  %1979 = vmatpush1.bf16.msra.mxu0 %v5431_v48  ;;  %v4531_v45 = vcombine.low %v4483_v40, %v6203_v5  ;;  %v5502_v48 = vld [vmem:[%s7399_s1 + $0x274] ss:$8 sps:$4 sm:$0xff]   ;;  %v5532_v11 = vld [vmem:[%s7399_s1 + $0x44] ss:$8 sps:$4 sm:$0xff]   ;;  %v5503_v15 = vld [vmem:[%s7399_s1 + $0x6a0] ss:$8 sps:$4 sm:$0xff]  }
  0x35   : > { %1980 = vmatprep.subr.bf16.mxu0 %v5439_v49  ;;  %v5473_v49 = vld [vmem:[%s7399_s1 + $0x650] ss:$8 sps:$4 sm:$0xff]   ;;  %v5499_v5 = vld [vmem:[%s7399_s1 + $0x694] ss:$8 sps:$4 sm:$0xff]   ;;  %v5544_v33 = vld [vmem:[%s7399_s1 + $0x64] ss:$8 sps:$4 sm:$0xff]  }
  0x36   : > { %v4925_v12 = vld.sshfl [vmem:[%s6022_s24 + $0x60] sm:$0x5f pattern:$0x76325410]  ;;  %v5538_v22 = vld [vmem:[%s7399_s1 + $0x54] ss:$8 sps:$4 sm:$0xff]  }
  0x37   : > { %672 = vmatpush1.bf16.msra.mxu1 %v5460_v51  ;;  %v5481_v51 = vld [vmem:[%s7399_s1 + $0x664] ss:$8 sps:$4 sm:$0xff]   ;;  %v4926_v13 = vld.sshfl [vmem:[%s6022_s24 + $0x68] sm:$0x13 pattern:$0x76325410] }
  0x38   : > { %673 = vmatprep.subr.bf16.mxu1 %v5464_v52  ;;  %1981 = vmatpush1.bf16.msra.mxu0 %v5437_v55  ;;  %v423_v52 = vrot.slane %v4531_v45, %v6089_v20  ;;  %v5508_v55 = vld [vmem:[%s7399_s1 + $0x4] ss:$8 sps:$4 sm:$0xff]   ;;  %v2548_v18 = vcombine.high %v4925_v12, %v4926_v13  ;;  %v5536_v32 = vld [vmem:[%s7399_s1 + $0x50] ss:$8 sps:$4 sm:$0xff]   ;;  %v5523_v40 = vld [vmem:[%s7399_s1 + $0x6d4] ss:$8 sps:$4 sm:$0xff]  }
  0x39   : > { %2422 = vmatprep.subr.bf16.mxu0 %v5445_v56  ;;  %v5479_v56 = vld [vmem:[%s7399_s1 + $0x660] ss:$8 sps:$4 sm:$0xff]   ;;  %v5812_v0 = vld [vmem:[%s7399_s1 + $0x4b0] ss:$8 sps:$4 sm:$0xff]  }
  0x3a   : > { %v2601_v26 = vshll.u32 %v2548_v18, 16  ;;  %v5572_v18 = vld [vmem:[%s7399_s1 + $0xb0] ss:$8 sps:$4 sm:$0xff]  }
  0x3b   : > { %674 = vmatpush1.bf16.msra.mxu1 %v5466_v57  ;;  %4809 = vmatmul.mubr.msk.bf16.vlgmr.msra.gmra.mrb[4].mxu0 %vm643_vm7, %v1725_v59  ;;  %v5487_v57 = vld [vmem:[%s7399_s1 + $0x674] ss:$8 sps:$4 sm:$0xff]   ;;  %v5506_v59 = vld [vmem:[%s7399_s1] ss:$8 sps:$4 sm:$0xff]  }
  0x3c   : > { %675 = vmatprep.subr.bf16.mxu1 %v5470_v58  ;;  %2423 = vmatpush1.bf16.msra.mxu0 %v5443_v60  ;;  %v440_v58 = vcombine.low %v423_v52, %v437_v53  ;;  %v5514_v60 = vld [vmem:[%s7399_s1 + $0x14] ss:$8 sps:$4 sm:$0xff]   ;;  %v5556_v53 = vld [vmem:[%s7399_s1 + $0x84] ss:$8 sps:$4 sm:$0xff]  }
  0x3d   : > { %2454 = vmatprep.mubr.bf16.mxu0 %v5937_v2  ;;  %2424 = vmatprep.subr.bf16.mxu0 %v5451_v61  ;;  %v5485_v61 = vld [vmem:[%s7399_s1 + $0x670] ss:$8 sps:$4 sm:$0xff]  }
  0x3f   : > { %676 = vmatpush1.bf16.msra.mxu1 %v5472_v1  ;;  %v5512_v1 = vld [vmem:[%s7399_s1 + $0x10] ss:$8 sps:$4 sm:$0xff]  }
  0x40   : > { %677 = vmatprep.subr.bf16.mxu1 %v5476_v8  ;;  %2425 = vmatpush1.bf16.msra.mxu0 %v5449_v4  ;;  %v5491_v4 = vld [vmem:[%s7399_s1 + $0x680] ss:$8 sps:$4 sm:$0xff]   ;;  %v5497_v8 = vld [vmem:[%s7399_s1 + $0x690] ss:$8 sps:$4 sm:$0xff]  }
  0x41   : > { %2426 = vmatprep.subr.bf16.mxu0 %v5457_v16  ;;  %v5511_v16 = vld [vmem:[%s7399_s1 + $0x6b4] ss:$8 sps:$4 sm:$0xff]  }
  0x43   : > { %678 = vmatpush1.bf16.msra.mxu1 %v5478_v17  ;;  %v2547_v17 = vcombine.low %v4925_v12, %v4926_v13  ;;  %v5566_v12 = vld [vmem:[%s7399_s1 + $0xa0] ss:$8 sps:$4 sm:$0xff]  }
  0x44   : > { %690 = vmatprep.subr.bf16.mxu1 %v5484_v19  ;;  %2427 = vmatpush1.bf16.msra.mxu0 %v5455_v25  ;;  %v5530_v19 = vld [vmem:[%s7399_s1 + $0x40] ss:$8 sps:$4 sm:$0xff]  }
  0x45   : > { %2428 = vmatprep.subr.bf16.mxu0 %v5463_v29  ;;  %v2592_v24 = vshrl.u32 %v2547_v17, 16  ;;  %v2595_v25 = vshll.u32 %v2547_v17, 16  ;;  %v5553_v17 = vld [vmem:[%s7399_s1 + $0x724] ss:$8 sps:$4 sm:$0xff]  }
  0x46   : > { %680 = vmatmul.mubr.bf16.vlgmr.msra.gmra.mrb[0].mxu1 %v438_v28  ;;  %v5509_v28 = vld [vmem:[%s7399_s1 + $0x6b0] ss:$8 sps:$4 sm:$0xff]  }
  0x47   : > { %691 = vmatpush1.bf16.msra.mxu1 %v5482_v30  ;;  %722 = vmatprep.mubr.bf16.mxu1 %v5937_v2  ;;  %v2594_v29 = vrot.slane %v2592_v24, 6  ;;  %v2597_v30 = vrot.slane %v2595_v25, 7  ;;  %v5559_v24 = vld [vmem:[%s7399_s1 + $0x734] ss:$8 sps:$4 sm:$0xff]   ;;  %v5578_v25 = vld [vmem:[%s7399_s1 + $0xc0] ss:$8 sps:$4 sm:$0xff]  }
  0x48   : > { %692 = vmatprep.subr.bf16.mxu1 %v5490_v31  ;;  %2429 = vmatpush1.bf16.msra.mxu0 %v5461_v34  ;;  %v5517_v31 = vld [vmem:[%s7399_s1 + $0x6c4] ss:$8 sps:$4 sm:$0xff]  }
  0x49   : > { %2886 = vmatprep.subr.bf16.mxu0 %v5469_v35  ;;  %v2598_v34 = vor.u32 %v2597_v30, %v2594_v29  ;;  %v2603_v35 = vrot.slane %v2601_v26, 7  ;;  %v5586_v26 = vld [vmem:[%s7399_s1 + $0xd4] ss:$8 sps:$4 sm:$0xff]   ;;  %v5565_v29 = vld [vmem:[%s7399_s1 + $0x744] ss:$8 sps:$4 sm:$0xff]  }
  0x4a   : > { %v5584_v30 = vld [vmem:[%s7399_s1 + $0xd0] ss:$8 sps:$4 sm:$0xff]  }
  0x4b   : > { %693 = vmatpush1.bf16.msra.mxu1 %v5488_v36  ;;  %4910 = vmatmul.mubr.msk.bf16.vlgmr.msra.gmra.mrb[8].mxu0 %vm643_vm7, %v2173_v42  ;;  %v2646_v36 = vcombine.low %v6093_v21, %v6100_v23  ;;  %v2599_v42 = vrot.slane %v2598_v34, 2  ;;  %v5571_v34 = vld [vmem:[%s7399_s1 + $0x754] ss:$8 sps:$4 sm:$0xff]  }
  0x4c   : > { %694 = vmatprep.subr.bf16.mxu1 %v5496_v37  ;;  %2887 = vmatpush1.bf16.msra.mxu0 %v5467_v43  ;;  %v5515_v37 = vld [vmem:[%s7399_s1 + $0x6c0] ss:$8 sps:$4 sm:$0xff]  }
  0x4d   : > { %2888 = vmatprep.subr.bf16.mxu0 %v5475_v44  ;;  %v5542_v43 = vld [vmem:[%s7399_s1 + $0x60] ss:$8 sps:$4 sm:$0xff]   ;;  %v5550_v44 = vld [vmem:[%s7399_s1 + $0x74] ss:$8 sps:$4 sm:$0xff]   ;;  %v6378_v45 = vsel %vm6074_vm6, %v2599_v42, %v2603_v35  ;;  %v5596_v42 = vld [vmem:[%s7399_s1 + $0xf0] ss:$8 sps:$4 sm:$0xff]  }
  0x4e   : > { %v2648_v46 = vcombine.low %v6109_v27, %v6378_v45  ;;  %v5590_v35 = vld [vmem:[%s7399_s1 + $0xe0] ss:$8 sps:$4 sm:$0xff]  }
  0x4f   : > { %695 = vmatpush1.bf16.msra.mxu1 %v5494_v47  ;;  %v6383_v47 = vrot.slane %v2646_v36, %v6089_v20  ;;  %v5598_v36 = vld [vmem:[%s7399_s1 + $0xf4] ss:$8 sps:$4 sm:$0xff]  }
  0x50   : > { %696 = vmatprep.subr.bf16.mxu1 %v5502_v48  ;;  %2889 = vmatpush1.bf16.msra.mxu0 %v5473_v49  ;;  %v5521_v48 = vld [vmem:[%s7399_s1 + $0x6d0] ss:$8 sps:$4 sm:$0xff]   ;;  %v5529_v49 = vld [vmem:[%s7399_s1 + $0x6e4] ss:$8 sps:$4 sm:$0xff]   ;;  %v6395_v52 = vrot.slane %v2648_v46, %v6089_v20  ;;  %v2649_v46 = vcombine.high %v6109_v27, %v6378_v45  ;;  %v5610_v45 = vld [vmem:[%s7399_s1 + $0x114] ss:$8 sps:$4 sm:$0xff]  }
  0x51   : > { %2890 = vmatprep.subr.bf16.mxu0 %v5481_v51  ;;  %v5548_v51 = vld [vmem:[%s7399_s1 + $0x70] ss:$8 sps:$4 sm:$0xff]  }
  0x53   : > { %697 = vmatpush1.bf16.msra.mxu1 %v5500_v54  ;;  %v5527_v54 = vld [vmem:[%s7399_s1 + $0x6e0] ss:$8 sps:$4 sm:$0xff]  }
  0x54   : > { %973 = vmatprep.subr.bf16.mxu1 %v5508_v55  ;;  %2891 = vmatpush1.bf16.msra.mxu0 %v5479_v56  ;;  %v2679_v55 = vcombine.high %v6383_v47, %v6395_v52  ;;  %v5535_v56 = vld [vmem:[%s7399_s1 + $0x6f4] ss:$8 sps:$4 sm:$0xff]  }
  0x55   : > { %2892 = vmatprep.subr.bf16.mxu0 %v5487_v57  ;;  %v5554_v57 = vld [vmem:[%s7399_s1 + $0x80] ss:$8 sps:$4 sm:$0xff]  }
  0x56   : > { %4574 = vmatmul.mubr.msk.bf16.vlgmr.msra.gmra.mrb[0].mxu1 %vm643_vm7, %v440_v58  ;;  %v4466_v58 = vld.sshfl [vmem:[%s6022_s24] sm:$0xf pattern:$0x76325410]  ;;  %2918 = vmatprep.mubr.bf16.mxu0 %v2679_v55 }
  0x57   : > { %974 = vmatpush1.bf16.msra.mxu1 %v5506_v59  ;;  %v5562_v59 = vld [vmem:[%s7399_s1 + $0x94] ss:$8 sps:$4 sm:$0xff]   ;;  %v5589_v55 = vld [vmem:[%s7399_s1 + $0x784] ss:$8 sps:$4 sm:$0xff]  }
  0x58   : > { %975 = vmatprep.subr.bf16.mxu1 %v5514_v60  ;;  %2893 = vmatpush1.bf16.msra.mxu0 %v5485_v61  ;;  %v6416_v60 = vld.sshfl [vmem:[%s6022_s24 + $0x18] sm:$0xf pattern:$0x76325410] }
  0x59   : > { %2894 = vmatprep.subr.bf16.mxu0 %v5493_v62  ;;  %v5533_v61 = vld [vmem:[%s7399_s1 + $0x6f0] ss:$8 sps:$4 sm:$0xff]  }
  0x5a   : > { %v6422_v62 = vld.sshfl [vmem:[%s6022_s24 + $0x30] sm:$0xf pattern:$0x76325410] }
  0x5b   : > { %976 = vmatpush1.bf16.msra.mxu1 %v5512_v1  ;;  %v4575_v1 = vcombine.low %v4466_v58, %v6416_v60  ;;  %v5616_v58 = vld [vmem:[%s7399_s1 + $0x124] ss:$8 sps:$4 sm:$0xff]  }
  0x5c   : > { %977 = vmatprep.subr.bf16.mxu1 %v5520_v3  ;;  %2895 = vmatpush1.bf16.msra.mxu0 %v5491_v4  ;;  %v6426_v3 = vld.sshfl [vmem:[%s6022_s24 + $0x48] sm:$0xf pattern:$0x76325410] }
  0x5d   : > { %2896 = vmatprep.subr.bf16.mxu0 %v5499_v5  ;;  %v5541_v4 = vld [vmem:[%s7399_s1 + $0x704] ss:$8 sps:$4 sm:$0xff]   ;;  %v5560_v5 = vld [vmem:[%s7399_s1 + $0x90] ss:$8 sps:$4 sm:$0xff]  }
  0x5f   : > { %978 = vmatpush1.bf16.msra.mxu1 %v5518_v6  ;;  %v4577_v6 = vcombine.low %v6422_v62, %v6426_v3 }
  0x60   : > { %979 = vmatprep.subr.bf16.mxu1 %v5526_v7  ;;  %2897 = vmatpush1.bf16.msra.mxu0 %v5497_v8  ;;  %v6437_v7 = vrot.slane %v4575_v1, %v6089_v20  ;;  %v5568_v8 = vld [vmem:[%s7399_s1 + $0xa4] ss:$8 sps:$4 sm:$0xff]  }
  0x61   : > { %2898 = vmatprep.subr.bf16.mxu0 %v5505_v9  ;;  %v6443_v9 = vrot.slane %v4577_v6, %v6089_v20  ;;  %v6560_v1 = vld.sshfl [vmem:[%s6022_s24 + $0x60] sm:$0xf pattern:$0x76325410]  ;;  %v5595_v6 = vld [vmem:[%s7399_s1 + $0x794] ss:$8 sps:$4 sm:$0xff]  }
  0x63   : > { %980 = vmatpush1.bf16.msra.mxu1 %v5524_v10  ;;  %v5539_v10 = vld [vmem:[%s7399_s1 + $0x700] ss:$8 sps:$4 sm:$0xff]   ;;  %v766_v13 = vcombine.high %v6437_v7, %v6443_v9 }
  0x64   : > { %981 = vmatprep.subr.bf16.mxu1 %v5532_v11  ;;  %2899 = vmatpush1.bf16.msra.mxu0 %v5503_v15  ;;  %v5547_v11 = vld [vmem:[%s7399_s1 + $0x714] ss:$8 sps:$4 sm:$0xff]  }
  0x65   : > { %2900 = vmatprep.subr.bf16.mxu0 %v5511_v16  ;;  %v5574_v15 = vld [vmem:[%s7399_s1 + $0xb4] ss:$8 sps:$4 sm:$0xff]   ;;  %1005 = vmatprep.mubr.bf16.mxu1 %v766_v13  ;;  %v5545_v16 = vld [vmem:[%s7399_s1 + $0x710] ss:$8 sps:$4 sm:$0xff]  }
  0x66   : > { %v5593_v13 = vld [vmem:[%s7399_s1 + $0x790] ss:$8 sps:$4 sm:$0xff]  }
  0x67   : > { %982 = vmatpush1.bf16.msra.mxu1 %v5530_v19  ;;  %v5580_v19 = vld [vmem:[%s7399_s1 + $0xc4] ss:$8 sps:$4 sm:$0xff]  }
  0x68   : > { %983 = vmatprep.subr.bf16.mxu1 %v5538_v22  ;;  %2901 = vmatpush1.bf16.msra.mxu0 %v5509_v28  ;;  %v5551_v22 = vld [vmem:[%s7399_s1 + $0x720] ss:$8 sps:$4 sm:$0xff]   ;;  %v5557_v28 = vld [vmem:[%s7399_s1 + $0x730] ss:$8 sps:$4 sm:$0xff]  }
  0x69   : > { %2902 = vmatprep.subr.bf16.mxu0 %v5517_v31  ;;  %v5592_v31 = vld [vmem:[%s7399_s1 + $0xe4] ss:$8 sps:$4 sm:$0xff]  }
  0x6b   : > { %984 = vmatpush1.bf16.msra.mxu1 %v5536_v32  ;;  %v2678_v32 = vcombine.low %v6383_v47, %v6395_v52  ;;  %v5575_v47 = vld [vmem:[%s7399_s1 + $0x760] ss:$8 sps:$4 sm:$0xff]  }
  0x6c   : > { %985 = vmatprep.subr.bf16.mxu1 %v5544_v33  ;;  %2903 = vmatpush1.bf16.msra.mxu0 %v5515_v37  ;;  %v5563_v33 = vld [vmem:[%s7399_s1 + $0x740] ss:$8 sps:$4 sm:$0xff]   ;;  %v5569_v37 = vld [vmem:[%s7399_s1 + $0x750] ss:$8 sps:$4 sm:$0xff]  }
  0x6d   : > { %2904 = vmatprep.subr.bf16.mxu0 %v5523_v40  ;;  %v5577_v40 = vld [vmem:[%s7399_s1 + $0x764] ss:$8 sps:$4 sm:$0xff]  }
  0x6f   : > { %986 = vmatpush1.bf16.msra.mxu1 %v5542_v43  ;;  %v5604_v43 = vld [vmem:[%s7399_s1 + $0x104] ss:$8 sps:$4 sm:$0xff]  }
  0x70   : > { %987 = vmatprep.subr.bf16.mxu1 %v5550_v44  ;;  %2905 = vmatpush1.bf16.msra.mxu0 %v5521_v48  ;;  %v2647_v44 = vcombine.high %v6093_v21, %v6100_v23  ;;  %v765_v48 = vcombine.low %v6437_v7, %v6443_v9  ;;  %v5614_v7 = vld [vmem:[%s7399_s1 + $0x120] ss:$8 sps:$4 sm:$0xff]  }
  0x71   : > { %2906 = vmatprep.subr.bf16.mxu0 %v5529_v49  ;;  %v5583_v49 = vld [vmem:[%s7399_s1 + $0x774] ss:$8 sps:$4 sm:$0xff]  }
  0x72   : > { %v2663_v52 = vrot.slane %v2647_v44, %v6089_v20  ;;  %v5631_v44 = vld [vmem:[%s7399_s1 + $0x7f4] ss:$8 sps:$4 sm:$0xff]  }
  0x73   : > { %988 = vmatpush1.bf16.msra.mxu1 %v5548_v51  ;;  %v5602_v51 = vld [vmem:[%s7399_s1 + $0x100] ss:$8 sps:$4 sm:$0xff]  }
  0x74   : > { %989 = vmatprep.subr.bf16.mxu1 %v5556_v53  ;;  %2907 = vmatpush1.bf16.msra.mxu0 %v5527_v54  ;;  %v2677_v53 = vrot.slane %v2649_v46, %v6089_v20  ;;  %v5581_v54 = vld [vmem:[%s7399_s1 + $0x770] ss:$8 sps:$4 sm:$0xff]  }
  0x75   : > { %2908 = vmatprep.subr.bf16.mxu0 %v5535_v56  ;;  %v5608_v56 = vld [vmem:[%s7399_s1 + $0x110] ss:$8 sps:$4 sm:$0xff]  }
  0x77   : > { %990 = vmatpush1.bf16.msra.mxu1 %v5554_v57  ;;  %v4467_v57 = vld.sshfl [vmem:[%s6022_s24 + $0x8] sm:$0x3 pattern:$0x76325410] }
  0x78   : > { %991 = vmatprep.subr.bf16.mxu1 %v5562_v59  ;;  %2909 = vmatpush1.bf16.msra.mxu0 %v5533_v61  ;;  %v5587_v59 = vld [vmem:[%s7399_s1 + $0x780] ss:$8 sps:$4 sm:$0xff]   ;;  %v2680_v61 = vcombine.low %v2663_v52, %v2677_v53  ;;  %v5664_v52 = vld [vmem:[%s7399_s1 + $0x2e4] ss:$8 sps:$4 sm:$0xff]  }
  0x79   : > { %2910 = vmatprep.subr.bf16.mxu0 %v5541_v4  ;;  %v4576_v4 = vcombine.low %v4467_v57, %v6134_v38  ;;  %v1243_v38 = vcombine.low %v6083_v14, %v6093_v21  ;;  %v764_v14 = vrot.slane %v4578_v50, %v6089_v20  ;;  %v5601_v21 = vld [vmem:[%s7399_s1 + $0x7a4] ss:$8 sps:$4 sm:$0xff]   ;;  %v5599_v50 = vld [vmem:[%s7399_s1 + $0x7a0] ss:$8 sps:$4 sm:$0xff]   ;;  %v5641_v57 = vld [vmem:[%s7399_s1 + $0x810] ss:$8 sps:$4 sm:$0xff]  }
  0x7a   : > { %v5635_v53 = vld [vmem:[%s7399_s1 + $0x800] ss:$8 sps:$4 sm:$0xff]  }
  0x7b   : > { %992 = vmatpush1.bf16.msra.mxu1 %v5560_v5  ;;  %v5022_v5 = vld.sshfl [vmem:[%s6022_s24 + $0x78] sm:$0xf pattern:$0x76325410]  ;;  %v6602_v39 = vrot.slane %v1243_v38, %v6089_v20  ;;  %v5688_v38 = vld [vmem:[%s7399_s1 + $0x324] ss:$8 sps:$4 sm:$0xff]  }
  0x7c   : > { %993 = vmatprep.subr.bf16.mxu1 %v5568_v8  ;;  %2911 = vmatpush1.bf16.msra.mxu0 %v5539_v10  ;;  %v5066_v8 = vcombine.low %v6560_v1, %v5022_v5  ;;  %v5622_v10 = vld [vmem:[%s7399_s1 + $0x134] ss:$8 sps:$4 sm:$0xff]   ;;  %v5674_v5 = vld [vmem:[%s7399_s1 + $0x300] ss:$8 sps:$4 sm:$0xff]  }
  0x7d   : > { %2912 = vmatprep.subr.bf16.mxu0 %v5547_v11  ;;  %v1245_v11 = vcombine.low %v6100_v23, %v6109_v27  ;;  %v5620_v23 = vld [vmem:[%s7399_s1 + $0x130] ss:$8 sps:$4 sm:$0xff]  }
  0x7f   : > { %994 = vmatpush1.bf16.msra.mxu1 %v5566_v12  ;;  %v6580_v12 = vrot.slane %v5066_v8, %v6089_v20  ;;  %v6605_v41 = vrot.slane %v1245_v11, %v6089_v20  ;;  %v5661_v8 = vld [vmem:[%s7399_s1 + $0x844] ss:$8 sps:$4 sm:$0xff]   ;;  %v5659_v11 = vld [vmem:[%s7399_s1 + $0x840] ss:$8 sps:$4 sm:$0xff]  }
  0x80   : > { %995 = vmatprep.subr.bf16.mxu1 %v5574_v15  ;;  %2913 = vmatpush1.bf16.msra.mxu0 %v5545_v16  ;;  %v750_v15 = vrot.slane %v4576_v4, %v6089_v20  ;;  %v5628_v16 = vld [vmem:[%s7399_s1 + $0x284] ss:$8 sps:$4 sm:$0xff]   ;;  %v5655_v4 = vld [vmem:[%s7399_s1 + $0x834] ss:$8 sps:$4 sm:$0xff]  }
  0x81   : > { %2914 = vmatprep.subr.bf16.mxu0 %v5553_v17  ;;  %v3127_v27 = vcombine.high %v6443_v9, %v6580_v12 }
  0x82   : > { %v767_v17 = vcombine.low %v750_v15, %v764_v14  ;;  %v5686_v15 = vld [vmem:[%s7399_s1 + $0x320] ss:$8 sps:$4 sm:$0xff]   ;;  %v5694_v14 = vld [vmem:[%s7399_s1 + $0x334] ss:$8 sps:$4 sm:$0xff]  }
  0x83   : > { %996 = vmatpush1.bf16.msra.mxu1 %v5572_v18  ;;  %v5607_v18 = vld [vmem:[%s7399_s1 + $0x7b4] ss:$8 sps:$4 sm:$0xff]  }
  0x84   : > { %997 = vmatprep.subr.bf16.mxu1 %v5580_v19  ;;  %2915 = vmatpush1.bf16.msra.mxu0 %v5551_v22  ;;  %v5626_v19 = vld [vmem:[%s7399_s1 + $0x280] ss:$8 sps:$4 sm:$0xff]   ;;  %v5634_v22 = vld [vmem:[%s7399_s1 + $0x294] ss:$8 sps:$4 sm:$0xff]  }
  0x85   : > { %2916 = vmatprep.subr.bf16.mxu0 %v5559_v24  ;;  %v1276_v24 = vcombine.high %v6602_v39, %v6605_v41 }
  0x87   : > { %998 = vmatpush1.bf16.msra.mxu1 %v5578_v25  ;;  %v5605_v25 = vld [vmem:[%s7399_s1 + $0x7b0] ss:$8 sps:$4 sm:$0xff]  }
  0x88   : > { %999 = vmatprep.subr.bf16.mxu1 %v5586_v26  ;;  %2917 = vmatpush1.bf16.msra.mxu0 %v5557_v28  ;;  %v5613_v26 = vld [vmem:[%s7399_s1 + $0x7c4] ss:$8 sps:$4 sm:$0xff]   ;;  %v5632_v28 = vld [vmem:[%s7399_s1 + $0x290] ss:$8 sps:$4 sm:$0xff]  }
  0x89   : > { %2929 = vmatprep.subr.bf16.mxu0 %v5565_v29  ;;  %v5640_v29 = vld [vmem:[%s7399_s1 + $0x2a4] ss:$8 sps:$4 sm:$0xff]  }
  0x8b   : > { %1000 = vmatpush1.bf16.msra.mxu1 %v5584_v30  ;;  %2919 = vmatmul.mubr.bf16.vlgmr.msra.gmra.mrb[8].mxu0 %v2678_v32  ;;  %v5611_v30 = vld [vmem:[%s7399_s1 + $0x7c0] ss:$8 sps:$4 sm:$0xff]  }
  0x8c   : > { %1001 = vmatprep.subr.bf16.mxu1 %v5592_v31  ;;  %2930 = vmatpush1.bf16.msra.mxu0 %v5563_v33  ;;  %v5619_v31 = vld [vmem:[%s7399_s1 + $0x7d4] ss:$8 sps:$4 sm:$0xff]   ;;  %v5638_v32 = vld [vmem:[%s7399_s1 + $0x2a0] ss:$8 sps:$4 sm:$0xff]  }
  0x8d   : > { %2961 = vmatprep.mubr.bf16.mxu0 %v5937_v2  ;;  %2931 = vmatprep.subr.bf16.mxu0 %v5571_v34  ;;  %v5646_v33 = vld [vmem:[%s7399_s1 + $0x2b4] ss:$8 sps:$4 sm:$0xff]   ;;  %v5617_v34 = vld [vmem:[%s7399_s1 + $0x7d0] ss:$8 sps:$4 sm:$0xff]  }
  0x8f   : > { %1002 = vmatpush1.bf16.msra.mxu1 %v5590_v35  ;;  %v5625_v35 = vld [vmem:[%s7399_s1 + $0x7e4] ss:$8 sps:$4 sm:$0xff]  }
  0x90   : > { %1003 = vmatprep.subr.bf16.mxu1 %v5598_v36  ;;  %2932 = vmatpush1.bf16.msra.mxu0 %v5569_v37  ;;  %v5644_v36 = vld [vmem:[%s7399_s1 + $0x2b0] ss:$8 sps:$4 sm:$0xff]   ;;  %v5652_v37 = vld [vmem:[%s7399_s1 + $0x2c4] ss:$8 sps:$4 sm:$0xff]  }
  0x91   : > { %2933 = vmatprep.subr.bf16.mxu0 %v5577_v40  ;;  %v4765_v40 = vcombine.low %v6416_v60, %v6422_v62  ;;  %v5650_v60 = vld [vmem:[%s7399_s1 + $0x2c0] ss:$8 sps:$4 sm:$0xff]   ;;  %v5658_v62 = vld [vmem:[%s7399_s1 + $0x2d4] ss:$8 sps:$4 sm:$0xff]  }
  0x93   : > { %1004 = vmatpush1.bf16.msra.mxu1 %v5596_v42  ;;  %v4767_v42 = vcombine.low %v6426_v3, %v6560_v1  ;;  %v6669_v46 = vrot.slane %v4765_v40, %v6089_v20  ;;  %v5647_v1 = vld [vmem:[%s7399_s1 + $0x820] ss:$8 sps:$4 sm:$0xff]  }
  0x94   : > { %1016 = vmatprep.subr.bf16.mxu1 %v5604_v43  ;;  %2934 = vmatpush1.bf16.msra.mxu0 %v5575_v47  ;;  %v5623_v43 = vld [vmem:[%s7399_s1 + $0x7e0] ss:$8 sps:$4 sm:$0xff]  }
  0x95   : > { %2935 = vmatprep.subr.bf16.mxu0 %v5583_v49  ;;  %v6672_v47 = vrot.slane %v4767_v42, %v6089_v20  ;;  %v5691_v42 = vld [vmem:[%s7399_s1 + $0x894] ss:$8 sps:$4 sm:$0xff]  }
  0x96   : > { %1006 = vmatmul.mubr.bf16.vlgmr.msra.gmra.mrb[0].mxu1 %v765_v48  ;;  %v5629_v48 = vld [vmem:[%s7399_s1 + $0x7f0] ss:$8 sps:$4 sm:$0xff]  }
  0x97   : > { %1017 = vmatpush1.bf16.msra.mxu1 %v5602_v51  ;;  %1048 = vmatprep.mubr.bf16.mxu1 %v5937_v2  ;;  %v1724_v3 = vcombine.high %v6669_v46, %v6672_v47  ;;  %v1723_v49 = vcombine.low %v6669_v46, %v6672_v47  ;;  %v5637_v51 = vld [vmem:[%s7399_s1 + $0x804] ss:$8 sps:$4 sm:$0xff]   ;;  %v5803_v46 = vld [vmem:[%s7399_s1 + $0x9c0] ss:$8 sps:$4 sm:$0xff]   ;;  %v5811_v47 = vld [vmem:[%s7399_s1 + $0x9d4] ss:$8 sps:$4 sm:$0xff]  }
  0x98   : > { %1018 = vmatprep.subr.bf16.mxu1 %v5610_v45  ;;  %2936 = vmatpush1.bf16.msra.mxu0 %v5581_v54  ;;  %v5656_v45 = vld [vmem:[%s7399_s1 + $0x2d0] ss:$8 sps:$4 sm:$0xff]   ;;  %v5643_v54 = vld [vmem:[%s7399_s1 + $0x814] ss:$8 sps:$4 sm:$0xff]  }
  0x99   : > { %3334 = vmatprep.subr.bf16.mxu0 %v5589_v55  ;;  %v5662_v55 = vld [vmem:[%s7399_s1 + $0x2e0] ss:$8 sps:$4 sm:$0xff]  }
  0x9b   : > { %1019 = vmatpush1.bf16.msra.mxu1 %v5608_v56  ;;  %5007 = vmatmul.mubr.msk.bf16.vlgmr.msra.gmra.mrb[8].mxu0 %vm643_vm7, %v2680_v61  ;;  %v5670_v56 = vld [vmem:[%s7399_s1 + $0x2f4] ss:$8 sps:$4 sm:$0xff]   ;;  %v5676_v61 = vld [vmem:[%s7399_s1 + $0x304] ss:$8 sps:$4 sm:$0xff]  }
  0x9c   : > { %1020 = vmatprep.subr.bf16.mxu1 %v5616_v58  ;;  %3335 = vmatpush1.bf16.msra.mxu0 %v5587_v59  ;;  %v5649_v58 = vld [vmem:[%s7399_s1 + $0x824] ss:$8 sps:$4 sm:$0xff]   ;;  %v5668_v59 = vld [vmem:[%s7399_s1 + $0x2f0] ss:$8 sps:$4 sm:$0xff]  }
  0x9d   : > { %3336 = vmatprep.subr.bf16.mxu0 %v5595_v6  ;;  %3366 = vmatprep.mubr.bf16.mxu0 %v3127_v27  ;;  %v5682_v6 = vld [vmem:[%s7399_s1 + $0x314] ss:$8 sps:$4 sm:$0xff]   ;;  %v5692_v27 = vld [vmem:[%s7399_s1 + $0x330] ss:$8 sps:$4 sm:$0xff]  }
  0x9f   : > { %1021 = vmatpush1.bf16.msra.mxu1 %v5614_v7  ;;  %v5653_v7 = vld [vmem:[%s7399_s1 + $0x830] ss:$8 sps:$4 sm:$0xff]  }
  0xa0   : > { %1022 = vmatprep.subr.bf16.mxu1 %v5622_v10  ;;  %3337 = vmatpush1.bf16.msra.mxu0 %v5593_v13  ;;  %v5680_v10 = vld [vmem:[%s7399_s1 + $0x310] ss:$8 sps:$4 sm:$0xff]   ;;  %v5667_v13 = vld [vmem:[%s7399_s1 + $0x854] ss:$8 sps:$4 sm:$0xff]  }
  0xa1   : > { %3338 = vmatprep.subr.bf16.mxu0 %v5601_v21  ;;  %v5665_v21 = vld [vmem:[%s7399_s1 + $0x850] ss:$8 sps:$4 sm:$0xff]  }
  0xa3   : > { %1023 = vmatpush1.bf16.msra.mxu1 %v5620_v23  ;;  %v5673_v23 = vld [vmem:[%s7399_s1 + $0x864] ss:$8 sps:$4 sm:$0xff]  }
  0xa4   : > { %1483 = vmatprep.subr.bf16.mxu1 %v5628_v16  ;;  %3339 = vmatpush1.bf16.msra.mxu0 %v5599_v50  ;;  %v5700_v16 = vld [vmem:[%s7399_s1 + $0x344] ss:$8 sps:$4 sm:$0xff]   ;;  %v5671_v50 = vld [vmem:[%s7399_s1 + $0x860] ss:$8 sps:$4 sm:$0xff]  }
  0xa5   : > { %3340 = vmatprep.subr.bf16.mxu0 %v5607_v18  ;;  %v6775_v18 = vld.sshfl [vmem:[%s6022_s24 + $0x3c] sm:$0xf pattern:$0x76325410] }
  0xa6   : > { %4619 = vmatmul.mubr.msk.bf16.vlgmr.msra.gmra.mrb[0].mxu1 %vm643_vm7, %v767_v17  ;;  %v5679_v17 = vld [vmem:[%s7399_s1 + $0x874] ss:$8 sps:$4 sm:$0xff]  }
  0xa7   : > { %1484 = vmatpush1.bf16.msra.mxu1 %v5626_v19  ;;  %1515 = vmatprep.mubr.bf16.mxu1 %v1276_v24  ;;  %v5698_v19 = vld [vmem:[%s7399_s1 + $0x340] ss:$8 sps:$4 sm:$0xff]   ;;  %v5706_v24 = vld [vmem:[%s7399_s1 + $0x354] ss:$8 sps:$4 sm:$0xff]  }
  0xa8   : > { %1485 = vmatprep.subr.bf16.mxu1 %v5634_v22  ;;  %3341 = vmatpush1.bf16.msra.mxu0 %v5605_v25  ;;  %v6781_v22 = vld.sshfl [vmem:[%s6022_s24 + $0x54] sm:$0xf pattern:$0x76325410] }
  0xa9   : > { %3342 = vmatprep.subr.bf16.mxu0 %v5613_v26  ;;  %v6787_v25 = vld.sshfl [vmem:[%s6022_s24 + $0x6c] sm:$0xf pattern:$0x76325410]  ;;  %v5165_v26 = vcombine.low %v6775_v18, %v6781_v22 }
  0xab   : > { %1486 = vmatpush1.bf16.msra.mxu1 %v5632_v28  ;;  %v5123_v28 = vld.sshfl [vmem:[%s6022_s24 + $0x84] sm:$0xf pattern:$0x76325410] }
  0xac   : > { %1487 = vmatprep.subr.bf16.mxu1 %v5640_v29  ;;  %3343 = vmatpush1.bf16.msra.mxu0 %v5611_v30  ;;  %v5677_v29 = vld [vmem:[%s7399_s1 + $0x870] ss:$8 sps:$4 sm:$0xff]   ;;  %v5167_v30 = vcombine.low %v6787_v25, %v5123_v28  ;;  %v5739_v28 = vld [vmem:[%s7399_s1 + $0x914] ss:$8 sps:$4 sm:$0xff]  }
  0xad   : > { %3344 = vmatprep.subr.bf16.mxu0 %v5619_v31  ;;  %v6797_v31 = vrot.slane %v5165_v26, %v6089_v20  ;;  %v5731_v26 = vld [vmem:[%s7399_s1 + $0x900] ss:$8 sps:$4 sm:$0xff]  }
  0xaf   : > { %1488 = vmatpush1.bf16.msra.mxu1 %v5638_v32  ;;  %v5685_v32 = vld [vmem:[%s7399_s1 + $0x884] ss:$8 sps:$4 sm:$0xff]  }
  0xb0   : > { %1489 = vmatprep.subr.bf16.mxu1 %v5646_v33  ;;  %3345 = vmatpush1.bf16.msra.mxu0 %v5617_v34  ;;  %v5704_v33 = vld [vmem:[%s7399_s1 + $0x350] ss:$8 sps:$4 sm:$0xff]   ;;  %v5712_v34 = vld [vmem:[%s7399_s1 + $0x364] ss:$8 sps:$4 sm:$0xff]  }
  0xb1   : > { %3346 = vmatprep.subr.bf16.mxu0 %v5625_v35  ;;  %v6809_v35 = vrot.slane %v5167_v30, %v6089_v20  ;;  %v5766_v30 = vld [vmem:[%s7399_s1 + $0x434] ss:$8 sps:$4 sm:$0xff]  }
  0xb3   : > { %1490 = vmatpush1.bf16.msra.mxu1 %v5644_v36  ;;  %v3126_v36 = vcombine.low %v6443_v9, %v6580_v12  ;;  %v3574_v40 = vcombine.low %v6797_v31, %v6809_v35  ;;  %v5689_v9 = vld [vmem:[%s7399_s1 + $0x890] ss:$8 sps:$4 sm:$0xff]  }
  0xb4   : > { %1491 = vmatprep.subr.bf16.mxu1 %v5652_v37  ;;  %3347 = vmatpush1.bf16.msra.mxu0 %v5623_v43  ;;  %v5683_v37 = vld [vmem:[%s7399_s1 + $0x880] ss:$8 sps:$4 sm:$0xff]   ;;  %v5017_v12 = vld.sshfl [vmem:[%s6022_s24 + $0x38] sm:$0x3 pattern:$0x76325410] }
  0xb5   : > { %3348 = vmatprep.subr.bf16.mxu0 %v5631_v44  ;;  %v5710_v43 = vld [vmem:[%s7399_s1 + $0x360] ss:$8 sps:$4 sm:$0xff]   ;;  %v5019_v44 = vld.sshfl [vmem:[%s6022_s24 + $0x50] sm:$0x3 pattern:$0x76325410] }
  0xb7   : > { %1492 = vmatpush1.bf16.msra.mxu1 %v5650_v60  ;;  %v5718_v60 = vld [vmem:[%s7399_s1 + $0x374] ss:$8 sps:$4 sm:$0xff]  }
  0xb8   : > { %1493 = vmatprep.subr.bf16.mxu1 %v5658_v62  ;;  %3349 = vmatpush1.bf16.msra.mxu0 %v5629_v48  ;;  %v5021_v62 = vld.sshfl [vmem:[%s6022_s24 + $0x68] sm:$0x3 pattern:$0x76325410] }
  0xb9   : > { %3350 = vmatprep.subr.bf16.mxu0 %v5637_v51  ;;  %v5023_v48 = vld.sshfl [vmem:[%s6022_s24 + $0x80] sm:$0x3 pattern:$0x76325410]  ;;  %v5697_v51 = vld [vmem:[%s7399_s1 + $0x8a4] ss:$8 sps:$4 sm:$0xff]  }
  0xbb   : > { %1494 = vmatpush1.bf16.msra.mxu1 %v5656_v45  ;;  %v5716_v45 = vld [vmem:[%s7399_s1 + $0x370] ss:$8 sps:$4 sm:$0xff]  }
  0xbc   : > { %1495 = vmatprep.subr.bf16.mxu1 %v5664_v52  ;;  %3351 = vmatpush1.bf16.msra.mxu0 %v5635_v53  ;;  %v5724_v52 = vld [vmem:[%s7399_s1 + $0x3c4] ss:$8 sps:$4 sm:$0xff]   ;;  %v5065_v53 = vcombine.low %v5017_v12, %v5019_v44  ;;  %v5751_v12 = vld [vmem:[%s7399_s1 + $0x934] ss:$8 sps:$4 sm:$0xff]  }
  0xbd   : > { %3352 = vmatprep.subr.bf16.mxu0 %v5643_v54  ;;  %v5067_v54 = vcombine.low %v5021_v62, %v5023_v48  ;;  %v5778_v62 = vld [vmem:[%s7399_s1 + $0x454] ss:$8 sps:$4 sm:$0xff]   ;;  %v5749_v48 = vld [vmem:[%s7399_s1 + $0x930] ss:$8 sps:$4 sm:$0xff]  }
  0xbf   : > { %1496 = vmatpush1.bf16.msra.mxu1 %v5662_v55  ;;  %v5695_v55 = vld [vmem:[%s7399_s1 + $0x8a0] ss:$8 sps:$4 sm:$0xff]  }
  0xc0   : > { %1497 = vmatprep.subr.bf16.mxu1 %v5670_v56  ;;  %3353 = vmatpush1.bf16.msra.mxu0 %v5641_v57  ;;  %v5703_v56 = vld [vmem:[%s7399_s1 + $0x8b4] ss:$8 sps:$4 sm:$0xff]   ;;  %v1275_v57 = vcombine.low %v6602_v39, %v6605_v41  ;;  %v5709_v39 = vld [vmem:[%s7399_s1 + $0x8c4] ss:$8 sps:$4 sm:$0xff]   ;;  %v5728_v41 = vld [vmem:[%s7399_s1 + $0x3d0] ss:$8 sps:$4 sm:$0xff]  }
  0xc1   : > { %3354 = vmatprep.subr.bf16.mxu0 %v5649_v58  ;;  %v5722_v58 = vld [vmem:[%s7399_s1 + $0x3c0] ss:$8 sps:$4 sm:$0xff]  }
  0xc3   : > { %1498 = vmatpush1.bf16.msra.mxu1 %v5668_v59  ;;  %v5730_v59 = vld [vmem:[%s7399_s1 + $0x3d4] ss:$8 sps:$4 sm:$0xff]  }
  0xc4   : > { %1499 = vmatprep.subr.bf16.mxu1 %v5676_v61  ;;  %3355 = vmatpush1.bf16.msra.mxu0 %v5647_v1  ;;  %v5701_v61 = vld [vmem:[%s7399_s1 + $0x8b0] ss:$8 sps:$4 sm:$0xff]   ;;  %v3111_v1 = vrot.slane %v5065_v53, %v6089_v20  ;;  %v5784_v53 = vld [vmem:[%s7399_s1 + $0x464] ss:$8 sps:$4 sm:$0xff]  }
  0xc5   : > { %3356 = vmatprep.subr.bf16.mxu0 %v5655_v4  ;;  %v3125_v4 = vrot.slane %v5067_v54, %v6089_v20  ;;  %v5763_v54 = vld [vmem:[%s7399_s1 + $0x954] ss:$8 sps:$4 sm:$0xff]  }
  0xc7   : > { %1500 = vmatpush1.bf16.msra.mxu1 %v5674_v5  ;;  %v5736_v5 = vld [vmem:[%s7399_s1 + $0x3e4] ss:$8 sps:$4 sm:$0xff]  }
  0xc8   : > { %1501 = vmatprep.subr.bf16.mxu1 %v5682_v6  ;;  %3357 = vmatpush1.bf16.msra.mxu0 %v5653_v7  ;;  %v5707_v6 = vld [vmem:[%s7399_s1 + $0x8c0] ss:$8 sps:$4 sm:$0xff]   ;;  %v3128_v7 = vcombine.low %v3111_v1, %v3125_v4  ;;  %v5761_v1 = vld [vmem:[%s7399_s1 + $0x950] ss:$8 sps:$4 sm:$0xff]   ;;  %v5790_v4 = vld [vmem:[%s7399_s1 + $0x474] ss:$8 sps:$4 sm:$0xff]  }
  0xc9   : > { %3358 = vmatprep.subr.bf16.mxu0 %v5661_v8  ;;  %v5715_v8 = vld [vmem:[%s7399_s1 + $0x8d4] ss:$8 sps:$4 sm:$0xff]  }
  0xcb   : > { %1502 = vmatpush1.bf16.msra.mxu1 %v5680_v10  ;;  %v3575_v10 = vcombine.high %v6797_v31, %v6809_v35  ;;  %v5836_v31 = vld [vmem:[%s7399_s1 + $0x530] ss:$8 sps:$4 sm:$0xff]   ;;  %v5844_v35 = vld [vmem:[%s7399_s1 + $0x544] ss:$8 sps:$4 sm:$0xff]  }
  0xcc   : > { %1503 = vmatprep.subr.bf16.mxu1 %v5688_v38  ;;  %3359 = vmatpush1.bf16.msra.mxu0 %v5659_v11  ;;  %v5734_v38 = vld [vmem:[%s7399_s1 + $0x3e0] ss:$8 sps:$4 sm:$0xff]   ;;  %v5713_v11 = vld [vmem:[%s7399_s1 + $0x8d0] ss:$8 sps:$4 sm:$0xff]  }
  0xcd   : > { %3360 = vmatprep.subr.bf16.mxu0 %v5667_v13  ;;  %v5721_v13 = vld [vmem:[%s7399_s1 + $0x8e4] ss:$8 sps:$4 sm:$0xff]  }
  0xcf   : > { %1504 = vmatpush1.bf16.msra.mxu1 %v5686_v15  ;;  %v5740_v15 = vld [vmem:[%s7399_s1 + $0x3f0] ss:$8 sps:$4 sm:$0xff]  }
  0xd0   : > { %1505 = vmatprep.subr.bf16.mxu1 %v5694_v14  ;;  %3361 = vmatpush1.bf16.msra.mxu0 %v5665_v21  ;;  %v5748_v14 = vld [vmem:[%s7399_s1 + $0x404] ss:$8 sps:$4 sm:$0xff]   ;;  %v5719_v21 = vld [vmem:[%s7399_s1 + $0x8e0] ss:$8 sps:$4 sm:$0xff]  }
  0xd1   : > { %3362 = vmatprep.subr.bf16.mxu0 %v5673_v23  ;;  %v5727_v23 = vld [vmem:[%s7399_s1 + $0x8f4] ss:$8 sps:$4 sm:$0xff]  }
  0xd3   : > { %1506 = vmatpush1.bf16.msra.mxu1 %v5692_v27  ;;  %v5746_v27 = vld [vmem:[%s7399_s1 + $0x400] ss:$8 sps:$4 sm:$0xff]  }
  0xd4   : > { %1507 = vmatprep.subr.bf16.mxu1 %v5700_v16  ;;  %3363 = vmatpush1.bf16.msra.mxu0 %v5671_v50  ;;  %v5754_v16 = vld [vmem:[%s7399_s1 + $0x414] ss:$8 sps:$4 sm:$0xff]   ;;  %v5725_v50 = vld [vmem:[%s7399_s1 + $0x8f0] ss:$8 sps:$4 sm:$0xff]  }
  0xd5   : > { %3364 = vmatprep.subr.bf16.mxu0 %v5679_v17  ;;  %v5733_v17 = vld [vmem:[%s7399_s1 + $0x904] ss:$8 sps:$4 sm:$0xff]  }
  0xd7   : > { %1508 = vmatpush1.bf16.msra.mxu1 %v5698_v19  ;;  %v5752_v19 = vld [vmem:[%s7399_s1 + $0x410] ss:$8 sps:$4 sm:$0xff]  }
  0xd8   : > { %1509 = vmatprep.subr.bf16.mxu1 %v5706_v24  ;;  %3365 = vmatpush1.bf16.msra.mxu0 %v5677_v29  ;;  %v5760_v24 = vld [vmem:[%s7399_s1 + $0x424] ss:$8 sps:$4 sm:$0xff]   ;;  %v5758_v29 = vld [vmem:[%s7399_s1 + $0x420] ss:$8 sps:$4 sm:$0xff]  }
  0xd9   : > { %3377 = vmatprep.subr.bf16.mxu0 %v5685_v32  ;;  %v5737_v32 = vld [vmem:[%s7399_s1 + $0x910] ss:$8 sps:$4 sm:$0xff]  }
  0xdb   : > { %1510 = vmatpush1.bf16.msra.mxu1 %v5704_v33  ;;  %3367 = vmatmul.mubr.bf16.vlgmr.msra.gmra.mrb[8].mxu0 %v3126_v36  ;;  %v5745_v33 = vld [vmem:[%s7399_s1 + $0x924] ss:$8 sps:$4 sm:$0xff]  }
  0xdc   : > { %1511 = vmatprep.subr.bf16.mxu1 %v5712_v34  ;;  %3378 = vmatpush1.bf16.msra.mxu0 %v5683_v37  ;;  %v5764_v34 = vld [vmem:[%s7399_s1 + $0x430] ss:$8 sps:$4 sm:$0xff]   ;;  %v5772_v37 = vld [vmem:[%s7399_s1 + $0x444] ss:$8 sps:$4 sm:$0xff]  }
  0xdd   : > { %3409 = vmatprep.mubr.bf16.mxu0 %v5937_v2  ;;  %3379 = vmatprep.subr.bf16.mxu0 %v5691_v42 }
  0xdf   : > { %1512 = vmatpush1.bf16.msra.mxu1 %v5710_v43  ;;  %v5743_v43 = vld [vmem:[%s7399_s1 + $0x920] ss:$8 sps:$4 sm:$0xff]  }
  0xe0   : > { %1513 = vmatprep.subr.bf16.mxu1 %v5718_v60  ;;  %3380 = vmatpush1.bf16.msra.mxu0 %v5689_v9  ;;  %v5770_v60 = vld [vmem:[%s7399_s1 + $0x440] ss:$8 sps:$4 sm:$0xff]  }
  0xe1   : > { %3381 = vmatprep.subr.bf16.mxu0 %v5697_v51  ;;  %v5757_v51 = vld [vmem:[%s7399_s1 + $0x944] ss:$8 sps:$4 sm:$0xff]  }
  0xe3   : > { %1514 = vmatpush1.bf16.msra.mxu1 %v5716_v45  ;;  %v5776_v45 = vld [vmem:[%s7399_s1 + $0x450] ss:$8 sps:$4 sm:$0xff]  }
  0xe4   : > { %1931 = vmatprep.subr.bf16.mxu1 %v5724_v52  ;;  %3382 = vmatpush1.bf16.msra.mxu0 %v5695_v55  ;;  %v5755_v52 = vld [vmem:[%s7399_s1 + $0x940] ss:$8 sps:$4 sm:$0xff]   ;;  %v5218_v55 = vld.sshfl [vmem:[%s6022_s24 + $0x30] sm:$0x5f pattern:$0x76325410] }
  0xe5   : > { %3383 = vmatprep.subr.bf16.mxu0 %v5703_v56  ;;  %v5219_v56 = vld.sshfl [vmem:[%s6022_s24 + $0x38] sm:$0x13 pattern:$0x76325410] }
  0xe6   : > { %1516 = vmatmul.mubr.bf16.vlgmr.msra.gmra.mrb[0].mxu1 %v1275_v57  ;;  %v5782_v57 = vld [vmem:[%s7399_s1 + $0x460] ss:$8 sps:$4 sm:$0xff]  }
  0xe7   : > { %1932 = vmatpush1.bf16.msra.mxu1 %v5722_v58  ;;  %1963 = vmatprep.mubr.bf16.mxu1 %v1724_v3  ;;  %v5742_v3 = vld [vmem:[%s7399_s1 + $0x3f4] ss:$8 sps:$4 sm:$0xff]   ;;  %v5220_v58 = vld.sshfl [vmem:[%s6022_s24 + $0x48] sm:$0x5f pattern:$0x76325410] }
  0xe8   : > { %1933 = vmatprep.subr.bf16.mxu1 %v5730_v59  ;;  %3384 = vmatpush1.bf16.msra.mxu0 %v5701_v61  ;;  %v3902_v59 = vcombine.low %v5218_v55, %v5219_v56  ;;  %v3903_v61 = vcombine.high %v5218_v55, %v5219_v56 }
  0xe9   : > { %3782 = vmatprep.subr.bf16.mxu0 %v5709_v39  ;;  %v5221_v39 = vld.sshfl [vmem:[%s6022_s24 + $0x50] sm:$0x13 pattern:$0x76325410] }
  0xeb   : > { %1934 = vmatpush1.bf16.msra.mxu1 %v5728_v41  ;;  %5108 = vmatmul.mubr.msk.bf16.vlgmr.msra.gmra.mrb[8].mxu0 %vm643_vm7, %v3128_v7  ;;  %v5769_v41 = vld [vmem:[%s7399_s1 + $0x964] ss:$8 sps:$4 sm:$0xff]   ;;  %v3918_v7 = vcombine.low %v5220_v58, %v5221_v39 }
  0xec   : > { %1935 = vmatprep.subr.bf16.mxu1 %v5736_v5  ;;  %3783 = vmatpush1.bf16.msra.mxu0 %v5707_v6  ;;  %v5788_v5 = vld [vmem:[%s7399_s1 + $0x470] ss:$8 sps:$4 sm:$0xff]   ;;  %v5222_v6 = vld.sshfl [vmem:[%s6022_s24 + $0x60] sm:$0x5f pattern:$0x76325410] }
  0xed   : > { %3814 = vmatprep.mubr.bf16.mxu0 %v3575_v10  ;;  %3784 = vmatprep.subr.bf16.mxu0 %v5715_v8  ;;  %v3953_v8 = vshrl.u32 %v3902_v59, 16  ;;  %v3956_v10 = vshll.u32 %v3902_v59, 16  ;;  %v5773_v59 = vld [vmem:[%s7399_s1 + $0x970] ss:$8 sps:$4 sm:$0xff]  }
  0xef   : > { %1936 = vmatpush1.bf16.msra.mxu1 %v5734_v38  ;;  %v5796_v38 = vld [vmem:[%s7399_s1 + $0x484] ss:$8 sps:$4 sm:$0xff]  }
  0xf0   : > { %1937 = vmatprep.subr.bf16.mxu1 %v5742_v3  ;;  %3785 = vmatpush1.bf16.msra.mxu0 %v5713_v11  ;;  %v5223_v3 = vld.sshfl [vmem:[%s6022_s24 + $0x68] sm:$0x13 pattern:$0x76325410]  ;;  %v3919_v11 = vcombine.high %v5220_v58, %v5221_v39 }
  0xf1   : > { %3786 = vmatprep.subr.bf16.mxu0 %v5721_v13  ;;  %v3962_v13 = vshll.u32 %v3903_v61, 16 }
  0xf3   : > { %1938 = vmatpush1.bf16.msra.mxu1 %v5740_v15  ;;  %v5224_v15 = vld.sshfl [vmem:[%s6022_s24 + $0x78] sm:$0x5f pattern:$0x76325410] }
  0xf4   : > { %1939 = vmatprep.subr.bf16.mxu1 %v5748_v14  ;;  %3787 = vmatpush1.bf16.msra.mxu0 %v5719_v21  ;;  %v3934_v14 = vcombine.low %v5222_v6, %v5223_v3  ;;  %v3935_v21 = vcombine.high %v5222_v6, %v5223_v3 }
  0xf5   : > { %3788 = vmatprep.subr.bf16.mxu0 %v5727_v23  ;;  %v3955_v23 = vrot.slane %v3953_v8, 6  ;;  %v5808_v8 = vld [vmem:[%s7399_s1 + $0x4a4] ss:$8 sps:$4 sm:$0xff]  }
  0xf7   : > { %1940 = vmatpush1.bf16.msra.mxu1 %v5746_v27  ;;  %v3958_v27 = vrot.slane %v3956_v10, 7 }
  0xf8   : > { %1941 = vmatprep.subr.bf16.mxu1 %v5754_v16  ;;  %3789 = vmatpush1.bf16.msra.mxu0 %v5725_v50  ;;  %v5767_v50 = vld [vmem:[%s7399_s1 + $0x960] ss:$8 sps:$4 sm:$0xff]  }
  0xf9   : > { %3790 = vmatprep.subr.bf16.mxu0 %v5733_v17  ;;  %v5225_v17 = vld.sshfl [vmem:[%s6022_s24 + $0x80] sm:$0x13 pattern:$0x76325410] }
  0xfb   : > { %1942 = vmatpush1.bf16.msra.mxu1 %v5752_v19 }
  0xfc   : > { %1943 = vmatprep.subr.bf16.mxu1 %v5760_v24  ;;  %3791 = vmatpush1.bf16.msra.mxu0 %v5731_v26  ;;  %v5775_v24 = vld [vmem:[%s7399_s1 + $0x974] ss:$8 sps:$4 sm:$0xff]   ;;  %v5794_v26 = vld [vmem:[%s7399_s1 + $0x480] ss:$8 sps:$4 sm:$0xff]  }
  0xfd   : > { %3792 = vmatprep.subr.bf16.mxu0 %v5739_v28  ;;  %v3950_v28 = vcombine.low %v5224_v15, %v5225_v17 }
  0xfe   : > { %v6947_v36 = vpop.f32.mrb[0].mxu0 }
  0xff   : > { %1944 = vmatpush1.bf16.msra.mxu1 %v5758_v29  ;;  %v6952_v42 = vpop.f32.mrb[1].mxu0  ;;  %v3951_v29 = vcombine.high %v5224_v15, %v5225_v17  ;;  %v3998_v58 = vshll.u32 %v3950_v28, 16 }
 0x100   : > { %1945 = vmatprep.subr.bf16.mxu1 %v5766_v30  ;;  %3793 = vmatpush1.bf16.msra.mxu0 %v5737_v32  ;;  %v6957_v9 = vpop.f32.mrb[2].mxu0  ;;  %v3959_v30 = vor.u32 %v3958_v27, %v3955_v23  ;;  %v3967_v32 = vshrl.u32 %v3918_v7, 16  ;;  %v5787_v23 = vld [vmem:[%s7399_s1 + $0x994] ss:$8 sps:$4 sm:$0xff]   ;;  %v5806_v27 = vld [vmem:[%s7399_s1 + $0x4a0] ss:$8 sps:$4 sm:$0xff]  }
 0x101   : > { %v6962_v44 = vpop.f32.mrb[3].mxu0  ;;  %3794 = vmatprep.subr.bf16.mxu0 %v5745_v33  ;;  %v4004_v39 = vshll.u32 %v3951_v29, 16 }
 0x103   : > { %1946 = vmatpush1.bf16.msra.mxu1 %v5764_v34  ;;  %v3970_v34 = vshll.u32 %v3918_v7, 16  ;;  %v4000_v7 = vrot.slane %v3998_v58, 7  ;;  %v4006_v15 = vrot.slane %v4004_v39, 7 }
 0x104   : > { %1947 = vmatprep.subr.bf16.mxu1 %v5772_v37  ;;  %3795 = vmatpush1.bf16.msra.mxu0 %v5743_v43  ;;  %v3976_v37 = vshll.u32 %v3919_v11, 16  ;;  %v3981_v43 = vshrl.u32 %v3934_v14, 16  ;;  %v4818_v11 = vld.sshfl [vmem:[%s6022_s24 + $0x24] sm:$0xf pattern:$0x76325410] }
 0x105   : > { %3796 = vmatprep.subr.bf16.mxu0 %v5751_v12  ;;  %v3984_v12 = vshll.u32 %v3934_v14, 16  ;;  %v5779_v14 = vld [vmem:[%s7399_s1 + $0x980] ss:$8 sps:$4 sm:$0xff]   ;;  %v4866_v29 = vcombine.low %v4818_v11, %v6775_v18  ;;  %v5793_v18 = vld [vmem:[%s7399_s1 + $0x9a4] ss:$8 sps:$4 sm:$0xff]  }
 0x106   : > { %v3983_v55 = vrot.slane %v3981_v43, 6  ;;  %v5118_v39 = vld.sshfl [vmem:[%s6022_s24 + $0x44] sm:$0x3 pattern:$0x76325410] }
 0x107   : > { %1948 = vmatpush1.bf16.msra.mxu1 %v5770_v60  ;;  %v3986_v56 = vrot.slane %v3984_v12, 7  ;;  %v5823_v11 = vld [vmem:[%s7399_s1 + $0x9f4] ss:$8 sps:$4 sm:$0xff]  }
 0x108   : > { %1949 = vmatprep.subr.bf16.mxu1 %v5778_v62  ;;  %3797 = vmatpush1.bf16.msra.mxu0 %v5749_v48  ;;  %v3964_v62 = vrot.slane %v3962_v13, 7  ;;  %v3969_v48 = vrot.slane %v3967_v32, 6 }
 0x109   : > { %3798 = vmatprep.subr.bf16.mxu0 %v5757_v51  ;;  %v3990_v51 = vshll.u32 %v3935_v21, 16 }
 0x10b   : > { %1950 = vmatpush1.bf16.msra.mxu1 %v5776_v45  ;;  %v3995_v45 = vshrl.u32 %v3950_v28, 16  ;;  %v3992_v6 = vrot.slane %v3990_v51, 7  ;;  %v5814_v28 = vld [vmem:[%s7399_s1 + $0x4b4] ss:$8 sps:$4 sm:$0xff]  }
 0x10c   : > { %1951 = vmatprep.subr.bf16.mxu1 %v5784_v53  ;;  %3799 = vmatpush1.bf16.msra.mxu0 %v5755_v52  ;;  %v5802_v52 = vld [vmem:[%s7399_s1 + $0x494] ss:$8 sps:$4 sm:$0xff]   ;;  %v3960_v53 = vrot.slane %v3959_v30, 2  ;;  %v4868_v30 = vcombine.low %v6781_v22, %v6787_v25  ;;  %v5820_v22 = vld [vmem:[%s7399_s1 + $0x504] ss:$8 sps:$4 sm:$0xff]   ;;  %v7089_v25 = vrot.slane %v4866_v29, %v6089_v20 }
 0x10d   : > { %3800 = vmatprep.subr.bf16.mxu0 %v5763_v54  ;;  %v3972_v54 = vrot.slane %v3970_v34, 7  ;;  %v5785_v34 = vld [vmem:[%s7399_s1 + $0x990] ss:$8 sps:$4 sm:$0xff]   ;;  %v5854_v29 = vld [vmem:[%s7399_s1 + $0x560] ss:$8 sps:$4 sm:$0xff]  }
 0x10e   : > { %v7013_v16 = vpop.f32.mrb[4].mxu0  ;;  %v3965_v10 = vsel %vm6074_vm6, %v3960_v53, %v3964_v62 }
 0x10f   : > { %1952 = vmatpush1.bf16.msra.mxu1 %v5782_v57  ;;  %v7019_v19 = vpop.f32.mrb[5].mxu0  ;;  %v3997_v57 = vrot.slane %v3995_v45, 6  ;;  %v3973_v61 = vor.u32 %v3972_v54, %v3969_v48  ;;  %v7092_v48 = vrot.slane %v4868_v30, %v6089_v20  ;;  %v5862_v30 = vld [vmem:[%s7399_s1 + $0x574] ss:$8 sps:$4 sm:$0xff]  }
 0x110   : > { %1953 = vmatprep.subr.bf16.mxu1 %v5790_v4  ;;  %v7027_v33 = vpop.f32.mrb[6].mxu0  ;;  %3801 = vmatpush1.bf16.msra.mxu0 %v5761_v1  ;;  %v3978_v1 = vrot.slane %v3976_v37, 7  ;;  %v3987_v4 = vor.u32 %v3986_v56, %v3983_v55  ;;  %v5799_v55 = vld [vmem:[%s7399_s1 + $0x9b4] ss:$8 sps:$4 sm:$0xff]   ;;  %v5818_v56 = vld [vmem:[%s7399_s1 + $0x500] ss:$8 sps:$4 sm:$0xff]  }
 0x111   : > { %v7029_v60 = vpop.f32.mrb[7].mxu0  ;;  %3802 = vmatprep.subr.bf16.mxu0 %v5769_v41  ;;  %v5781_v41 = vld [vmem:[%s7399_s1 + $0x984] ss:$8 sps:$4 sm:$0xff]   ;;  %v4001_v13 = vor.u32 %v4000_v7, %v3997_v57  ;;  %v5826_v57 = vld [vmem:[%s7399_s1 + $0x514] ss:$8 sps:$4 sm:$0xff]   ;;  %v2172_v58 = vcombine.high %v7089_v25, %v7092_v48 }
 0x112   : > { %v3988_v3 = vrot.slane %v3987_v4, 2  ;;  %v5832_v4 = vld [vmem:[%s7399_s1 + $0x524] ss:$8 sps:$4 sm:$0xff]   ;;  %v5809_v7 = vld [vmem:[%s7399_s1 + $0x9d0] ss:$8 sps:$4 sm:$0xff]  }
 0x113   : > { %1954 = vmatpush1.bf16.msra.mxu1 %v5788_v5  ;;  %v5800_v5 = vld [vmem:[%s7399_s1 + $0x490] ss:$8 sps:$4 sm:$0xff]   ;;  %v4002_v17 = vrot.slane %v4001_v13, 2  ;;  %v5842_v13 = vld [vmem:[%s7399_s1 + $0x540] ss:$8 sps:$4 sm:$0xff]  }
 0x114   : > { %1955 = vmatprep.subr.bf16.mxu1 %v5796_v38  ;;  %3803 = vmatpush1.bf16.msra.mxu0 %v5767_v50  ;;  %v3974_v38 = vrot.slane %v3973_v61, 2  ;;  %v3993_v50 = vsel %vm6074_vm6, %v3988_v3, %v3992_v6  ;;  %v5805_v61 = vld [vmem:[%s7399_s1 + $0x9c4] ss:$8 sps:$4 sm:$0xff]   ;;  %v5815_v3 = vld [vmem:[%s7399_s1 + $0x9e0] ss:$8 sps:$4 sm:$0xff]  }
 0x115   : > { %3804 = vmatprep.subr.bf16.mxu0 %v5775_v24  ;;  %v4007_v32 = vsel %vm6074_vm6, %v4002_v17, %v4006_v15  ;;  %v5122_v6 = vld.sshfl [vmem:[%s6022_s24 + $0x74] sm:$0x3 pattern:$0x76325410] }
 0x116   : > { %v3979_v21 = vsel %vm6074_vm6, %v3974_v38, %v3978_v1  ;;  %v4051_v37 = vcombine.low %v3993_v50, %v4007_v32  ;;  %v4052_v43 = vcombine.high %v3993_v50, %v4007_v32  ;;  %v5824_v1 = vld [vmem:[%s7399_s1 + $0x510] ss:$8 sps:$4 sm:$0xff]   ;;  %v5850_v15 = vld [vmem:[%s7399_s1 + $0x554] ss:$8 sps:$4 sm:$0xff]  }
 0x117   : > { %1956 = vmatpush1.bf16.msra.mxu1 %v5794_v26  ;;  %v4049_v24 = vcombine.low %v3965_v10, %v3979_v21  ;;  %v4050_v26 = vcombine.high %v3965_v10, %v3979_v21  ;;  %v5817_v10 = vld [vmem:[%s7399_s1 + $0x9e4] ss:$8 sps:$4 sm:$0xff]   ;;  %v5848_v50 = vld [vmem:[%s7399_s1 + $0x550] ss:$8 sps:$4 sm:$0xff]  }
 0x118   : > { %1957 = vmatprep.subr.bf16.mxu1 %v5802_v52  ;;  %3805 = vmatpush1.bf16.msra.mxu0 %v5773_v59  ;;  %v7095_v51 = vrot.slane %v4051_v37, %v6089_v20  ;;  %v7098_v45 = vrot.slane %v4052_v43, %v6089_v20  ;;  %v5791_v52 = vld [vmem:[%s7399_s1 + $0x9a0] ss:$8 sps:$4 sm:$0xff]   ;;  %v5797_v59 = vld [vmem:[%s7399_s1 + $0x9b0] ss:$8 sps:$4 sm:$0xff]   ;;  %v5868_v43 = vld [vmem:[%s7399_s1 + $0x584] ss:$8 sps:$4 sm:$0xff]  }
 0x119   : > { %3806 = vmatprep.subr.bf16.mxu0 %v5781_v41  ;;  %v7074_v12 = vrot.slane %v4049_v24, %v6089_v20  ;;  %v7077_v62 = vrot.slane %v4050_v26, %v6089_v20  ;;  %v5120_v41 = vld.sshfl [vmem:[%s6022_s24 + $0x5c] sm:$0x3 pattern:$0x76325410]  ;;  %v5827_v24 = vld [vmem:[%s7399_s1 + $0xa00] ss:$8 sps:$4 sm:$0xff]  }
 0x11a   : > { %v5833_v32 = vld [vmem:[%s7399_s1 + $0xa10] ss:$8 sps:$4 sm:$0xff]  }
 0x11b   : > { %1958 = vmatpush1.bf16.msra.mxu1 %v5800_v5  ;;  %v4081_v53 = vcombine.low %v7074_v12, %v7095_v51  ;;  %v4083_v54 = vcombine.low %v7077_v62, %v7098_v45  ;;  %v5838_v5 = vld [vmem:[%s7399_s1 + $0x534] ss:$8 sps:$4 sm:$0xff]   ;;  %v4082_v26 = vcombine.high %v7074_v12, %v7095_v51  ;;  %v5860_v37 = vld [vmem:[%s7399_s1 + $0x570] ss:$8 sps:$4 sm:$0xff]  }
 0x11c   : > { %1959 = vmatprep.subr.bf16.mxu1 %v5808_v8  ;;  %3807 = vmatpush1.bf16.msra.mxu0 %v5779_v14  ;;  %v5124_v8 = vld.sshfl [vmem:[%s6022_s24 + $0x8c] sm:$0x3 pattern:$0x76325410]  ;;  %v5928_v12 = vld [vmem:[%s7399_s1 + $0xb34] ss:$8 sps:$4 sm:$0xff]  }
 0x11d   : > { %3808 = vmatprep.subr.bf16.mxu0 %v5787_v23  ;;  %v5168_v38 = vcombine.low %v5122_v6, %v5124_v8  ;;  %v5821_v23 = vld [vmem:[%s7399_s1 + $0x9f0] ss:$8 sps:$4 sm:$0xff]   ;;  %v5890_v6 = vld [vmem:[%s7399_s1 + $0x5c0] ss:$8 sps:$4 sm:$0xff]  }
 0x11e   : > { %v5869_v8 = vld [vmem:[%s7399_s1 + $0xa70] ss:$8 sps:$4 sm:$0xff]  }
 0x11f   : > { %1960 = vmatpush1.bf16.msra.mxu1 %v5806_v27  ;;  %v3573_v21 = vrot.slane %v5168_v38, %v6089_v20  ;;  %v5829_v27 = vld [vmem:[%s7399_s1 + $0xa04] ss:$8 sps:$4 sm:$0xff]   ;;  %v5883_v38 = vld [vmem:[%s7399_s1 + $0xa94] ss:$8 sps:$4 sm:$0xff]  }
 0x120   : > { %1961 = vmatprep.subr.bf16.mxu1 %v5814_v28  ;;  %3809 = vmatpush1.bf16.msra.mxu0 %v5785_v34  ;;  %v5835_v28 = vld [vmem:[%s7399_s1 + $0xa14] ss:$8 sps:$4 sm:$0xff]   ;;  %v5841_v34 = vld [vmem:[%s7399_s1 + $0xa24] ss:$8 sps:$4 sm:$0xff]  }
 0x121   : > { %3810 = vmatprep.subr.bf16.mxu0 %v5793_v18  ;;  %v5839_v18 = vld [vmem:[%s7399_s1 + $0xa20] ss:$8 sps:$4 sm:$0xff]  }
 0x123   : > { %1962 = vmatpush1.bf16.msra.mxu1 %v5812_v0  ;;  %v5847_v0 = vld [vmem:[%s7399_s1 + $0xa34] ss:$8 sps:$4 sm:$0xff]  }
 0x124   : > { %2379 = vmatprep.subr.bf16.mxu1 %v5820_v22  ;;  %3811 = vmatpush1.bf16.msra.mxu0 %v5791_v52  ;;  %v5866_v22 = vld [vmem:[%s7399_s1 + $0x580] ss:$8 sps:$4 sm:$0xff]   ;;  %v5874_v52 = vld [vmem:[%s7399_s1 + $0x594] ss:$8 sps:$4 sm:$0xff]  }
 0x125   : > { %3812 = vmatprep.subr.bf16.mxu0 %v5799_v55  ;;  %v5845_v55 = vld [vmem:[%s7399_s1 + $0xa30] ss:$8 sps:$4 sm:$0xff]  }
 0x126   : > { %1964 = vmatmul.mubr.bf16.vlgmr.msra.gmra.mrb[4].mxu1 %v1723_v49  ;;  %v5830_v49 = vld [vmem:[%s7399_s1 + $0x520] ss:$8 sps:$4 sm:$0xff]  }
 0x127   : > { %2380 = vmatpush1.bf16.msra.mxu1 %v5818_v56  ;;  %2411 = vmatprep.mubr.bf16.mxu1 %v2172_v58  ;;  %v5853_v56 = vld [vmem:[%s7399_s1 + $0xa44] ss:$8 sps:$4 sm:$0xff]  }
 0x128   : > { %2381 = vmatprep.subr.bf16.mxu1 %v5826_v57  ;;  %3813 = vmatpush1.bf16.msra.mxu0 %v5797_v59  ;;  %v5872_v57 = vld [vmem:[%s7399_s1 + $0x590] ss:$8 sps:$4 sm:$0xff]   ;;  %v5880_v58 = vld [vmem:[%s7399_s1 + $0x5a4] ss:$8 sps:$4 sm:$0xff]   ;;  %v5851_v59 = vld [vmem:[%s7399_s1 + $0xa40] ss:$8 sps:$4 sm:$0xff]  }
 0x129   : > { %3825 = vmatprep.subr.bf16.mxu0 %v5805_v61  ;;  %v5859_v61 = vld [vmem:[%s7399_s1 + $0xa54] ss:$8 sps:$4 sm:$0xff]  }
 0x12b   : > { %2382 = vmatpush1.bf16.msra.mxu1 %v5824_v1  ;;  %3815 = vmatmul.mubr.bf16.vlgmr.msra.gmra.mrb[8].mxu0 %v3574_v40  ;;  %v5166_v40 = vcombine.low %v5118_v39, %v5120_v41  ;;  %v5878_v1 = vld [vmem:[%s7399_s1 + $0x5a0] ss:$8 sps:$4 sm:$0xff]   ;;  %v5892_v39 = vld [vmem:[%s7399_s1 + $0x5c4] ss:$8 sps:$4 sm:$0xff]  }
 0x12c   : > { %2383 = vmatprep.subr.bf16.mxu1 %v5832_v4  ;;  %3826 = vmatpush1.bf16.msra.mxu0 %v5803_v46  ;;  %v5886_v4 = vld [vmem:[%s7399_s1 + $0x5b4] ss:$8 sps:$4 sm:$0xff]   ;;  %v5857_v46 = vld [vmem:[%s7399_s1 + $0xa50] ss:$8 sps:$4 sm:$0xff]   ;;  %v5863_v41 = vld [vmem:[%s7399_s1 + $0xa60] ss:$8 sps:$4 sm:$0xff]  }
 0x12d   : > { %3857 = vmatprep.mubr.bf16.mxu0 %v5937_v2  ;;  %3827 = vmatprep.subr.bf16.mxu0 %v5811_v47  ;;  %v3559_v14 = vrot.slane %v5166_v40, %v6089_v20  ;;  %v5856_v20 = vld [vmem:[%s7399_s1 + $0x564] ss:$8 sps:$4 sm:$0xff]   ;;  %v5875_v40 = vld [vmem:[%s7399_s1 + $0xa80] ss:$8 sps:$4 sm:$0xff]  }
 0x12e   : > { %v5865_v47 = vld [vmem:[%s7399_s1 + $0xa64] ss:$8 sps:$4 sm:$0xff]  }
 0x12f   : > { %2384 = vmatpush1.bf16.msra.mxu1 %v5830_v49  ;;  %v3576_v17 = vcombine.low %v3559_v14, %v3573_v21  ;;  %v5884_v49 = vld [vmem:[%s7399_s1 + $0x5b0] ss:$8 sps:$4 sm:$0xff]   ;;  %v5887_v21 = vld [vmem:[%s7399_s1 + $0xaa0] ss:$8 sps:$4 sm:$0xff]  }
 0x130   : > { %2385 = vmatprep.subr.bf16.mxu1 %v5838_v5  ;;  %3828 = vmatpush1.bf16.msra.mxu0 %v5809_v7  ;;  %v5871_v5 = vld [vmem:[%s7399_s1 + $0xa74] ss:$8 sps:$4 sm:$0xff]   ;;  %v5908_v14 = vld [vmem:[%s7399_s1 + $0x5f0] ss:$8 sps:$4 sm:$0xff]  }
 0x131   : > { %3829 = vmatprep.subr.bf16.mxu0 %v5817_v10  ;;  %v5898_v7 = vld [vmem:[%s7399_s1 + $0x5d4] ss:$8 sps:$4 sm:$0xff]   ;;  %v5877_v10 = vld [vmem:[%s7399_s1 + $0xa84] ss:$8 sps:$4 sm:$0xff]  }
 0x133   : > { %2386 = vmatpush1.bf16.msra.mxu1 %v5836_v31  ;;  %v5896_v31 = vld [vmem:[%s7399_s1 + $0x5d0] ss:$8 sps:$4 sm:$0xff]  }
 0x134   : > { %2387 = vmatprep.subr.bf16.mxu1 %v5844_v35  ;;  %3830 = vmatpush1.bf16.msra.mxu0 %v5815_v3  ;;  %v5904_v35 = vld [vmem:[%s7399_s1 + $0x5e4] ss:$8 sps:$4 sm:$0xff]   ;;  %v5902_v3 = vld [vmem:[%s7399_s1 + $0x5e0] ss:$8 sps:$4 sm:$0xff]  }
 0x135   : > { %3831 = vmatprep.subr.bf16.mxu0 %v5823_v11  ;;  %v5910_v11 = vld [vmem:[%s7399_s1 + $0x5f4] ss:$8 sps:$4 sm:$0xff]  }
 0x137   : > { %2388 = vmatpush1.bf16.msra.mxu1 %v5842_v13  ;;  %v5881_v13 = vld [vmem:[%s7399_s1 + $0xa90] ss:$8 sps:$4 sm:$0xff]  }
 0x138   : > { %2389 = vmatprep.subr.bf16.mxu1 %v5850_v15  ;;  %3832 = vmatpush1.bf16.msra.mxu0 %v5821_v23  ;;  %v5889_v15 = vld [vmem:[%s7399_s1 + $0xaa4] ss:$8 sps:$4 sm:$0xff]   ;;  %v2171_v23 = vcombine.low %v7089_v25, %v7092_v48  ;;  %v5899_v25 = vld [vmem:[%s7399_s1 + $0xac0] ss:$8 sps:$4 sm:$0xff]   ;;  %v5907_v48 = vld [vmem:[%s7399_s1 + $0xad4] ss:$8 sps:$4 sm:$0xff]  }
 0x139   : > { %4289 = vmatprep.subr.bf16.mxu0 %v5829_v27  ;;  %v5895_v27 = vld [vmem:[%s7399_s1 + $0xab4] ss:$8 sps:$4 sm:$0xff]  }
 0x13b   : > { %2390 = vmatpush1.bf16.msra.mxu1 %v5848_v50  ;;  %5209 = vmatmul.mubr.msk.bf16.vlgmr.msra.gmra.mrb[8].mxu0 %vm643_vm7, %v3576_v17  ;;  %v5893_v50 = vld [vmem:[%s7399_s1 + $0xab0] ss:$8 sps:$4 sm:$0xff]  }
 0x13c   : > { %2391 = vmatprep.subr.bf16.mxu1 %v5856_v20  ;;  %4290 = vmatpush1.bf16.msra.mxu0 %v5827_v24  ;;  %v5901_v20 = vld [vmem:[%s7399_s1 + $0xac4] ss:$8 sps:$4 sm:$0xff]   ;;  %v5905_v17 = vld [vmem:[%s7399_s1 + $0xad0] ss:$8 sps:$4 sm:$0xff]  }
 0x13d   : > { %4321 = vmatprep.mubr.bf16.mxu0 %v4082_v26  ;;  %4291 = vmatprep.subr.bf16.mxu0 %v5835_v28  ;;  %v5913_v24 = vld [vmem:[%s7399_s1 + $0xae4] ss:$8 sps:$4 sm:$0xff]   ;;  %v5911_v26 = vld [vmem:[%s7399_s1 + $0xae0] ss:$8 sps:$4 sm:$0xff]   ;;  %v5916_v28 = vld [vmem:[%s7399_s1 + $0xaf4] ss:$8 sps:$4 sm:$0xff]  }
 0x13f   : > { %2392 = vmatpush1.bf16.msra.mxu1 %v5854_v29  ;;  %v5914_v29 = vld [vmem:[%s7399_s1 + $0xaf0] ss:$8 sps:$4 sm:$0xff]  }
 0x140   : > { %2393 = vmatprep.subr.bf16.mxu1 %v5862_v30  ;;  %4292 = vmatpush1.bf16.msra.mxu0 %v5833_v32  ;;  %v5919_v30 = vld [vmem:[%s7399_s1 + $0xb04] ss:$8 sps:$4 sm:$0xff]   ;;  %v5917_v32 = vld [vmem:[%s7399_s1 + $0xb00] ss:$8 sps:$4 sm:$0xff]  }
 0x141   : > { %4293 = vmatprep.subr.bf16.mxu0 %v5841_v34  ;;  %v5922_v34 = vld [vmem:[%s7399_s1 + $0xb14] ss:$8 sps:$4 sm:$0xff]  }
 0x143   : > { %2394 = vmatpush1.bf16.msra.mxu1 %v5860_v37  ;;  %v5920_v37 = vld [vmem:[%s7399_s1 + $0xb10] ss:$8 sps:$4 sm:$0xff]  }
 0x144   : > { %2395 = vmatprep.subr.bf16.mxu1 %v5868_v43  ;;  %4294 = vmatpush1.bf16.msra.mxu0 %v5839_v18  ;;  %v5925_v43 = vld [vmem:[%s7399_s1 + $0xb24] ss:$8 sps:$4 sm:$0xff]   ;;  %v5923_v18 = vld [vmem:[%s7399_s1 + $0xb20] ss:$8 sps:$4 sm:$0xff]  }
 0x145   : > { %4295 = vmatprep.subr.bf16.mxu0 %v5847_v0 }
 0x147   : > { %2396 = vmatpush1.bf16.msra.mxu1 %v5866_v22 }
 0x148   : > { %2397 = vmatprep.subr.bf16.mxu1 %v5874_v52  ;;  %4296 = vmatpush1.bf16.msra.mxu0 %v5845_v55 }
 0x149   : > { %4297 = vmatprep.subr.bf16.mxu0 %v5853_v56 }
 0x14b   : > { %2398 = vmatpush1.bf16.msra.mxu1 %v5872_v57 }
 0x14c   : > { %2399 = vmatprep.subr.bf16.mxu1 %v5880_v58  ;;  %4298 = vmatpush1.bf16.msra.mxu0 %v5851_v59 }
 0x14d   : > { %4299 = vmatprep.subr.bf16.mxu0 %v5859_v61 }
 0x14f   : > { %2400 = vmatpush1.bf16.msra.mxu1 %v5878_v1 }
 0x150   : > { %2401 = vmatprep.subr.bf16.mxu1 %v5886_v4  ;;  %4300 = vmatpush1.bf16.msra.mxu0 %v5857_v46 }
 0x151   : > { %4301 = vmatprep.subr.bf16.mxu0 %v5865_v47 }
 0x153   : > { %2402 = vmatpush1.bf16.msra.mxu1 %v5884_v49 }
 0x154   : > { %2403 = vmatprep.subr.bf16.mxu1 %v5892_v39  ;;  %4302 = vmatpush1.bf16.msra.mxu0 %v5863_v41 }
 0x155   : > { %4303 = vmatprep.subr.bf16.mxu0 %v5871_v5 }
 0x157   : > { %2404 = vmatpush1.bf16.msra.mxu1 %v5890_v6 }
 0x158   : > { %2405 = vmatprep.subr.bf16.mxu1 %v5898_v7  ;;  %4304 = vmatpush1.bf16.msra.mxu0 %v5869_v8  ;;  %v4383_v8 = vsub.s32 0, %v6069_v63 }
 0x159   : > { %4305 = vmatprep.subr.bf16.mxu0 %v5877_v10 }
 0x15b   : > { %2406 = vmatpush1.bf16.msra.mxu1 %v5896_v31 }
 0x15c   : > { %2407 = vmatprep.subr.bf16.mxu1 %v5904_v35  ;;  %4306 = vmatpush1.bf16.msra.mxu0 %v5875_v40 }
 0x15d   : > { %4307 = vmatprep.subr.bf16.mxu0 %v5883_v38 }
 0x15f   : > { %2408 = vmatpush1.bf16.msra.mxu1 %v5902_v3 }
 0x160   : > { %2409 = vmatprep.subr.bf16.mxu1 %v5910_v11  ;;  %4308 = vmatpush1.bf16.msra.mxu0 %v5881_v13 }
 0x161   : > { %4309 = vmatprep.subr.bf16.mxu0 %v5889_v15 }
 0x163   : > { %2410 = vmatpush1.bf16.msra.mxu1 %v5908_v14 }
 0x164   : > { %4310 = vmatpush1.bf16.msra.mxu0 %v5887_v21 }
 0x165   : > { %4311 = vmatprep.subr.bf16.mxu0 %v5895_v27 }
 0x166   : > { %2412 = vmatmul.mubr.bf16.vlgmr.msra.gmra.mrb[8].mxu1 %v2171_v23 }
 0x168   : > { %4312 = vmatpush1.bf16.msra.mxu0 %v5893_v50 }
 0x169   : > { %4313 = vmatprep.subr.bf16.mxu0 %v5901_v20 }
 0x16c   : > { %4314 = vmatpush1.bf16.msra.mxu0 %v5899_v25 }
 0x16d   : > { %4315 = vmatprep.subr.bf16.mxu0 %v5907_v48 }
 0x170   : > { %4316 = vmatpush1.bf16.msra.mxu0 %v5905_v17 }
 0x171   : > { %4317 = vmatprep.subr.bf16.mxu0 %v5913_v24 }
 0x174   : > { %4318 = vmatpush1.bf16.msra.mxu0 %v5911_v26 }
 0x175   : > { %4319 = vmatprep.subr.bf16.mxu0 %v5916_v28 }
 0x178   : > { %4320 = vmatpush1.bf16.msra.mxu0 %v5914_v29 }
 0x179   : > { %4332 = vmatprep.subr.bf16.mxu0 %v5919_v30 }
 0x17b   : > { %4322 = vmatmul.mubr.bf16.vlgmr.msra.gmra.mrb[8].mxu0 %v4081_v53 }
 0x17c   : > { %4333 = vmatpush1.bf16.msra.mxu0 %v5917_v32  ;;  %4364 = vmatprep.mubr.bf16.mxu0 %v5937_v2  ;;  %v5926_v2 = vld [vmem:[%s7399_s1 + $0xb30] ss:$8 sps:$4 sm:$0xff]  }
 0x17d   : > { %4334 = vmatprep.subr.bf16.mxu0 %v5922_v34 }
 0x180   : > { %4335 = vmatpush1.bf16.msra.mxu0 %v5920_v37 }
 0x181   : > { %4336 = vmatprep.subr.bf16.mxu0 %v5925_v43 }
 0x184   : > { %4337 = vmatpush1.bf16.msra.mxu0 %v5923_v18 }
 0x185   : > { %4338 = vmatprep.subr.bf16.mxu0 %v5928_v12 }
 0x188   : > { %4339 = vmatpush1.bf16.msra.mxu0 %v5926_v2 }
 0x18b   : > { %5306 = vmatmul.mubr.msk.bf16.vlgmr.msra.gmra.mrb[8].mxu0 %vm643_vm7, %v4083_v54 }
 0x1b9   : > { %v1517_v51 = vpop.f32.mrb[0].mxu1 }
 0x1ba   : > { %v1561_v53 = vadd.f32 %v6947_v36, %v1517_v51  ;;  %v1519_v0 = vpop.f32.mrb[1].mxu1 }
 0x1bb   : > { %v1563_v22 = vadd.f32 %v6952_v42, %v1519_v0  ;;  %v1521_v52 = vpop.f32.mrb[2].mxu1 }
 0x1bc   : > { %v1565_v55 = vadd.f32 %v6957_v9, %v1521_v52  ;;  %v1523_v56 = vpop.f32.mrb[3].mxu1 }
 0x1bd   : > { %v1567_v57 = vadd.f32 %v6962_v44, %v1523_v56 }
 0x1f9   : > { %v1965_v58 = vpop.f32.mrb[4].mxu1 }
 0x1fa   : > { %v5311_v59 = vadd.f32 %v1965_v58, %v1561_v53  ;;  %v1967_v61 = vpop.f32.mrb[5].mxu1 }
 0x1fb   : > { %v5316_v1 = vadd.f32 %v1967_v61, %v1563_v22  ;;  %v1969_v4 = vpop.f32.mrb[6].mxu1 }
 0x1fc   : > { %v5321_v62 = vadd.f32 %v1969_v4, %v1565_v55  ;;  %v1971_v45 = vpop.f32.mrb[7].mxu1  ;;  %v5312_v54 = vadd.f32 %v5311_v59, %v7013_v16  ;;  %v4379_v16 = vld [vmem:[%s7400_s2] sm:$0x3] }
 0x1fd   : > { %v5326_v46 = vadd.f32 %v1971_v45, %v1567_v57  ;;  %v5317_v36 = vadd.f32 %v5316_v1, %v7019_v19  ;;  %v4387_v19 = vsub.s32 1, %v6069_v63 }
 0x1fe   : > { %v5322_v42 = vadd.f32 %v5321_v62, %v7027_v33  ;;  %v4384_v33 = vrot.slane %v4379_v16, %v4383_v8 }
 0x1ff   : > { %v5327_v9 = vadd.f32 %v5326_v46, %v7029_v60  ;;  %v4388_v31 = vrot.slane %v4379_v16, %v4387_v19 }
 0x239   : > { %v2413_v47 = vpop.f32.mrb[8].mxu1 }
 0x23a   : > { %v5313_v49 = vadd.f32 %v5312_v54, %v2413_v47  ;;  %v2415_v44 = vpop.f32.mrb[9].mxu1 }
 0x23b   : > { %v5318_v39 = vadd.f32 %v5317_v36, %v2415_v44  ;;  %v2417_v41 = vpop.f32.mrb[10].mxu1 }
 0x23c   : > { %v5323_v5 = vadd.f32 %v5322_v42, %v2417_v41  ;;  %v2419_v6 = vpop.f32.mrb[11].mxu1 }
 0x23d   : > { %v5328_v7 = vadd.f32 %v5327_v9, %v2419_v6 }
 0x25e   : > { %v4366_v10 = vpop.f32.mrb[8].mxu0 }
 0x25f   : > { %v5314_v60 = vadd.f32 %v5313_v49, %v4366_v10  ;;  %v4368_v35 = vpop.f32.mrb[9].mxu0 }
 0x260   : > { %v5319_v40 = vadd.f32 %v5318_v39, %v4368_v35  ;;  %v4370_v38 = vpop.f32.mrb[10].mxu0 }
 0x261   : > { %v4391_v3 = vadd.f32 %v5314_v60, %v4384_v33  ;;  %v5324_v11 = vadd.f32 %v5323_v5, %v4370_v38  ;;  %v4372_v13 = vpop.f32.mrb[11].mxu0 }
 0x262   : > { %v4392_v15 = vadd.f32 %v5319_v40, %v4388_v31  ;;  %v5329_v14 = vadd.f32 %v5328_v7, %v4372_v13 }
 0x263   : > { %v4395_v21 = vmax.f32 %v4391_v3, 0.0  ;;  %v4393_v23 = vadd.f32 %v5324_v11, %v4384_v33 }
 0x264   : > { %v4396_v63 = vmax.f32 %v4392_v15, 0.0  ;;  %v4394_v27 = vadd.f32 %v5329_v14, %v4388_v31 }
 0x265   : > { %4399 = vst [vmem:[%s170_s15] sm:$0xff] %v4395_v21  ;;  %v4397_v50 = vmax.f32 %v4393_v23, 0.0 }
 0x266   : > { %4400 = vst [vmem:[%s170_s15 + $0x8] sm:$0xff] %v4396_v63  ;;  %v4398_v20 = vmax.f32 %v4394_v27, 0.0 }
 0x267   : > { %4401 = vst [vmem:[%s170_s15 + $0x10] sm:$0xff] %v4397_v50 }
 0x268   : > { %4402 = vst [vmem:[%s170_s15 + $0x18] sm:$0xff] %v4398_v20 }
 0x269 PF: > { %s13_s12 = sadd.s32 1, %s5935_s12  }
 0x26a   : > { %p10_p4 = scmp.ge.s32.totalorder %s13_s12, 4  }
 0x26c   :  { %12 = sbr.rel (!%p10_p4) target bundleno = 1 (0x1), region = 75 }

</bundles_post_ra>
